<compile_context>
chip_gen: v5e
topology: v5e:2x2
jax: 0.10.0
libtpu: 0.0.40
codegen_flags: <defaults>
</compile_context>

<pallas_src>
import jax
import jax.numpy as jnp
import numpy as np
from jax.experimental import pallas as pl
from jax.experimental.pallas import tpu as pltpu


def _round_up(v, m):
    return (v + m - 1) // m * m


# --------------------------------------------------------------------------------------
# Kernel: fused input projection + masked GRU recurrence for one (N-tile, time-block).
# --------------------------------------------------------------------------------------
def _gru_kernel(x_ref, m_ref, wih_ref, whh_rz_ref, whh_n_ref,
                bcomb_ref, bhn_ref, h0_ref, out_ref, h_scr):
    """
    x_ref:      (nt, tb, D)   raw inputs (input projection fused in-kernel)
    m_ref:      (tb, nt, 1)   binary reset masks for this time block
    wih_ref:    (D, 3*Hp)     W_ih^T, gate-padded, [r|z|n] column blocks (matmul dtype)
    whh_rz_ref: (Hp, 2*Hp)    W_hh^T for the r,z gates
    whh_n_ref:  (Hp, Hp)      W_hh^T for the n gate
    bcomb_ref:  (1, 3*Hp)     b_ih + [b_hr, b_hz, 0]  (f32)
    bhn_ref:    (1, Hp)       b_hn (must stay inside the r*(...) term)
    h0_ref:     (nt, Hp)      initial hidden state for this N-tile (f32)
    out_ref:    (nt, tb, Hp)  per-step hidden states (f32)
    h_scr:      (nt, Hp) f32  hidden-state carry across time-blocks (grid axis 1)
    """
    nt, tb, _ = x_ref.shape
    Hp = h_scr.shape[-1]
    mm = whh_rz_ref.dtype
    f32 = jnp.float32

    @pl.when(pl.program_id(1) == 0)
    def _():
        h_scr[...] = h0_ref[...].astype(f32)

    # Hoisted bias loads + broadcasts (JAX does not CSE broadcast_in_dim in the loop).
    bcomb = jnp.broadcast_to(bcomb_ref[...], (nt, 3 * Hp))
    bhn = jnp.broadcast_to(bhn_ref[...], (nt, Hp))

    h = h_scr[...]
    # Fully-unrolled inner time loop: static indices, one basic block for the scheduler.
    for j in range(tb):
        hm = h * m_ref[j]                              # h <- h * mask[t] (binary mask)
        hm_c = hm.astype(mm)
        # Fused input projection for this step (independent of h -> overlaps recurrence).
        gx = jnp.dot(x_ref[:, j, :].astype(mm), wih_ref[...],
                     preferred_element_type=f32) + bcomb
        # r/z matmul first so their sigmoids (EUP) overlap the n-gate matmul (MXU).
        gh_rz = jnp.dot(hm_c, whh_rz_ref[...], preferred_element_type=f32)
        r = jax.nn.sigmoid(gx[:, :Hp] + gh_rz[:, :Hp])
        z = jax.nn.sigmoid(gx[:, Hp:2 * Hp] + gh_rz[:, Hp:])
        gh_n = jnp.dot(hm_c, whh_n_ref[...], preferred_element_type=f32)
        n = jnp.tanh(gx[:, 2 * Hp:] + r * (gh_n + bhn))
        h = n + z * (hm - n)                           # == (1 - z)*n + z*hm
        out_ref[:, j, :] = h.astype(out_ref.dtype)

    h_scr[...] = h


# --------------------------------------------------------------------------------------
# Tiling helpers
# --------------------------------------------------------------------------------------
def _pick_batch_tile(N):
    # Multiple-of-8 N tile: enables the "parallel" grid axis (v7x megacore) and bounds
    # VMEM/vreg pressure.  Small N (RL rollouts) keeps the whole batch in one tile.
    for cand in (128, 64, 32, 16, 8):
        if N % cand == 0:
            return cand
    return N


def _pick_time_block(Tp, nt, D, Hp):
    # Tp is a multiple of 8.  Keep the per-block (x + out, double-buffered) footprint
    # modest so it also fits v7x's 64 MiB VMEM.
    for cand in (16, 8):
        if Tp % cand == 0 and 2 * nt * cand * (D + Hp) * 4 <= (4 << 20):
            return cand
    return 8


# --------------------------------------------------------------------------------------
# Wrapper around pallas_call
# --------------------------------------------------------------------------------------
def gru_pallas(x_ntd, masks_tn1, h0, w_ih, w_hh, b_ih, b_hh, *,
               matmul_dtype=jnp.bfloat16):
    """Masked GRU over time.
      x_ntd:     (N, T, D)  inputs, N-major (torch x.view(N, T, D))
      masks_tn1: (T, N, 1)  binary reset masks, T-major (torch masks.view(T, N))
      h0:        (N, H)     initial hidden state
    Returns (out (N, T, H), h_last (N, H)), float32."""
    N, T, D = x_ntd.shape
    H = h0.shape[-1]
    f32 = jnp.float32
    Hp = _round_up(H, 128)                 # lane-dense hidden width
    G = 3 * Hp
    ph = Hp - H

    # ---- per-gate zero padding of parameters (padded lanes stay exactly zero) ----
    w_ih3 = jnp.asarray(w_ih, f32).reshape(3, H, D)
    w_hh3 = jnp.asarray(w_hh, f32).reshape(3, H, H)
    b_ih3 = jnp.asarray(b_ih, f32).reshape(3, H)
    b_hh3 = jnp.asarray(b_hh, f32).reshape(3, H)

    wih_t = jnp.pad(w_ih3, ((0, 0), (0, ph), (0, 0))).reshape(G, D).T.astype(matmul_dtype)
    whh_t = jnp.pad(w_hh3, ((0, 0), (0, ph), (0, ph))).reshape(G, Hp).T     # (Hp, G) f32
    whh_rz = whh_t[:, :2 * Hp].astype(matmul_dtype)                         # (Hp, 2Hp)
    whh_n = whh_t[:, 2 * Hp:].astype(matmul_dtype)                          # (Hp, Hp)

    # Fold b_hh of the r/z gates into b_ih (they sit outside any r* factor);
    # the n-gate b_hh must stay inside r*(...), so it is passed separately.
    bcomb3 = b_ih3 + b_hh3 * jnp.array([1.0, 1.0, 0.0], f32)[:, None]
    bcomb = jnp.pad(bcomb3, ((0, 0), (0, ph))).reshape(1, G)                # (1, 3Hp)
    bhn = jnp.pad(b_hh3[2:3], ((0, 0), (0, ph)))                            # (1, Hp)

    h0_p = jnp.pad(jnp.asarray(h0, f32), ((0, 0), (0, ph)))                 # (N, Hp)

    # ---- pad T to a multiple of 8 (zero inputs, mask = 1); padded steps discarded ----
    Tp = _round_up(max(T, 1), 8)
    x_f = jnp.asarray(x_ntd, f32)
    m_f = jnp.asarray(masks_tn1, f32)
    if Tp != T:
        x_f = jnp.pad(x_f, ((0, 0), (0, Tp - T), (0, 0)))
        m_f = jnp.pad(m_f, ((0, Tp - T), (0, 0), (0, 0)), constant_values=1.0)

    nt = _pick_batch_tile(N)
    tb = _pick_time_block(Tp, nt, D, Hp)
    grid = (N // nt, Tp // tb)

    # ---- explicit VMEM budget (blocks are double-buffered), capped at v7x's 64 MiB ----
    itm = jnp.dtype(matmul_dtype).itemsize
    vmem_need = (2 * nt * tb * (D + Hp) * 4              # x + out double buffers
                 + 2 * tb * _round_up(nt, 8) * 128 * 4   # masks (lane-padded blocks)
                 + 2 * (D + Hp) * G * itm                # W_ih^T, W_hh^T
                 + 2 * (G + Hp) * 4                      # biases
                 + 2 * nt * Hp * 4                       # h0 block
                 + nt * Hp * 4                           # h carry scratch
                 + 12 * nt * Hp * 4)                     # spilled gate temporaries
    vmem_limit = int(min(max(2 * vmem_need, 32 << 20), 64 << 20))

    cost = pl.CostEstimate(
        flops=int(N * Tp * (2 * (D + Hp) * G + 12 * Hp)),
        transcendentals=int(3 * N * Tp * Hp),
        bytes_accessed=int(4 * (N * Tp * (D + Hp) + Tp * N + 2 * N * Hp)
                           + itm * (D + Hp) * G),
    )

    grid_spec = pltpu.PrefetchScalarGridSpec(
        num_scalar_prefetch=0,
        grid=grid,
        in_specs=[
            pl.BlockSpec((nt, tb, D), lambda i, k: (i, k, 0)),    # x (N-tile, time block)
            pl.BlockSpec((tb, nt, 1), lambda i, k: (k, i, 0)),    # masks, time-blocked
            pl.BlockSpec((D, G), lambda i, k: (0, 0)),            # W_ih^T (resident)
            pl.BlockSpec((Hp, 2 * Hp), lambda i, k: (0, 0)),      # W_hh^T r,z (resident)
            pl.BlockSpec((Hp, Hp), lambda i, k: (0, 0)),          # W_hh^T n   (resident)
            pl.BlockSpec((1, G), lambda i, k: (0, 0)),            # combined bias
            pl.BlockSpec((1, Hp), lambda i, k: (0, 0)),           # b_hn
            pl.BlockSpec((nt, Hp), lambda i, k: (i, 0)),          # h0 per N-tile
        ],
        out_specs=pl.BlockSpec((nt, tb, Hp), lambda i, k: (i, k, 0)),
        scratch_shapes=[pltpu.VMEM((nt, Hp), jnp.float32)],       # hidden-state carry
    )

    out_p = pl.pallas_call(
        _gru_kernel,
        out_shape=jax.ShapeDtypeStruct((N, Tp, Hp), jnp.float32),
        grid_spec=grid_spec,
        compiler_params=pltpu.CompilerParams(
            # N-tiles are independent ("parallel" -> 2 TCs on v7x); time is a true
            # recurrence carried through h_scr -> "arbitrary".
            dimension_semantics=("parallel", "arbitrary"),
            vmem_limit_bytes=vmem_limit,
        ),
        cost_estimate=cost,
    )(x_f, m_f, wih_t, whh_rz, whh_n, bcomb, bhn, h0_p)

    out = out_p[:, :T, :H]            # drop time padding + lane padding
    h_last = out_p[:, T - 1, :H]      # hidden state after the last REAL step
    return out, h_last


# --------------------------------------------------------------------------------------
# Module-level wrapper mirroring RNNlayer.forward
# --------------------------------------------------------------------------------------
def rnn_layer_forward(x, hxs, masks, params, *, matmul_dtype=jnp.bfloat16):
    """Mirrors RNNlayer.forward.
       single step: x (N, D),    masks (N, 1)
       rollout:     x (N*T, D)   stored N-major (torch x.view(N, T, D)),
                    masks (T*N, 1) stored T-major (torch masks.view(T, N))."""
    w_ih, w_hh, b_ih, b_hh = params
    N, H = hxs.shape
    D = x.shape[-1]
    if x.shape[0] == N:
        out, h_last = gru_pallas(x.reshape(N, 1, D), masks.reshape(1, N, 1), hxs,
                                 w_ih, w_hh, b_ih, b_hh, matmul_dtype=matmul_dtype)
        return out.reshape(N, H), h_last
    T = x.shape[0] // N
    out, h_last = gru_pallas(x.reshape(N, T, D), masks.reshape(T, N, 1), hxs,
                             w_ih, w_hh, b_ih, b_hh, matmul_dtype=matmul_dtype)
    # torch: transpose (T,N,H)->(N,T,H) then reshape(T*N, H)  ==  reshape of N-major out.
    return out.reshape(N * T, H), h_last


# ---------------- parameter init (deterministic, mirrors __init__) ----------------
def make_gru_params(key, inputs_dim, outputs_dim, use_orthogonal=True):
    k1, k2 = jax.random.split(key)
    init = (jax.nn.initializers.orthogonal() if use_orthogonal
            else jax.nn.initializers.glorot_uniform())
    w_ih = init(k1, (3 * outputs_dim, inputs_dim), jnp.float32)    # weight_ih_l0
    w_hh = init(k2, (3 * outputs_dim, outputs_dim), jnp.float32)   # weight_hh_l0
    b_ih = jnp.zeros((3 * outputs_dim,), jnp.float32)              # bias init = 0
    b_hh = jnp.zeros((3 * outputs_dim,), jnp.float32)
    return w_ih, w_hh, b_ih, b_hh


# ---------------- pure-JAX reference (correctness oracle) ----------------
def _gru_cell_ref(x, h, w_ih, w_hh, b_ih, b_hh):
    H = h.shape[-1]
    hp = jax.lax.Precision.HIGHEST
    gx = jnp.dot(x, w_ih.T, precision=hp) + b_ih
    gh = jnp.dot(h, w_hh.T, precision=hp) + b_hh
    r = jax.nn.sigmoid(gx[:, :H] + gh[:, :H])
    z = jax.nn.sigmoid(gx[:, H:2 * H] + gh[:, H:2 * H])
    n = jnp.tanh(gx[:, 2 * H:] + r * gh[:, 2 * H:])
    return (1.0 - z) * n + z * h


def rnn_layer_forward_ref(x, hxs, masks, params):
    w_ih, w_hh, b_ih, b_hh = params
    H = hxs.shape[-1]
    if x.shape[0] == hxs.shape[0]:
        h = _gru_cell_ref(x, hxs * masks, w_ih, w_hh, b_ih, b_hh)
        return h, h
    N = hxs.shape[0]
    T = x.shape[0] // N
    x_t = jnp.transpose(x.reshape(N, T, -1), (1, 0, 2))
    m_t = masks.reshape(T, N)[:, :, None]
    h = hxs
    outs = []
    for t in range(T):
        h = _gru_cell_ref(x_t[t], h * m_t[t], w_ih, w_hh, b_ih, b_hh)
        outs.append(h)
    out = jnp.transpose(jnp.stack(outs, 0), (1, 0, 2)).reshape(T * N, H)
    return out, h


if __name__ == "__main__":
    key = jax.random.PRNGKey(0)
    k_p, k_x, k_h, k_m, k_x1, k_m1, k_b1, k_b2 = jax.random.split(key, 8)

    # Small shapes: N=4 envs, T=40 steps, D=32, H=64 (-> Hp=128, tb=8, grid=(1, 5)).
    N, T, D, H = 4, 40, 32, 64
    params = make_gru_params(k_p, D, H, use_orthogonal=True)

    # rollout branch: x (T*N, D) stored N-major, masks (T*N, 1) T-major binary, hxs (N, H)
    x_seq = jax.random.normal(k_x, (T * N, D), jnp.float32)
    hxs = jax.random.normal(k_h, (N, H), jnp.float32)
    masks_seq = (jax.random.uniform(k_m, (T * N, 1)) > 0.25).astype(jnp.float32)

    # f32 MXU-operand path (strict check) and bf16 default path (loose check)
    out_f32, h_f32 = rnn_layer_forward(x_seq, hxs, masks_seq, params,
                                       matmul_dtype=jnp.float32)
    out_bf, h_bf = rnn_layer_forward(x_seq, hxs, masks_seq, params)      # bf16 default
    jax.block_until_ready((out_f32, h_f32, out_bf, h_bf))

    # single-step branch: x (N, D), masks (N, 1)
    x_one = jax.random.normal(k_x1, (N, D), jnp.float32)
    masks_one = (jax.random.uniform(k_m1, (N, 1)) > 0.25).astype(jnp.float32)
    out_one, h_one = rnn_layer_forward(x_one, hxs, masks_one, params,
                                       matmul_dtype=jnp.float32)
    jax.block_until_ready((out_one, h_one))

    # references
    ref_out_seq, ref_h_seq = rnn_layer_forward_ref(x_seq, hxs, masks_seq, params)
    ref_out_one, ref_h_one = rnn_layer_forward_ref(x_one, hxs, masks_one, params)

    np.testing.assert_allclose(np.asarray(out_f32), np.asarray(ref_out_seq), rtol=1e-4, atol=1e-4)
    np.testing.assert_allclose(np.asarray(h_f32), np.asarray(ref_h_seq), rtol=1e-4, atol=1e-4)
    np.testing.assert_allclose(np.asarray(out_one), np.asarray(ref_out_one), rtol=1e-4, atol=1e-4)
    np.testing.assert_allclose(np.asarray(h_one), np.asarray(ref_h_one), rtol=1e-4, atol=1e-4)
    # bf16 MXU operands (f32 gate math / carry): tolerance check against the f32 path.
    np.testing.assert_allclose(np.asarray(out_bf), np.asarray(out_f32), rtol=1e-1, atol=1e-1)
    np.testing.assert_allclose(np.asarray(h_bf), np.asarray(h_f32), rtol=1e-1, atol=1e-1)

    # Nonzero biases (exercises the b_hh r/z -> b_ih folding; trained params are nonzero).
    w_ih, w_hh, _, _ = params
    params_b = (w_ih, w_hh,
                0.1 * jax.random.normal(k_b1, (3 * H,), jnp.float32),
                0.1 * jax.random.normal(k_b2, (3 * H,), jnp.float32))
    out_b, h_b = rnn_layer_forward(x_seq, hxs, masks_seq, params_b, matmul_dtype=jnp.float32)
    ref_out_b, ref_h_b = rnn_layer_forward_ref(x_seq, hxs, masks_seq, params_b)
    np.testing.assert_allclose(np.asarray(out_b), np.asarray(ref_out_b), rtol=1e-4, atol=1e-4)
    np.testing.assert_allclose(np.asarray(h_b), np.asarray(ref_h_b), rtol=1e-4, atol=1e-4)

    print("KERNEL_OK")
</pallas_src>

<mosaic_0001>
module attributes {stable_mosaic.version = 11 : i64} {
  func.func @_gru_kernel(%arg0: i32, %arg1: i32, %arg2: memref<4x8x32xf32, #tpu.memory_space<vmem>>, %arg3: memref<8x4x1xf32, #tpu.memory_space<vmem>>, %arg4: memref<32x384xf32, #tpu.memory_space<vmem>>, %arg5: memref<128x256xf32, #tpu.memory_space<vmem>>, %arg6: memref<128x128xf32, #tpu.memory_space<vmem>>, %arg7: memref<1x384xf32, #tpu.memory_space<vmem>>, %arg8: memref<1x128xf32, #tpu.memory_space<vmem>>, %arg9: memref<4x128xf32, #tpu.memory_space<vmem>>, %arg10: memref<4x8x128xf32, #tpu.memory_space<vmem>>, %arg11: memref<4x128xf32, #tpu.memory_space<vmem>>) attributes {dimension_semantics = [#tpu.dimension_semantics<parallel>, #tpu.dimension_semantics<arbitrary>], iteration_bounds = array<i64: 1, 5>, scalar_prefetch = 0 : i64, scratch_operands = 1 : i64, tpu.core_type = #tpu.core_type<tc>, window_params = [{transform_indices = @transform_0, window_bounds = array<i64: 4, 8, 32>}, {transform_indices = @transform_1, window_bounds = array<i64: 8, 4, 1>}, {pipeline_mode = #tpu.pipeline_mode<synchronous>, transform_indices = @transform_2, window_bounds = array<i64: 32, 384>}, {pipeline_mode = #tpu.pipeline_mode<synchronous>, transform_indices = @transform_3, window_bounds = array<i64: 128, 256>}, {pipeline_mode = #tpu.pipeline_mode<synchronous>, transform_indices = @transform_4, window_bounds = array<i64: 128, 128>}, {pipeline_mode = #tpu.pipeline_mode<synchronous>, transform_indices = @transform_5, window_bounds = array<i64: 1, 384>}, {pipeline_mode = #tpu.pipeline_mode<synchronous>, transform_indices = @transform_6, window_bounds = array<i64: 1, 128>}, {transform_indices = @transform_7, window_bounds = array<i64: 4, 128>}, {transform_indices = @transform_8, window_bounds = array<i64: 4, 8, 128>}]} {
    %c0_i32 = arith.constant 0 : i32
    %0 = arith.cmpi eq, %arg1, %c0_i32 : i32
    %1 = arith.extui %0 : i1 to i32
    %c0_i32_0 = arith.constant 0 : i32
    %2 = arith.cmpi ne, %1, %c0_i32_0 : i32
    scf.if %2 {
      %c0_160 = arith.constant 0 : index
      %c0_161 = arith.constant 0 : index
      %331 = vector.load %arg9[%c0_160, %c0_161] : memref<4x128xf32, #tpu.memory_space<vmem>>, vector<4x128xf32>
      %c0_162 = arith.constant 0 : index
      %c0_163 = arith.constant 0 : index
      %332 = vector.load %arg11[%c0_162, %c0_163] : memref<4x128xf32, #tpu.memory_space<vmem>>, vector<4x128xf32>
      tpu.vector_store %arg11[%c0_162, %c0_163], %331 {strides = array<i32>} : memref<4x128xf32, #tpu.memory_space<vmem>>, vector<4x128xf32>,
    } else {
    }
    %c0 = arith.constant 0 : index
    %c0_1 = arith.constant 0 : index
    %3 = vector.load %arg7[%c0, %c0_1] : memref<1x384xf32, #tpu.memory_space<vmem>>, vector<1x384xf32>
    %4 = vector.shape_cast %3 : vector<1x384xf32> to vector<1x384xf32>
    %5 = vector.broadcast %4 : vector<1x384xf32> to vector<4x384xf32>
    %c0_2 = arith.constant 0 : index
    %c0_3 = arith.constant 0 : index
    %6 = vector.load %arg8[%c0_2, %c0_3] : memref<1x128xf32, #tpu.memory_space<vmem>>, vector<1x128xf32>
    %7 = vector.shape_cast %6 : vector<1x128xf32> to vector<1x128xf32>
    %8 = vector.broadcast %7 : vector<1x128xf32> to vector<4x128xf32>
    %c0_4 = arith.constant 0 : index
    %c0_5 = arith.constant 0 : index
    %9 = vector.load %arg11[%c0_4, %c0_5] : memref<4x128xf32, #tpu.memory_space<vmem>>, vector<4x128xf32>
    %c0_6 = arith.constant 0 : index
    %c0_7 = arith.constant 0 : index
    %c0_8 = arith.constant 0 : index
    %10 = vector.load %arg3[%c0_6, %c0_7, %c0_8] : memref<8x4x1xf32, #tpu.memory_space<vmem>>, vector<1x4x1xf32>
    %11 = vector.shape_cast %10 : vector<1x4x1xf32> to vector<4x1xf32>
    %12 = vector.broadcast %11 : vector<4x1xf32> to vector<4x128xf32>
    %13 = arith.mulf %9, %12 : vector<4x128xf32>
    %c0_9 = arith.constant 0 : index
    %c0_10 = arith.constant 0 : index
    %c0_11 = arith.constant 0 : index
    %14 = vector.load %arg2[%c0_9, %c0_10, %c0_11] : memref<4x8x32xf32, #tpu.memory_space<vmem>>, vector<4x1x32xf32>
    %15 = vector.shape_cast %14 : vector<4x1x32xf32> to vector<4x32xf32>
    %c0_12 = arith.constant 0 : index
    %c0_13 = arith.constant 0 : index
    %16 = vector.load %arg4[%c0_12, %c0_13] : memref<32x384xf32, #tpu.memory_space<vmem>>, vector<32x384xf32>
    %cst = arith.constant dense<0.000000e+00> : vector<4x384xf32>
    %17 = tpu.matmul %15, %16, %cst {dimension_numbers = #tpu.dot_dimension_numbers<[1], [0], [0], [1], [0, 0, 1, 1], [], []>} : vector<4x32xf32>, vector<32x384xf32>, vector<4x384xf32> -> vector<4x384xf32>
    %18 = arith.addf %17, %5 : vector<4x384xf32>
    %c0_14 = arith.constant 0 : index
    %c0_15 = arith.constant 0 : index
    %19 = vector.load %arg5[%c0_14, %c0_15] : memref<128x256xf32, #tpu.memory_space<vmem>>, vector<128x256xf32>
    %cst_16 = arith.constant dense<0.000000e+00> : vector<4x256xf32>
    %20 = tpu.matmul %13, %19, %cst_16 {dimension_numbers = #tpu.dot_dimension_numbers<[1], [0], [0], [1], [0, 0, 1, 1], [], []>} : vector<4x128xf32>, vector<128x256xf32>, vector<4x256xf32> -> vector<4x256xf32>
    %21 = vector.extract_strided_slice %18 {offsets = [0, 0], sizes = [4, 128], strides = [1, 1]} : vector<4x384xf32> to vector<4x128xf32>
    %22 = vector.extract_strided_slice %20 {offsets = [0, 0], sizes = [4, 128], strides = [1, 1]} : vector<4x256xf32> to vector<4x128xf32>
    %23 = arith.addf %21, %22 : vector<4x128xf32>
    %24 = arith.negf %23 : vector<4x128xf32>
    %25 = math.exp %24 : vector<4x128xf32>
    %cst_17 = arith.constant 1.000000e+00 : f32
    %26 = vector.broadcast %cst_17 : f32 to vector<4x128xf32>
    %27 = arith.addf %26, %25 : vector<4x128xf32>
    %28 = arith.divf %26, %27 : vector<4x128xf32>
    %29 = vector.extract_strided_slice %18 {offsets = [0, 128], sizes = [4, 128], strides = [1, 1]} : vector<4x384xf32> to vector<4x128xf32>
    %30 = vector.extract_strided_slice %20 {offsets = [0, 128], sizes = [4, 128], strides = [1, 1]} : vector<4x256xf32> to vector<4x128xf32>
    %31 = arith.addf %29, %30 : vector<4x128xf32>
    %32 = arith.negf %31 : vector<4x128xf32>
    %33 = math.exp %32 : vector<4x128xf32>
    %cst_18 = arith.constant 1.000000e+00 : f32
    %34 = vector.broadcast %cst_18 : f32 to vector<4x128xf32>
    %35 = arith.addf %34, %33 : vector<4x128xf32>
    %36 = arith.divf %34, %35 : vector<4x128xf32>
    %c0_19 = arith.constant 0 : index
    %c0_20 = arith.constant 0 : index
    %37 = vector.load %arg6[%c0_19, %c0_20] : memref<128x128xf32, #tpu.memory_space<vmem>>, vector<128x128xf32>
    %cst_21 = arith.constant dense<0.000000e+00> : vector<4x128xf32>
    %38 = tpu.matmul %13, %37, %cst_21 {dimension_numbers = #tpu.dot_dimension_numbers<[1], [0], [0], [1], [0, 0, 1, 1], [], []>} : vector<4x128xf32>, vector<128x128xf32>, vector<4x128xf32> -> vector<4x128xf32>
    %39 = vector.extract_strided_slice %18 {offsets = [0, 256], sizes = [4, 128], strides = [1, 1]} : vector<4x384xf32> to vector<4x128xf32>
    %40 = arith.addf %38, %8 : vector<4x128xf32>
    %41 = arith.mulf %28, %40 : vector<4x128xf32>
    %42 = arith.addf %39, %41 : vector<4x128xf32>
    %43 = math.tanh %42 : vector<4x128xf32>
    %44 = arith.subf %13, %43 : vector<4x128xf32>
    %45 = arith.mulf %36, %44 : vector<4x128xf32>
    %46 = arith.addf %43, %45 : vector<4x128xf32>
    %c0_22 = arith.constant 0 : index
    %c0_23 = arith.constant 0 : index
    %c0_24 = arith.constant 0 : index
    %47 = vector.load %arg10[%c0_22, %c0_23, %c0_24] : memref<4x8x128xf32, #tpu.memory_space<vmem>>, vector<4x1x128xf32>
    %48 = vector.shape_cast %47 : vector<4x1x128xf32> to vector<4x128xf32>
    %49 = vector.shape_cast %46 : vector<4x128xf32> to vector<4x1x128xf32>
    tpu.vector_store %arg10[%c0_22, %c0_23, %c0_24], %49 {strides = array<i32>} : memref<4x8x128xf32, #tpu.memory_space<vmem>>, vector<4x1x128xf32>,
    %c1 = arith.constant 1 : index
    %c0_25 = arith.constant 0 : index
    %c0_26 = arith.constant 0 : index
    %50 = vector.load %arg3[%c1, %c0_25, %c0_26] : memref<8x4x1xf32, #tpu.memory_space<vmem>>, vector<1x4x1xf32>
    %51 = vector.shape_cast %50 : vector<1x4x1xf32> to vector<4x1xf32>
    %52 = vector.broadcast %51 : vector<4x1xf32> to vector<4x128xf32>
    %53 = arith.mulf %46, %52 : vector<4x128xf32>
    %c0_27 = arith.constant 0 : index
    %c1_28 = arith.constant 1 : index
    %c0_29 = arith.constant 0 : index
    %54 = vector.load %arg2[%c0_27, %c1_28, %c0_29] : memref<4x8x32xf32, #tpu.memory_space<vmem>>, vector<4x1x32xf32>
    %55 = vector.shape_cast %54 : vector<4x1x32xf32> to vector<4x32xf32>
    %c0_30 = arith.constant 0 : index
    %c0_31 = arith.constant 0 : index
    %56 = vector.load %arg4[%c0_30, %c0_31] : memref<32x384xf32, #tpu.memory_space<vmem>>, vector<32x384xf32>
    %cst_32 = arith.constant dense<0.000000e+00> : vector<4x384xf32>
    %57 = tpu.matmul %55, %56, %cst_32 {dimension_numbers = #tpu.dot_dimension_numbers<[1], [0], [0], [1], [0, 0, 1, 1], [], []>} : vector<4x32xf32>, vector<32x384xf32>, vector<4x384xf32> -> vector<4x384xf32>
    %58 = arith.addf %57, %5 : vector<4x384xf32>
    %c0_33 = arith.constant 0 : index
    %c0_34 = arith.constant 0 : index
    %59 = vector.load %arg5[%c0_33, %c0_34] : memref<128x256xf32, #tpu.memory_space<vmem>>, vector<128x256xf32>
    %cst_35 = arith.constant dense<0.000000e+00> : vector<4x256xf32>
    %60 = tpu.matmul %53, %59, %cst_35 {dimension_numbers = #tpu.dot_dimension_numbers<[1], [0], [0], [1], [0, 0, 1, 1], [], []>} : vector<4x128xf32>, vector<128x256xf32>, vector<4x256xf32> -> vector<4x256xf32>
    %61 = vector.extract_strided_slice %58 {offsets = [0, 0], sizes = [4, 128], strides = [1, 1]} : vector<4x384xf32> to vector<4x128xf32>
    %62 = vector.extract_strided_slice %60 {offsets = [0, 0], sizes = [4, 128], strides = [1, 1]} : vector<4x256xf32> to vector<4x128xf32>
    %63 = arith.addf %61, %62 : vector<4x128xf32>
    %64 = arith.negf %63 : vector<4x128xf32>
    %65 = math.exp %64 : vector<4x128xf32>
    %cst_36 = arith.constant 1.000000e+00 : f32
    %66 = vector.broadcast %cst_36 : f32 to vector<4x128xf32>
    %67 = arith.addf %66, %65 : vector<4x128xf32>
    %68 = arith.divf %66, %67 : vector<4x128xf32>
    %69 = vector.extract_strided_slice %58 {offsets = [0, 128], sizes = [4, 128], strides = [1, 1]} : vector<4x384xf32> to vector<4x128xf32>
    %70 = vector.extract_strided_slice %60 {offsets = [0, 128], sizes = [4, 128], strides = [1, 1]} : vector<4x256xf32> to vector<4x128xf32>
    %71 = arith.addf %69, %70 : vector<4x128xf32>
    %72 = arith.negf %71 : vector<4x128xf32>
    %73 = math.exp %72 : vector<4x128xf32>
    %cst_37 = arith.constant 1.000000e+00 : f32
    %74 = vector.broadcast %cst_37 : f32 to vector<4x128xf32>
    %75 = arith.addf %74, %73 : vector<4x128xf32>
    %76 = arith.divf %74, %75 : vector<4x128xf32>
    %c0_38 = arith.constant 0 : index
    %c0_39 = arith.constant 0 : index
    %77 = vector.load %arg6[%c0_38, %c0_39] : memref<128x128xf32, #tpu.memory_space<vmem>>, vector<128x128xf32>
    %cst_40 = arith.constant dense<0.000000e+00> : vector<4x128xf32>
    %78 = tpu.matmul %53, %77, %cst_40 {dimension_numbers = #tpu.dot_dimension_numbers<[1], [0], [0], [1], [0, 0, 1, 1], [], []>} : vector<4x128xf32>, vector<128x128xf32>, vector<4x128xf32> -> vector<4x128xf32>
    %79 = vector.extract_strided_slice %58 {offsets = [0, 256], sizes = [4, 128], strides = [1, 1]} : vector<4x384xf32> to vector<4x128xf32>
    %80 = arith.addf %78, %8 : vector<4x128xf32>
    %81 = arith.mulf %68, %80 : vector<4x128xf32>
    %82 = arith.addf %79, %81 : vector<4x128xf32>
    %83 = math.tanh %82 : vector<4x128xf32>
    %84 = arith.subf %53, %83 : vector<4x128xf32>
    %85 = arith.mulf %76, %84 : vector<4x128xf32>
    %86 = arith.addf %83, %85 : vector<4x128xf32>
    %c0_41 = arith.constant 0 : index
    %c1_42 = arith.constant 1 : index
    %c0_43 = arith.constant 0 : index
    %87 = vector.load %arg10[%c0_41, %c1_42, %c0_43] : memref<4x8x128xf32, #tpu.memory_space<vmem>>, vector<4x1x128xf32>
    %88 = vector.shape_cast %87 : vector<4x1x128xf32> to vector<4x128xf32>
    %89 = vector.shape_cast %86 : vector<4x128xf32> to vector<4x1x128xf32>
    tpu.vector_store %arg10[%c0_41, %c1_42, %c0_43], %89 {strides = array<i32>} : memref<4x8x128xf32, #tpu.memory_space<vmem>>, vector<4x1x128xf32>,
    %c2 = arith.constant 2 : index
    %c0_44 = arith.constant 0 : index
    %c0_45 = arith.constant 0 : index
    %90 = vector.load %arg3[%c2, %c0_44, %c0_45] : memref<8x4x1xf32, #tpu.memory_space<vmem>>, vector<1x4x1xf32>
    %91 = vector.shape_cast %90 : vector<1x4x1xf32> to vector<4x1xf32>
    %92 = vector.broadcast %91 : vector<4x1xf32> to vector<4x128xf32>
    %93 = arith.mulf %86, %92 : vector<4x128xf32>
    %c0_46 = arith.constant 0 : index
    %c2_47 = arith.constant 2 : index
    %c0_48 = arith.constant 0 : index
    %94 = vector.load %arg2[%c0_46, %c2_47, %c0_48] : memref<4x8x32xf32, #tpu.memory_space<vmem>>, vector<4x1x32xf32>
    %95 = vector.shape_cast %94 : vector<4x1x32xf32> to vector<4x32xf32>
    %c0_49 = arith.constant 0 : index
    %c0_50 = arith.constant 0 : index
    %96 = vector.load %arg4[%c0_49, %c0_50] : memref<32x384xf32, #tpu.memory_space<vmem>>, vector<32x384xf32>
    %cst_51 = arith.constant dense<0.000000e+00> : vector<4x384xf32>
    %97 = tpu.matmul %95, %96, %cst_51 {dimension_numbers = #tpu.dot_dimension_numbers<[1], [0], [0], [1], [0, 0, 1, 1], [], []>} : vector<4x32xf32>, vector<32x384xf32>, vector<4x384xf32> -> vector<4x384xf32>
    %98 = arith.addf %97, %5 : vector<4x384xf32>
    %c0_52 = arith.constant 0 : index
    %c0_53 = arith.constant 0 : index
    %99 = vector.load %arg5[%c0_52, %c0_53] : memref<128x256xf32, #tpu.memory_space<vmem>>, vector<128x256xf32>
    %cst_54 = arith.constant dense<0.000000e+00> : vector<4x256xf32>
    %100 = tpu.matmul %93, %99, %cst_54 {dimension_numbers = #tpu.dot_dimension_numbers<[1], [0], [0], [1], [0, 0, 1, 1], [], []>} : vector<4x128xf32>, vector<128x256xf32>, vector<4x256xf32> -> vector<4x256xf32>
    %101 = vector.extract_strided_slice %98 {offsets = [0, 0], sizes = [4, 128], strides = [1, 1]} : vector<4x384xf32> to vector<4x128xf32>
    %102 = vector.extract_strided_slice %100 {offsets = [0, 0], sizes = [4, 128], strides = [1, 1]} : vector<4x256xf32> to vector<4x128xf32>
    %103 = arith.addf %101, %102 : vector<4x128xf32>
    %104 = arith.negf %103 : vector<4x128xf32>
    %105 = math.exp %104 : vector<4x128xf32>
    %cst_55 = arith.constant 1.000000e+00 : f32
    %106 = vector.broadcast %cst_55 : f32 to vector<4x128xf32>
    %107 = arith.addf %106, %105 : vector<4x128xf32>
    %108 = arith.divf %106, %107 : vector<4x128xf32>
    %109 = vector.extract_strided_slice %98 {offsets = [0, 128], sizes = [4, 128], strides = [1, 1]} : vector<4x384xf32> to vector<4x128xf32>
    %110 = vector.extract_strided_slice %100 {offsets = [0, 128], sizes = [4, 128], strides = [1, 1]} : vector<4x256xf32> to vector<4x128xf32>
    %111 = arith.addf %109, %110 : vector<4x128xf32>
    %112 = arith.negf %111 : vector<4x128xf32>
    %113 = math.exp %112 : vector<4x128xf32>
    %cst_56 = arith.constant 1.000000e+00 : f32
    %114 = vector.broadcast %cst_56 : f32 to vector<4x128xf32>
    %115 = arith.addf %114, %113 : vector<4x128xf32>
    %116 = arith.divf %114, %115 : vector<4x128xf32>
    %c0_57 = arith.constant 0 : index
    %c0_58 = arith.constant 0 : index
    %117 = vector.load %arg6[%c0_57, %c0_58] : memref<128x128xf32, #tpu.memory_space<vmem>>, vector<128x128xf32>
    %cst_59 = arith.constant dense<0.000000e+00> : vector<4x128xf32>
    %118 = tpu.matmul %93, %117, %cst_59 {dimension_numbers = #tpu.dot_dimension_numbers<[1], [0], [0], [1], [0, 0, 1, 1], [], []>} : vector<4x128xf32>, vector<128x128xf32>, vector<4x128xf32> -> vector<4x128xf32>
    %119 = vector.extract_strided_slice %98 {offsets = [0, 256], sizes = [4, 128], strides = [1, 1]} : vector<4x384xf32> to vector<4x128xf32>
    %120 = arith.addf %118, %8 : vector<4x128xf32>
    %121 = arith.mulf %108, %120 : vector<4x128xf32>
    %122 = arith.addf %119, %121 : vector<4x128xf32>
    %123 = math.tanh %122 : vector<4x128xf32>
    %124 = arith.subf %93, %123 : vector<4x128xf32>
    %125 = arith.mulf %116, %124 : vector<4x128xf32>
    %126 = arith.addf %123, %125 : vector<4x128xf32>
    %c0_60 = arith.constant 0 : index
    %c2_61 = arith.constant 2 : index
    %c0_62 = arith.constant 0 : index
    %127 = vector.load %arg10[%c0_60, %c2_61, %c0_62] : memref<4x8x128xf32, #tpu.memory_space<vmem>>, vector<4x1x128xf32>
    %128 = vector.shape_cast %127 : vector<4x1x128xf32> to vector<4x128xf32>
    %129 = vector.shape_cast %126 : vector<4x128xf32> to vector<4x1x128xf32>
    tpu.vector_store %arg10[%c0_60, %c2_61, %c0_62], %129 {strides = array<i32>} : memref<4x8x128xf32, #tpu.memory_space<vmem>>, vector<4x1x128xf32>,
    %c3 = arith.constant 3 : index
    %c0_63 = arith.constant 0 : index
    %c0_64 = arith.constant 0 : index
    %130 = vector.load %arg3[%c3, %c0_63, %c0_64] : memref<8x4x1xf32, #tpu.memory_space<vmem>>, vector<1x4x1xf32>
    %131 = vector.shape_cast %130 : vector<1x4x1xf32> to vector<4x1xf32>
    %132 = vector.broadcast %131 : vector<4x1xf32> to vector<4x128xf32>
    %133 = arith.mulf %126, %132 : vector<4x128xf32>
    %c0_65 = arith.constant 0 : index
    %c3_66 = arith.constant 3 : index
    %c0_67 = arith.constant 0 : index
    %134 = vector.load %arg2[%c0_65, %c3_66, %c0_67] : memref<4x8x32xf32, #tpu.memory_space<vmem>>, vector<4x1x32xf32>
    %135 = vector.shape_cast %134 : vector<4x1x32xf32> to vector<4x32xf32>
    %c0_68 = arith.constant 0 : index
    %c0_69 = arith.constant 0 : index
    %136 = vector.load %arg4[%c0_68, %c0_69] : memref<32x384xf32, #tpu.memory_space<vmem>>, vector<32x384xf32>
    %cst_70 = arith.constant dense<0.000000e+00> : vector<4x384xf32>
    %137 = tpu.matmul %135, %136, %cst_70 {dimension_numbers = #tpu.dot_dimension_numbers<[1], [0], [0], [1], [0, 0, 1, 1], [], []>} : vector<4x32xf32>, vector<32x384xf32>, vector<4x384xf32> -> vector<4x384xf32>
    %138 = arith.addf %137, %5 : vector<4x384xf32>
    %c0_71 = arith.constant 0 : index
    %c0_72 = arith.constant 0 : index
    %139 = vector.load %arg5[%c0_71, %c0_72] : memref<128x256xf32, #tpu.memory_space<vmem>>, vector<128x256xf32>
    %cst_73 = arith.constant dense<0.000000e+00> : vector<4x256xf32>
    %140 = tpu.matmul %133, %139, %cst_73 {dimension_numbers = #tpu.dot_dimension_numbers<[1], [0], [0], [1], [0, 0, 1, 1], [], []>} : vector<4x128xf32>, vector<128x256xf32>, vector<4x256xf32> -> vector<4x256xf32>
    %141 = vector.extract_strided_slice %138 {offsets = [0, 0], sizes = [4, 128], strides = [1, 1]} : vector<4x384xf32> to vector<4x128xf32>
    %142 = vector.extract_strided_slice %140 {offsets = [0, 0], sizes = [4, 128], strides = [1, 1]} : vector<4x256xf32> to vector<4x128xf32>
    %143 = arith.addf %141, %142 : vector<4x128xf32>
    %144 = arith.negf %143 : vector<4x128xf32>
    %145 = math.exp %144 : vector<4x128xf32>
    %cst_74 = arith.constant 1.000000e+00 : f32
    %146 = vector.broadcast %cst_74 : f32 to vector<4x128xf32>
    %147 = arith.addf %146, %145 : vector<4x128xf32>
    %148 = arith.divf %146, %147 : vector<4x128xf32>
    %149 = vector.extract_strided_slice %138 {offsets = [0, 128], sizes = [4, 128], strides = [1, 1]} : vector<4x384xf32> to vector<4x128xf32>
    %150 = vector.extract_strided_slice %140 {offsets = [0, 128], sizes = [4, 128], strides = [1, 1]} : vector<4x256xf32> to vector<4x128xf32>
    %151 = arith.addf %149, %150 : vector<4x128xf32>
    %152 = arith.negf %151 : vector<4x128xf32>
    %153 = math.exp %152 : vector<4x128xf32>
    %cst_75 = arith.constant 1.000000e+00 : f32
    %154 = vector.broadcast %cst_75 : f32 to vector<4x128xf32>
    %155 = arith.addf %154, %153 : vector<4x128xf32>
    %156 = arith.divf %154, %155 : vector<4x128xf32>
    %c0_76 = arith.constant 0 : index
    %c0_77 = arith.constant 0 : index
    %157 = vector.load %arg6[%c0_76, %c0_77] : memref<128x128xf32, #tpu.memory_space<vmem>>, vector<128x128xf32>
    %cst_78 = arith.constant dense<0.000000e+00> : vector<4x128xf32>
    %158 = tpu.matmul %133, %157, %cst_78 {dimension_numbers = #tpu.dot_dimension_numbers<[1], [0], [0], [1], [0, 0, 1, 1], [], []>} : vector<4x128xf32>, vector<128x128xf32>, vector<4x128xf32> -> vector<4x128xf32>
    %159 = vector.extract_strided_slice %138 {offsets = [0, 256], sizes = [4, 128], strides = [1, 1]} : vector<4x384xf32> to vector<4x128xf32>
    %160 = arith.addf %158, %8 : vector<4x128xf32>
    %161 = arith.mulf %148, %160 : vector<4x128xf32>
    %162 = arith.addf %159, %161 : vector<4x128xf32>
    %163 = math.tanh %162 : vector<4x128xf32>
    %164 = arith.subf %133, %163 : vector<4x128xf32>
    %165 = arith.mulf %156, %164 : vector<4x128xf32>
    %166 = arith.addf %163, %165 : vector<4x128xf32>
    %c0_79 = arith.constant 0 : index
    %c3_80 = arith.constant 3 : index
    %c0_81 = arith.constant 0 : index
    %167 = vector.load %arg10[%c0_79, %c3_80, %c0_81] : memref<4x8x128xf32, #tpu.memory_space<vmem>>, vector<4x1x128xf32>
    %168 = vector.shape_cast %167 : vector<4x1x128xf32> to vector<4x128xf32>
    %169 = vector.shape_cast %166 : vector<4x128xf32> to vector<4x1x128xf32>
    tpu.vector_store %arg10[%c0_79, %c3_80, %c0_81], %169 {strides = array<i32>} : memref<4x8x128xf32, #tpu.memory_space<vmem>>, vector<4x1x128xf32>,
    %c4 = arith.constant 4 : index
    %c0_82 = arith.constant 0 : index
    %c0_83 = arith.constant 0 : index
    %170 = vector.load %arg3[%c4, %c0_82, %c0_83] : memref<8x4x1xf32, #tpu.memory_space<vmem>>, vector<1x4x1xf32>
    %171 = vector.shape_cast %170 : vector<1x4x1xf32> to vector<4x1xf32>
    %172 = vector.broadcast %171 : vector<4x1xf32> to vector<4x128xf32>
    %173 = arith.mulf %166, %172 : vector<4x128xf32>
    %c0_84 = arith.constant 0 : index
    %c4_85 = arith.constant 4 : index
    %c0_86 = arith.constant 0 : index
    %174 = vector.load %arg2[%c0_84, %c4_85, %c0_86] : memref<4x8x32xf32, #tpu.memory_space<vmem>>, vector<4x1x32xf32>
    %175 = vector.shape_cast %174 : vector<4x1x32xf32> to vector<4x32xf32>
    %c0_87 = arith.constant 0 : index
    %c0_88 = arith.constant 0 : index
    %176 = vector.load %arg4[%c0_87, %c0_88] : memref<32x384xf32, #tpu.memory_space<vmem>>, vector<32x384xf32>
    %cst_89 = arith.constant dense<0.000000e+00> : vector<4x384xf32>
    %177 = tpu.matmul %175, %176, %cst_89 {dimension_numbers = #tpu.dot_dimension_numbers<[1], [0], [0], [1], [0, 0, 1, 1], [], []>} : vector<4x32xf32>, vector<32x384xf32>, vector<4x384xf32> -> vector<4x384xf32>
    %178 = arith.addf %177, %5 : vector<4x384xf32>
    %c0_90 = arith.constant 0 : index
    %c0_91 = arith.constant 0 : index
    %179 = vector.load %arg5[%c0_90, %c0_91] : memref<128x256xf32, #tpu.memory_space<vmem>>, vector<128x256xf32>
    %cst_92 = arith.constant dense<0.000000e+00> : vector<4x256xf32>
    %180 = tpu.matmul %173, %179, %cst_92 {dimension_numbers = #tpu.dot_dimension_numbers<[1], [0], [0], [1], [0, 0, 1, 1], [], []>} : vector<4x128xf32>, vector<128x256xf32>, vector<4x256xf32> -> vector<4x256xf32>
    %181 = vector.extract_strided_slice %178 {offsets = [0, 0], sizes = [4, 128], strides = [1, 1]} : vector<4x384xf32> to vector<4x128xf32>
    %182 = vector.extract_strided_slice %180 {offsets = [0, 0], sizes = [4, 128], strides = [1, 1]} : vector<4x256xf32> to vector<4x128xf32>
    %183 = arith.addf %181, %182 : vector<4x128xf32>
    %184 = arith.negf %183 : vector<4x128xf32>
    %185 = math.exp %184 : vector<4x128xf32>
    %cst_93 = arith.constant 1.000000e+00 : f32
    %186 = vector.broadcast %cst_93 : f32 to vector<4x128xf32>
    %187 = arith.addf %186, %185 : vector<4x128xf32>
    %188 = arith.divf %186, %187 : vector<4x128xf32>
    %189 = vector.extract_strided_slice %178 {offsets = [0, 128], sizes = [4, 128], strides = [1, 1]} : vector<4x384xf32> to vector<4x128xf32>
    %190 = vector.extract_strided_slice %180 {offsets = [0, 128], sizes = [4, 128], strides = [1, 1]} : vector<4x256xf32> to vector<4x128xf32>
    %191 = arith.addf %189, %190 : vector<4x128xf32>
    %192 = arith.negf %191 : vector<4x128xf32>
    %193 = math.exp %192 : vector<4x128xf32>
    %cst_94 = arith.constant 1.000000e+00 : f32
    %194 = vector.broadcast %cst_94 : f32 to vector<4x128xf32>
    %195 = arith.addf %194, %193 : vector<4x128xf32>
    %196 = arith.divf %194, %195 : vector<4x128xf32>
    %c0_95 = arith.constant 0 : index
    %c0_96 = arith.constant 0 : index
    %197 = vector.load %arg6[%c0_95, %c0_96] : memref<128x128xf32, #tpu.memory_space<vmem>>, vector<128x128xf32>
    %cst_97 = arith.constant dense<0.000000e+00> : vector<4x128xf32>
    %198 = tpu.matmul %173, %197, %cst_97 {dimension_numbers = #tpu.dot_dimension_numbers<[1], [0], [0], [1], [0, 0, 1, 1], [], []>} : vector<4x128xf32>, vector<128x128xf32>, vector<4x128xf32> -> vector<4x128xf32>
    %199 = vector.extract_strided_slice %178 {offsets = [0, 256], sizes = [4, 128], strides = [1, 1]} : vector<4x384xf32> to vector<4x128xf32>
    %200 = arith.addf %198, %8 : vector<4x128xf32>
    %201 = arith.mulf %188, %200 : vector<4x128xf32>
    %202 = arith.addf %199, %201 : vector<4x128xf32>
    %203 = math.tanh %202 : vector<4x128xf32>
    %204 = arith.subf %173, %203 : vector<4x128xf32>
    %205 = arith.mulf %196, %204 : vector<4x128xf32>
    %206 = arith.addf %203, %205 : vector<4x128xf32>
    %c0_98 = arith.constant 0 : index
    %c4_99 = arith.constant 4 : index
    %c0_100 = arith.constant 0 : index
    %207 = vector.load %arg10[%c0_98, %c4_99, %c0_100] : memref<4x8x128xf32, #tpu.memory_space<vmem>>, vector<4x1x128xf32>
    %208 = vector.shape_cast %207 : vector<4x1x128xf32> to vector<4x128xf32>
    %209 = vector.shape_cast %206 : vector<4x128xf32> to vector<4x1x128xf32>
    tpu.vector_store %arg10[%c0_98, %c4_99, %c0_100], %209 {strides = array<i32>} : memref<4x8x128xf32, #tpu.memory_space<vmem>>, vector<4x1x128xf32>,
    %c5 = arith.constant 5 : index
    %c0_101 = arith.constant 0 : index
    %c0_102 = arith.constant 0 : index
    %210 = vector.load %arg3[%c5, %c0_101, %c0_102] : memref<8x4x1xf32, #tpu.memory_space<vmem>>, vector<1x4x1xf32>
    %211 = vector.shape_cast %210 : vector<1x4x1xf32> to vector<4x1xf32>
    %212 = vector.broadcast %211 : vector<4x1xf32> to vector<4x128xf32>
    %213 = arith.mulf %206, %212 : vector<4x128xf32>
    %c0_103 = arith.constant 0 : index
    %c5_104 = arith.constant 5 : index
    %c0_105 = arith.constant 0 : index
    %214 = vector.load %arg2[%c0_103, %c5_104, %c0_105] : memref<4x8x32xf32, #tpu.memory_space<vmem>>, vector<4x1x32xf32>
    %215 = vector.shape_cast %214 : vector<4x1x32xf32> to vector<4x32xf32>
    %c0_106 = arith.constant 0 : index
    %c0_107 = arith.constant 0 : index
    %216 = vector.load %arg4[%c0_106, %c0_107] : memref<32x384xf32, #tpu.memory_space<vmem>>, vector<32x384xf32>
    %cst_108 = arith.constant dense<0.000000e+00> : vector<4x384xf32>
    %217 = tpu.matmul %215, %216, %cst_108 {dimension_numbers = #tpu.dot_dimension_numbers<[1], [0], [0], [1], [0, 0, 1, 1], [], []>} : vector<4x32xf32>, vector<32x384xf32>, vector<4x384xf32> -> vector<4x384xf32>
    %218 = arith.addf %217, %5 : vector<4x384xf32>
    %c0_109 = arith.constant 0 : index
    %c0_110 = arith.constant 0 : index
    %219 = vector.load %arg5[%c0_109, %c0_110] : memref<128x256xf32, #tpu.memory_space<vmem>>, vector<128x256xf32>
    %cst_111 = arith.constant dense<0.000000e+00> : vector<4x256xf32>
    %220 = tpu.matmul %213, %219, %cst_111 {dimension_numbers = #tpu.dot_dimension_numbers<[1], [0], [0], [1], [0, 0, 1, 1], [], []>} : vector<4x128xf32>, vector<128x256xf32>, vector<4x256xf32> -> vector<4x256xf32>
    %221 = vector.extract_strided_slice %218 {offsets = [0, 0], sizes = [4, 128], strides = [1, 1]} : vector<4x384xf32> to vector<4x128xf32>
    %222 = vector.extract_strided_slice %220 {offsets = [0, 0], sizes = [4, 128], strides = [1, 1]} : vector<4x256xf32> to vector<4x128xf32>
    %223 = arith.addf %221, %222 : vector<4x128xf32>
    %224 = arith.negf %223 : vector<4x128xf32>
    %225 = math.exp %224 : vector<4x128xf32>
    %cst_112 = arith.constant 1.000000e+00 : f32
    %226 = vector.broadcast %cst_112 : f32 to vector<4x128xf32>
    %227 = arith.addf %226, %225 : vector<4x128xf32>
    %228 = arith.divf %226, %227 : vector<4x128xf32>
    %229 = vector.extract_strided_slice %218 {offsets = [0, 128], sizes = [4, 128], strides = [1, 1]} : vector<4x384xf32> to vector<4x128xf32>
    %230 = vector.extract_strided_slice %220 {offsets = [0, 128], sizes = [4, 128], strides = [1, 1]} : vector<4x256xf32> to vector<4x128xf32>
    %231 = arith.addf %229, %230 : vector<4x128xf32>
    %232 = arith.negf %231 : vector<4x128xf32>
    %233 = math.exp %232 : vector<4x128xf32>
    %cst_113 = arith.constant 1.000000e+00 : f32
    %234 = vector.broadcast %cst_113 : f32 to vector<4x128xf32>
    %235 = arith.addf %234, %233 : vector<4x128xf32>
    %236 = arith.divf %234, %235 : vector<4x128xf32>
    %c0_114 = arith.constant 0 : index
    %c0_115 = arith.constant 0 : index
    %237 = vector.load %arg6[%c0_114, %c0_115] : memref<128x128xf32, #tpu.memory_space<vmem>>, vector<128x128xf32>
    %cst_116 = arith.constant dense<0.000000e+00> : vector<4x128xf32>
    %238 = tpu.matmul %213, %237, %cst_116 {dimension_numbers = #tpu.dot_dimension_numbers<[1], [0], [0], [1], [0, 0, 1, 1], [], []>} : vector<4x128xf32>, vector<128x128xf32>, vector<4x128xf32> -> vector<4x128xf32>
    %239 = vector.extract_strided_slice %218 {offsets = [0, 256], sizes = [4, 128], strides = [1, 1]} : vector<4x384xf32> to vector<4x128xf32>
    %240 = arith.addf %238, %8 : vector<4x128xf32>
    %241 = arith.mulf %228, %240 : vector<4x128xf32>
    %242 = arith.addf %239, %241 : vector<4x128xf32>
    %243 = math.tanh %242 : vector<4x128xf32>
    %244 = arith.subf %213, %243 : vector<4x128xf32>
    %245 = arith.mulf %236, %244 : vector<4x128xf32>
    %246 = arith.addf %243, %245 : vector<4x128xf32>
    %c0_117 = arith.constant 0 : index
    %c5_118 = arith.constant 5 : index
    %c0_119 = arith.constant 0 : index
    %247 = vector.load %arg10[%c0_117, %c5_118, %c0_119] : memref<4x8x128xf32, #tpu.memory_space<vmem>>, vector<4x1x128xf32>
    %248 = vector.shape_cast %247 : vector<4x1x128xf32> to vector<4x128xf32>
    %249 = vector.shape_cast %246 : vector<4x128xf32> to vector<4x1x128xf32>
    tpu.vector_store %arg10[%c0_117, %c5_118, %c0_119], %249 {strides = array<i32>} : memref<4x8x128xf32, #tpu.memory_space<vmem>>, vector<4x1x128xf32>,
    %c6 = arith.constant 6 : index
    %c0_120 = arith.constant 0 : index
    %c0_121 = arith.constant 0 : index
    %250 = vector.load %arg3[%c6, %c0_120, %c0_121] : memref<8x4x1xf32, #tpu.memory_space<vmem>>, vector<1x4x1xf32>
    %251 = vector.shape_cast %250 : vector<1x4x1xf32> to vector<4x1xf32>
    %252 = vector.broadcast %251 : vector<4x1xf32> to vector<4x128xf32>
    %253 = arith.mulf %246, %252 : vector<4x128xf32>
    %c0_122 = arith.constant 0 : index
    %c6_123 = arith.constant 6 : index
    %c0_124 = arith.constant 0 : index
    %254 = vector.load %arg2[%c0_122, %c6_123, %c0_124] : memref<4x8x32xf32, #tpu.memory_space<vmem>>, vector<4x1x32xf32>
    %255 = vector.shape_cast %254 : vector<4x1x32xf32> to vector<4x32xf32>
    %c0_125 = arith.constant 0 : index
    %c0_126 = arith.constant 0 : index
    %256 = vector.load %arg4[%c0_125, %c0_126] : memref<32x384xf32, #tpu.memory_space<vmem>>, vector<32x384xf32>
    %cst_127 = arith.constant dense<0.000000e+00> : vector<4x384xf32>
    %257 = tpu.matmul %255, %256, %cst_127 {dimension_numbers = #tpu.dot_dimension_numbers<[1], [0], [0], [1], [0, 0, 1, 1], [], []>} : vector<4x32xf32>, vector<32x384xf32>, vector<4x384xf32> -> vector<4x384xf32>
    %258 = arith.addf %257, %5 : vector<4x384xf32>
    %c0_128 = arith.constant 0 : index
    %c0_129 = arith.constant 0 : index
    %259 = vector.load %arg5[%c0_128, %c0_129] : memref<128x256xf32, #tpu.memory_space<vmem>>, vector<128x256xf32>
    %cst_130 = arith.constant dense<0.000000e+00> : vector<4x256xf32>
    %260 = tpu.matmul %253, %259, %cst_130 {dimension_numbers = #tpu.dot_dimension_numbers<[1], [0], [0], [1], [0, 0, 1, 1], [], []>} : vector<4x128xf32>, vector<128x256xf32>, vector<4x256xf32> -> vector<4x256xf32>
    %261 = vector.extract_strided_slice %258 {offsets = [0, 0], sizes = [4, 128], strides = [1, 1]} : vector<4x384xf32> to vector<4x128xf32>
    %262 = vector.extract_strided_slice %260 {offsets = [0, 0], sizes = [4, 128], strides = [1, 1]} : vector<4x256xf32> to vector<4x128xf32>
    %263 = arith.addf %261, %262 : vector<4x128xf32>
    %264 = arith.negf %263 : vector<4x128xf32>
    %265 = math.exp %264 : vector<4x128xf32>
    %cst_131 = arith.constant 1.000000e+00 : f32
    %266 = vector.broadcast %cst_131 : f32 to vector<4x128xf32>
    %267 = arith.addf %266, %265 : vector<4x128xf32>
    %268 = arith.divf %266, %267 : vector<4x128xf32>
    %269 = vector.extract_strided_slice %258 {offsets = [0, 128], sizes = [4, 128], strides = [1, 1]} : vector<4x384xf32> to vector<4x128xf32>
    %270 = vector.extract_strided_slice %260 {offsets = [0, 128], sizes = [4, 128], strides = [1, 1]} : vector<4x256xf32> to vector<4x128xf32>
    %271 = arith.addf %269, %270 : vector<4x128xf32>
    %272 = arith.negf %271 : vector<4x128xf32>
    %273 = math.exp %272 : vector<4x128xf32>
    %cst_132 = arith.constant 1.000000e+00 : f32
    %274 = vector.broadcast %cst_132 : f32 to vector<4x128xf32>
    %275 = arith.addf %274, %273 : vector<4x128xf32>
    %276 = arith.divf %274, %275 : vector<4x128xf32>
    %c0_133 = arith.constant 0 : index
    %c0_134 = arith.constant 0 : index
    %277 = vector.load %arg6[%c0_133, %c0_134] : memref<128x128xf32, #tpu.memory_space<vmem>>, vector<128x128xf32>
    %cst_135 = arith.constant dense<0.000000e+00> : vector<4x128xf32>
    %278 = tpu.matmul %253, %277, %cst_135 {dimension_numbers = #tpu.dot_dimension_numbers<[1], [0], [0], [1], [0, 0, 1, 1], [], []>} : vector<4x128xf32>, vector<128x128xf32>, vector<4x128xf32> -> vector<4x128xf32>
    %279 = vector.extract_strided_slice %258 {offsets = [0, 256], sizes = [4, 128], strides = [1, 1]} : vector<4x384xf32> to vector<4x128xf32>
    %280 = arith.addf %278, %8 : vector<4x128xf32>
    %281 = arith.mulf %268, %280 : vector<4x128xf32>
    %282 = arith.addf %279, %281 : vector<4x128xf32>
    %283 = math.tanh %282 : vector<4x128xf32>
    %284 = arith.subf %253, %283 : vector<4x128xf32>
    %285 = arith.mulf %276, %284 : vector<4x128xf32>
    %286 = arith.addf %283, %285 : vector<4x128xf32>
    %c0_136 = arith.constant 0 : index
    %c6_137 = arith.constant 6 : index
    %c0_138 = arith.constant 0 : index
    %287 = vector.load %arg10[%c0_136, %c6_137, %c0_138] : memref<4x8x128xf32, #tpu.memory_space<vmem>>, vector<4x1x128xf32>
    %288 = vector.shape_cast %287 : vector<4x1x128xf32> to vector<4x128xf32>
    %289 = vector.shape_cast %286 : vector<4x128xf32> to vector<4x1x128xf32>
    tpu.vector_store %arg10[%c0_136, %c6_137, %c0_138], %289 {strides = array<i32>} : memref<4x8x128xf32, #tpu.memory_space<vmem>>, vector<4x1x128xf32>,
    %c7 = arith.constant 7 : index
    %c0_139 = arith.constant 0 : index
    %c0_140 = arith.constant 0 : index
    %290 = vector.load %arg3[%c7, %c0_139, %c0_140] : memref<8x4x1xf32, #tpu.memory_space<vmem>>, vector<1x4x1xf32>
    %291 = vector.shape_cast %290 : vector<1x4x1xf32> to vector<4x1xf32>
    %292 = vector.broadcast %291 : vector<4x1xf32> to vector<4x128xf32>
    %293 = arith.mulf %286, %292 : vector<4x128xf32>
    %c0_141 = arith.constant 0 : index
    %c7_142 = arith.constant 7 : index
    %c0_143 = arith.constant 0 : index
    %294 = vector.load %arg2[%c0_141, %c7_142, %c0_143] : memref<4x8x32xf32, #tpu.memory_space<vmem>>, vector<4x1x32xf32>
    %295 = vector.shape_cast %294 : vector<4x1x32xf32> to vector<4x32xf32>
    %c0_144 = arith.constant 0 : index
    %c0_145 = arith.constant 0 : index
    %296 = vector.load %arg4[%c0_144, %c0_145] : memref<32x384xf32, #tpu.memory_space<vmem>>, vector<32x384xf32>
    %cst_146 = arith.constant dense<0.000000e+00> : vector<4x384xf32>
    %297 = tpu.matmul %295, %296, %cst_146 {dimension_numbers = #tpu.dot_dimension_numbers<[1], [0], [0], [1], [0, 0, 1, 1], [], []>} : vector<4x32xf32>, vector<32x384xf32>, vector<4x384xf32> -> vector<4x384xf32>
    %298 = arith.addf %297, %5 : vector<4x384xf32>
    %c0_147 = arith.constant 0 : index
    %c0_148 = arith.constant 0 : index
    %299 = vector.load %arg5[%c0_147, %c0_148] : memref<128x256xf32, #tpu.memory_space<vmem>>, vector<128x256xf32>
    %cst_149 = arith.constant dense<0.000000e+00> : vector<4x256xf32>
    %300 = tpu.matmul %293, %299, %cst_149 {dimension_numbers = #tpu.dot_dimension_numbers<[1], [0], [0], [1], [0, 0, 1, 1], [], []>} : vector<4x128xf32>, vector<128x256xf32>, vector<4x256xf32> -> vector<4x256xf32>
    %301 = vector.extract_strided_slice %298 {offsets = [0, 0], sizes = [4, 128], strides = [1, 1]} : vector<4x384xf32> to vector<4x128xf32>
    %302 = vector.extract_strided_slice %300 {offsets = [0, 0], sizes = [4, 128], strides = [1, 1]} : vector<4x256xf32> to vector<4x128xf32>
    %303 = arith.addf %301, %302 : vector<4x128xf32>
    %304 = arith.negf %303 : vector<4x128xf32>
    %305 = math.exp %304 : vector<4x128xf32>
    %cst_150 = arith.constant 1.000000e+00 : f32
    %306 = vector.broadcast %cst_150 : f32 to vector<4x128xf32>
    %307 = arith.addf %306, %305 : vector<4x128xf32>
    %308 = arith.divf %306, %307 : vector<4x128xf32>
    %309 = vector.extract_strided_slice %298 {offsets = [0, 128], sizes = [4, 128], strides = [1, 1]} : vector<4x384xf32> to vector<4x128xf32>
    %310 = vector.extract_strided_slice %300 {offsets = [0, 128], sizes = [4, 128], strides = [1, 1]} : vector<4x256xf32> to vector<4x128xf32>
    %311 = arith.addf %309, %310 : vector<4x128xf32>
    %312 = arith.negf %311 : vector<4x128xf32>
    %313 = math.exp %312 : vector<4x128xf32>
    %cst_151 = arith.constant 1.000000e+00 : f32
    %314 = vector.broadcast %cst_151 : f32 to vector<4x128xf32>
    %315 = arith.addf %314, %313 : vector<4x128xf32>
    %316 = arith.divf %314, %315 : vector<4x128xf32>
    %c0_152 = arith.constant 0 : index
    %c0_153 = arith.constant 0 : index
    %317 = vector.load %arg6[%c0_152, %c0_153] : memref<128x128xf32, #tpu.memory_space<vmem>>, vector<128x128xf32>
    %cst_154 = arith.constant dense<0.000000e+00> : vector<4x128xf32>
    %318 = tpu.matmul %293, %317, %cst_154 {dimension_numbers = #tpu.dot_dimension_numbers<[1], [0], [0], [1], [0, 0, 1, 1], [], []>} : vector<4x128xf32>, vector<128x128xf32>, vector<4x128xf32> -> vector<4x128xf32>
    %319 = vector.extract_strided_slice %298 {offsets = [0, 256], sizes = [4, 128], strides = [1, 1]} : vector<4x384xf32> to vector<4x128xf32>
    %320 = arith.addf %318, %8 : vector<4x128xf32>
    %321 = arith.mulf %308, %320 : vector<4x128xf32>
    %322 = arith.addf %319, %321 : vector<4x128xf32>
    %323 = math.tanh %322 : vector<4x128xf32>
    %324 = arith.subf %293, %323 : vector<4x128xf32>
    %325 = arith.mulf %316, %324 : vector<4x128xf32>
    %326 = arith.addf %323, %325 : vector<4x128xf32>
    %c0_155 = arith.constant 0 : index
    %c7_156 = arith.constant 7 : index
    %c0_157 = arith.constant 0 : index
    %327 = vector.load %arg10[%c0_155, %c7_156, %c0_157] : memref<4x8x128xf32, #tpu.memory_space<vmem>>, vector<4x1x128xf32>
    %328 = vector.shape_cast %327 : vector<4x1x128xf32> to vector<4x128xf32>
    %329 = vector.shape_cast %326 : vector<4x128xf32> to vector<4x1x128xf32>
    tpu.vector_store %arg10[%c0_155, %c7_156, %c0_157], %329 {strides = array<i32>} : memref<4x8x128xf32, #tpu.memory_space<vmem>>, vector<4x1x128xf32>,
    %c0_158 = arith.constant 0 : index
    %c0_159 = arith.constant 0 : index
    %330 = vector.load %arg11[%c0_158, %c0_159] : memref<4x128xf32, #tpu.memory_space<vmem>>, vector<4x128xf32>
    tpu.vector_store %arg11[%c0_158, %c0_159], %326 {strides = array<i32>} : memref<4x128xf32, #tpu.memory_space<vmem>>, vector<4x128xf32>,
    return
  }
  func.func @transform_0(%arg0: i32, %arg1: i32) -> (i32, i32, i32) {
    %c0_i32 = arith.constant 0 : i32
    %c0_i32_0 = arith.constant 0 : i32
    return %arg0, %arg1, %c0_i32 : i32, i32, i32
  }
  func.func @transform_1(%arg0: i32, %arg1: i32) -> (i32, i32, i32) {
    %c0_i32 = arith.constant 0 : i32
    %c0_i32_0 = arith.constant 0 : i32
    return %arg1, %arg0, %c0_i32 : i32, i32, i32
  }
  func.func @transform_2(%arg0: i32, %arg1: i32) -> (i32, i32) {
    %c0_i32 = arith.constant 0 : i32
    %c0_i32_0 = arith.constant 0 : i32
    %c0_i32_1 = arith.constant 0 : i32
    return %c0_i32, %c0_i32_0 : i32, i32
  }
  func.func @transform_3(%arg0: i32, %arg1: i32) -> (i32, i32) {
    %c0_i32 = arith.constant 0 : i32
    %c0_i32_0 = arith.constant 0 : i32
    %c0_i32_1 = arith.constant 0 : i32
    return %c0_i32, %c0_i32_0 : i32, i32
  }
  func.func @transform_4(%arg0: i32, %arg1: i32) -> (i32, i32) {
    %c0_i32 = arith.constant 0 : i32
    %c0_i32_0 = arith.constant 0 : i32
    %c0_i32_1 = arith.constant 0 : i32
    return %c0_i32, %c0_i32_0 : i32, i32
  }
  func.func @transform_5(%arg0: i32, %arg1: i32) -> (i32, i32) {
    %c0_i32 = arith.constant 0 : i32
    %c0_i32_0 = arith.constant 0 : i32
    %c0_i32_1 = arith.constant 0 : i32
    return %c0_i32, %c0_i32_0 : i32, i32
  }
  func.func @transform_6(%arg0: i32, %arg1: i32) -> (i32, i32) {
    %c0_i32 = arith.constant 0 : i32
    %c0_i32_0 = arith.constant 0 : i32
    %c0_i32_1 = arith.constant 0 : i32
    return %c0_i32, %c0_i32_0 : i32, i32
  }
  func.func @transform_7(%arg0: i32, %arg1: i32) -> (i32, i32) {
    %c0_i32 = arith.constant 0 : i32
    %c0_i32_0 = arith.constant 0 : i32
    return %arg0, %c0_i32 : i32, i32
  }
  func.func @transform_8(%arg0: i32, %arg1: i32) -> (i32, i32, i32) {
    %c0_i32 = arith.constant 0 : i32
    %c0_i32_0 = arith.constant 0 : i32
    return %arg0, %arg1, %c0_i32 : i32, i32, i32
  }
}

</mosaic_0001>

<bundles_post_ra>
// kernel: tpu_custom_call.1
= control target key start
LH: loop header
LB: loop body
LE: loop exit
PB: predicated region body
PF: predicated region fallthrough
CT: control target
= control target key end

     0   :  { %s4734_s0 = inlined_call_operand.vmem [shape: f32[4,40,32], index: 0, kind: input, shape index: {}]   ;;  %s4735_s1 = inlined_call_operand.vmem [shape: f32[40,4,1], index: 1, kind: input, shape index: {}]   ;;  %s4736_s2 = inlined_call_operand.hbm [shape: f32[32,384], index: 2, kind: input, shape index: {}]   ;;  %s4737_s3 = inlined_call_operand.vmem [shape: f32[128,256], index: 3, kind: input, shape index: {}]   ;;  %s4738_s4 = inlined_call_operand.vmem [shape: f32[128,128], index: 4, kind: input, shape index: {}]   ;;  %s4739_s5 = inlined_call_operand.vmem [shape: f32[1,384], index: 5, kind: input, shape index: {}]   ;;  %s4740_s6 = inlined_call_operand.vmem [shape: f32[1,128], index: 6, kind: input, shape index: {}]   ;;  %s4741_s7 = inlined_call_operand.vmem [shape: f32[4,128], index: 7, kind: input, shape index: {}]   ;;  %s4742_s8 = inlined_call_operand.hbm [shape: f32[4,40,128], index: 8, kind: output, shape index: {}]  }
   0x1   :  { %4778 = sst [smem:[#allocation27_spill]] %s4736_s2 }
   0x2   :  { %13 = vsyncpa [#allocation5], 0 }
   0x3   :  { %14 = vsyncpa [#allocation6], 0 }
   0x4   :  { %16 = vsyncpa [#allocation6 + $0x1], 0  ;;  %s3079_s27 = smov 0   ;;  %s3081_s28 = smov 0  }
   0x5   :  { %s3083_s29 = smov 0   ;;  %s3085_s30 = smov 0  }
   0x6   :  { %s3087_s9 = smov 0   ;;  %s3089_s10 = smov 0  }
   0x7 LB: > { %s2690_s11 = sadd.s32 4294967295, %s3025_s10   ;;  %s2691_s12 = sadd.s32 4294967294, %s3025_s10   ;;  %s3025_s10 = sphi %s3089_s10, %s22_s10   ;;  %s3021_s9 = sphi %s3087_s9, %s4833_s9   ;;  %s3017_s30 = sphi %s3085_s30, %s4832_s30   ;;  %s3013_s29 = sphi %s3083_s29, %s4831_s29   ;;  %s3009_s28 = sphi %s3081_s28, %s4830_s28   ;;  %s3005_s27 = sphi %s3079_s27, %s4829_s27  }
   0x8   : > { %s31_s13 = sadd.s32 1, %s3021_s9  ;;  %s43_s14 = sadd.s32 1, %s3013_s29 }
   0x9   : > { %p32_p0 = scmp.ge.s32.totalorder %s31_s13, 5  ;;  %p50_p1 = scmp.ne.s32.totalorder %s3013_s29, %s3009_s28 }
   0xa   : > { %p51_p2 = scmp.eq.s32.totalorder %s3025_s10, 0  ;;  %p241_p3 = scmp.eq.s32.totalorder %s2690_s11, 4 }
   0xb   : > { %s4835_s13 = smov (%p32_p0, %s31_s13), 0  ;;  %p246_p6 = scmp.ne.s32.totalorder %s3009_s28, %s3005_s27 }
   0xc   : > { %4779 = sst [smem:[#allocation10_spill]] %s4835_s13  ;;  %p3118_p4 = por %p51_p2, %p50_p1 }
   0xd   : > { %p3122_p5 = por %p241_p3, %p50_p1  ;;  %s39_s17 = ssub.s32 %s3021_s9, %s4835_s13 }
   0xe   : > { %p41_p7 = scmp.eq.s32.totalorder %s39_s17, 0  ;;  %p247_p8 = scmp.eq.s32.totalorder %s2691_s12, 4 }
   0xf   : > { %p2692_p9 = scmp.ge.s32.totalorder %s3025_s10, 1  ;;  %p254_p10 = scmp.lt.s32.totalorder %s3025_s10, 6 }
  0x10   : > { %s3133_s18 = scalar_select %p41_p7, %s3013_s29, %s43_s14  }
  0x11   : > { %p3135_p11 = por %p247_p8, %p246_p6  ;;  %p3139_p12 = pnand %p2692_p9, %p254_p10 }
  0x12   : > { %p3143_p13 = scmp.eq.s32.totalorder %s2690_s11, 0  ;;  %s4785_s2 = sld [smem:[#allocation27_spill]] }
  0x13   : > { %p2762_p0 = pneg %p3139_p12  ;;  %s3027_s25 = smov [#allocation4]  }
  0x14   : > { %s267_s26 = sshll.u32 %s3027_s25, 4  ;;  %s3028_s12 = smov 384   ;;  %s268_s26 = int_to_ptr.vmem [resolvable:$true] %s267_s26 }
  0x15   : > { %p2763_p1 = pnand %p3143_p13, %p2762_p0  ;;  %s3029_s14 = smov 24  }
  0x16   : > { %p2695_p2 = scmp.ge.s32.totalorder %s3025_s10, 5 }
  0x18   : > { %s265_s24 = sshll.u32 %s4785_s2, 4  ;;  %296 = sbr.rel (%p2695_p2) target bundleno = 37 (0x25), region = 40  ;;  %s266_s24 = int_to_ptr.hbm [resolvable:$true] %s265_s24 }
  0x19   : > { %2765 = dma.hbm_to_vmem [thread:$0]  (!%p2763_p1), %s266_s24, 1536, %s268_s26, [#allocation5], %s3028_s12, %s3028_s12, %s3029_s14  }
  0x1d   : > { %299 = sbr.rel (!%p3118_p4) target bundleno = 37 (0x25), region = 44  ;;  %s301_s11 = sand.u32 (%p3118_p4), 1, %s3013_s29  }
  0x1e   : > { %s2697_s17 = sshll.u32 (%p3118_p4), %s3021_s9, 3  ;;  %s2696_s22 = sshll.u32 (%p3118_p4), %s301_s11, 5 }
  0x1f   : > { %s308_s25 = scalar_lea.vmem (%p3118_p4), %s4734_s0, %s2697_s17  ;;  %s303_s13 = scalar_lea.vmem (%p3118_p4), [#allocation3], %s2696_s22 }
  0x20   : > { %v343_v0 = vld [vmem:[%s308_s25] sm:$0xff] (%p3118_p4)  ;;  %v345_v1 = vld [vmem:[%s308_s25 + $0x28] sm:$0xff] (%p3118_p4)  ;;  %v347_v2 = vld [vmem:[%s308_s25 + $0x50] sm:$0xff] (%p3118_p4) }
  0x21   : > { %344 = vst [vmem:[%s303_s13] sm:$0xff] (%p3118_p4), %v343_v0  ;;  %v349_v3 = vld [vmem:[%s308_s25 + $0x78] sm:$0xff] (%p3118_p4) }
  0x22   : > { %346 = vst [vmem:[%s303_s13 + $0x8] sm:$0xff] %v345_v1 }
  0x23   : > { %348 = vst [vmem:[%s303_s13 + $0x10] sm:$0xff] %v347_v2 }
  0x24   : > { %350 = vst [vmem:[%s303_s13 + $0x18] sm:$0xff] %v349_v3 }
  0x25 PF: > { %371 = sbr.rel (%p3139_p12) target bundleno = 1607 (0x647), region = 86 }
  0x2a   : > { %s374_s15 = sand.u32 1, %s3009_s28  }
  0x2b   : > { %s2699_s2 = sshll.u32 %s374_s15, 5 }
  0x2c   : > { %s3167_s24 = scalar_lea.vmem [#allocation3], %s2699_s2 }
  0x2d   : > { %2996 = dma.done.wait (%p3143_p13), [#allocation5], 1536  }
  0x2e   : > { %2998 = vsyncadd (%p3143_p13), [#allocation5], 4294965760  ;;  %s3174_s13 = sshll.u32 %s3017_s30, 3  ;;  %s3183_s17 = scalar_lea.vmem [#allocation7], %s2699_s2 }
  0x2f   : > { %p426_p3 = scmp.lt.s32.totalorder %s3174_s13, 39  ;;  %p2704_p4 = scmp.ne.s32.totalorder %s3017_s30, 0 }
  0x31   : > { %s427_s20 = scalar_select %p426_p3, %s3174_s13, 39 }
  0x32   : > { %442 = sbr.rel (%p2704_p4) target bundleno = 57 (0x39), region = 98 }
  0x33   : > { %s2703_s26 = sshll.u32 %s427_s20, 2 }
  0x34   : > { %s3181_s11 = scalar_lea.vmem %s4735_s1, %s2703_s26 }
  0x37   : > { %v443_v4 = vld [vmem:[%s4741_s7] sm:$0xf] }
  0x38   : > { %444 = vst [vmem:[#allocation2] sm:$0xf] %v443_v4 }
  0x39 PF: > { %v458_v5 = vld [vmem:[%s3181_s11] sm:$0xf]  ;;  %v3190_v6 = vld [vmem:[#allocation4 + $0x48] sm:$0xff]  ;;  %v3030_v7 = vmov 0   ;;  %v3193_v8 = vld [vmem:[#allocation4 + $0x30] sm:$0xff]  ;;  %vm486_vm0 = vcmask 1041409  }
  0x3a   : > { %2828 = vset.pattern.permute.xlu0 %v3030_v7  ;;  %509 = vmatpush.msra.mxu3 %v3190_v6  ;;  %v3195_v9 = vld [vmem:[#allocation4 + $0x18] sm:$0xff]  ;;  %v465_v10 = vld [vmem:[%s3167_s24] sm:$0x1]  ;;  %v466_v11 = vld [vmem:[%s3167_s24 + $0x8] sm:$0x1]  ;;  %vm489_vm1 = vcmask 1042434  }
  0x3b   : > { %461 = vperm.xlu0 %2828, %v458_v5   ;;  %770 = vmatpush.msra.mxu2 %v3190_v6  ;;  %v3201_v12 = vld [vmem:[#allocation4] sm:$0xff]  ;;  %v467_v13 = vld [vmem:[%s3167_s24 + $0x10] sm:$0x1]  ;;  %v468_v14 = vld [vmem:[%s3167_s24 + $0x18] sm:$0x1]  ;;  %v485_v15 = vrot.slane %v466_v11, 7 }
  0x3c   : > { %510 = vmatpush.msra.mxu3 %v3193_v8  ;;  %2829 = vset.pattern.permute.xlu1 %v3030_v7  ;;  %v3207_v16 = vld [vmem:[#allocation4 + $0x50] sm:$0xff]  ;;  %v488_v17 = vrot.slane %v467_v13, 6  ;;  %v491_v18 = vrot.slane %v468_v14, 5  ;;  %vm492_vm2 = vcmask 1043459   ;;  %v2710_v19 = vld [vmem:[%s3181_s11 + $0x4] sm:$0xf] }
  0x3d   : > { %771 = vmatpush.msra.mxu2 %v3193_v8  ;;  %2830 = vset.pattern.permute.xlu2 %v3030_v7  ;;  %v487_v20 = vsel %vm486_vm0, %v485_v15, %v465_v10  ;;  %vm494_vm3 = vcmask 261120   ;;  %v3214_v21 = vld [vmem:[%s4737_s3 + $0xf8] sm:$0xff]  ;;  %v3230_v25 = vld [vmem:[%s4737_s3 + $0xe8] sm:$0xff]  ;;  %v3240_v27 = vld [vmem:[%s4738_s4 + $0x70] sm:$0xff]  ;;  %s2565_s12 = sshll.u32 %s3183_s17, 4  ;;  %s2551_s21 = scalar_lea.sflag [#allocation6], %s374_s15  ;;  %s2566_s12 = int_to_ptr.vmem [resolvable:$true] %s2565_s12 }
  0x3e   : > { %511 = vmatpush.msra.mxu3 %v3195_v9  ;;  %v3218_v22 = vld [vmem:[#allocation4 + $0x38] sm:$0xff]  ;;  %v490_v23 = vsel %vm489_vm1, %v488_v17, %v487_v20  ;;  %609 = vmatpush.msra.mxu0 %v3214_v21  ;;  %v3247_v29 = vld [vmem:[#allocation4 + $0x20] sm:$0xff]  ;;  %v3263_v32 = vld [vmem:[#allocation4 + $0x8] sm:$0xff]  ;;  %s2963_s25 = scalar_lea.hbm %s4742_s8, 160 }
  0x3f   : > { %772 = vmatpush.msra.mxu2 %v3195_v9  ;;  %v3225_v24 = vld [vmem:[%s4738_s4 + $0x78] sm:$0xff]  ;;  %v3234_v26 = vsel %vm492_vm2, %v491_v18, %v490_v23  ;;  %v3256_v30 = vld [vmem:[%s4738_s4 + $0x68] sm:$0xff]  ;;  %v3273_v34 = vld [vmem:[%s4738_s4 + $0x60] sm:$0xff] }
  0x40   : > { %512 = vmatpush.msra.mxu3 %v3201_v12  ;;  %685 = vmatpush.msra.mxu1 %v3225_v24  ;;  %v3245_v28 = vld [vmem:[%s4737_s3 + $0xd8] sm:$0xff]  ;;  %v3261_v31 = vld [vmem:[%s4737_s3 + $0xc8] sm:$0xff]  ;;  %v3309_v41 = vld [vmem:[%s4738_s4 + $0x50] sm:$0xff] }
  0x41   : > { %2705 = vmatmul.msk.f32.vlgmr.msra.gmra.mxu3 %vm494_vm3, %v3234_v26  ;;  %610 = vmatpush.msra.mxu0 %v3230_v25  ;;  %v3268_v33 = vld [vmem:[#allocation4 + $0x58] sm:$0xff]  ;;  %v3284_v36 = vld [vmem:[#allocation4 + $0x40] sm:$0xff]  ;;  %v2740_v38 = vld [vmem:[%s3181_s11 + $0x18] sm:$0xf] }
  0x42   : > { %529 = vmatpush.msrb.mxu3 %v3207_v16  ;;  %686 = vmatpush.msra.mxu1 %v3240_v27  ;;  %v3281_v35 = vld [vmem:[%s4737_s3 + $0xb8] sm:$0xff]  ;;  %v3295_v39 = vld [vmem:[#allocation4 + $0x28] sm:$0xff]  ;;  %v3343_v47 = vld [vmem:[%s4737_s3 + $0xe0] sm:$0xff] }
  0x43   : > { %726 = vperm.xlu0 %2828, %v2710_v19   ;;  %611 = vmatpush.msra.mxu0 %v3245_v28  ;;  %v3289_v37 = vld [vmem:[%s4738_s4 + $0x58] sm:$0xff]  ;;  %v3301_v40 = vld [vmem:[%s4737_s3 + $0xa8] sm:$0xff]  ;;  %v3324_v44 = vld [vmem:[%s4737_s3 + $0xf0] sm:$0xff] }
  0x44   : > { %530 = vmatpush.msrb.mxu3 %v3218_v22  ;;  %773 = vmatpush.msra.mxu2 %v3201_v12  ;;  %v3311_v42 = vld [vmem:[#allocation4 + $0x10] sm:$0xff]  ;;  %v3330_v45 = vld [vmem:[%s4738_s4 + $0x48] sm:$0xff]  ;;  %v3349_v48 = vld [vmem:[%s4738_s4 + $0x40] sm:$0xff] }
  0x45   : > { %687 = vmatpush.msra.mxu1 %v3256_v30  ;;  %612 = vmatpush.msra.mxu0 %v3261_v31  ;;  %v3318_v43 = vld [vmem:[%s4737_s3 + $0x98] sm:$0xff]  ;;  %v3336_v46 = vld [vmem:[%s4737_s3 + $0x88] sm:$0xff]  ;;  %v3361_v50 = vld [vmem:[%s4737_s3 + $0xd0] sm:$0xff] }
  0x46   : > { %531 = vmatpush.msrb.mxu3 %v3247_v29  ;;  %790 = vmatpush.msrb.mxu2 %v3207_v16  ;;  %v3356_v49 = vld [vmem:[%s4737_s3 + $0x78] sm:$0xff]  ;;  %v3375_v52 = vld [vmem:[%s4737_s3 + $0x68] sm:$0xff]  ;;  %v3380_v53 = vld [vmem:[%s4737_s3 + $0xc0] sm:$0xff] }
  0x47   : > { %688 = vmatpush.msra.mxu1 %v3273_v34  ;;  %613 = vmatpush.msra.mxu0 %v3281_v35  ;;  %v3367_v51 = vld [vmem:[%s4738_s4 + $0x38] sm:$0xff]  ;;  %v3386_v54 = vld [vmem:[%s4738_s4 + $0x30] sm:$0xff]  ;;  %v3404_v57 = vld [vmem:[%s4738_s4 + $0x28] sm:$0xff] }
  0x48   : > { %532 = vmatpush.msrb.mxu3 %v3263_v32  ;;  %791 = vmatpush.msrb.mxu2 %v3218_v22  ;;  %v3393_v55 = vld [vmem:[%s4737_s3 + $0x58] sm:$0xff]  ;;  %v3398_v56 = vld [vmem:[%s4737_s3 + $0xb0] sm:$0xff]  ;;  %v3413_v58 = vld [vmem:[%s4737_s3 + $0x48] sm:$0xff] }
  0x49   : > { %689 = vmatpush.msra.mxu1 %v3289_v37  ;;  %2706 = vmatmul.msk.f32.vlgmr.msrb.gmra.mxu3 %vm494_vm3, %v3234_v26  ;;  %v3418_v59 = vld [vmem:[%s4737_s3 + $0xa0] sm:$0xff]  ;;  %v3431_v61 = vld [vmem:[%s4737_s3 + $0x38] sm:$0xff]  ;;  %v3436_v62 = vld [vmem:[%s4737_s3 + $0x90] sm:$0xff] }
  0x4a   : > { %549 = vmatpush.msra.mxu3 %v3268_v33  ;;  %614 = vmatpush.msra.mxu0 %v3301_v40  ;;  %v3424_v60 = vld [vmem:[%s4738_s4 + $0x20] sm:$0xff]  ;;  %v3442_v63 = vld [vmem:[%s4738_s4 + $0x18] sm:$0xff]  ;;  %v3449_v0 = vld [vmem:[%s4737_s3 + $0x28] sm:$0xff] }
  0x4b   : > { %2031 = vperm.xlu0 %2828, %v2740_v38   ;;  %690 = vmatpush.msra.mxu1 %v3309_v41  ;;  %v3454_v1 = vld [vmem:[%s4737_s3 + $0x80] sm:$0xff]  ;;  %v3460_v2 = vld [vmem:[%s4738_s4 + $0x10] sm:$0xff]  ;;  %v3467_v3 = vld [vmem:[%s4737_s3 + $0x18] sm:$0xff] }
  0x4c   : > { %550 = vmatpush.msra.mxu3 %v3284_v36  ;;  %792 = vmatpush.msrb.mxu2 %v3247_v29  ;;  %v3472_v4 = vld [vmem:[%s4737_s3 + $0x70] sm:$0xff]  ;;  %v3478_v5 = vld [vmem:[%s4738_s4 + $0x8] sm:$0xff]  ;;  %v3485_v7 = vld [vmem:[%s4737_s3 + $0x60] sm:$0xff] }
  0x4d   : > { %615 = vmatpush.msra.mxu0 %v3318_v43  ;;  %691 = vmatpush.msra.mxu1 %v3330_v45  ;;  %v3493_v10 = vld [vmem:[%s4737_s3 + $0x50] sm:$0xff]  ;;  %v3499_v11 = vld [vmem:[%s4737_s3 + $0x40] sm:$0xff]  ;;  %v3529_v18 = vld [vmem:[%s4737_s3 + $0x8] sm:$0xff] }
  0x4e   : > { %551 = vmatpush.msra.mxu3 %v3295_v39  ;;  %793 = vmatpush.msrb.mxu2 %v3263_v32  ;;  %v3505_v13 = vld [vmem:[%s4737_s3 + $0x30] sm:$0xff]  ;;  %v3511_v14 = vld [vmem:[%s4737_s3 + $0x20] sm:$0xff] }
  0x4f   : > { %616 = vmatpush.msra.mxu0 %v3336_v46  ;;  %692 = vmatpush.msra.mxu1 %v3349_v48  ;;  %v3517_v15 = vld [vmem:[%s4737_s3 + $0x10] sm:$0xff]  ;;  %v3524_v17 = vld [vmem:[%s4737_s3] sm:$0xff] }
  0x50   : > { %552 = vmatpush.msra.mxu3 %v3311_v42  ;;  %v3534_v19 = vld [vmem:[%s4738_s4] sm:$0xff]  ;;  %v732_v20 = vld [vmem:[%s3167_s24 + $0x11] sm:$0x1] }
  0x51   : > { %617 = vmatpush.msra.mxu0 %v3356_v49  ;;  %693 = vmatpush.msra.mxu1 %v3367_v51  ;;  %v730_v23 = vld [vmem:[%s3167_s24 + $0x1] sm:$0x1] }
  0x52   : > { %589 = vmatpush.msrb.mxu3 %v3324_v44 }
  0x53   : > { %618 = vmatpush.msra.mxu0 %v3375_v52  ;;  %2707 = vmatmul.msk.f32.vlgmr.msra.gmra.mxu3 %vm494_vm3, %v3234_v26  ;;  %v752_v26 = vrot.slane %v732_v20, 6  ;;  %v2716_v20 = vld [vmem:[%s3181_s11 + $0x8] sm:$0xf] }
  0x54   : > { %590 = vmatpush.msrb.mxu3 %v3343_v47  ;;  %694 = vmatpush.msra.mxu1 %v3386_v54 }
  0x55   : > { %619 = vmatpush.msra.mxu0 %v3393_v55  ;;  %987 = vperm.xlu1 %2829, %v2716_v20  }
  0x56   : > { %591 = vmatpush.msrb.mxu3 %v3361_v50  ;;  %695 = vmatpush.msra.mxu1 %v3404_v57 }
  0x57   : > { %620 = vmatpush.msra.mxu0 %v3413_v58 }
  0x58   : > { %592 = vmatpush.msrb.mxu3 %v3380_v53  ;;  %696 = vmatpush.msra.mxu1 %v3424_v60 }
  0x59   : > { %621 = vmatpush.msra.mxu0 %v3431_v61 }
  0x5a   : > { %593 = vmatpush.msrb.mxu3 %v3398_v56  ;;  %697 = vmatpush.msra.mxu1 %v3442_v63 }
  0x5b   : > { %622 = vmatpush.msra.mxu0 %v3449_v0 }
  0x5c   : > { %594 = vmatpush.msrb.mxu3 %v3418_v59  ;;  %698 = vmatpush.msra.mxu1 %v3460_v2 }
  0x5d   : > { %623 = vmatpush.msra.mxu0 %v3467_v3 }
  0x5e   : > { %595 = vmatpush.msrb.mxu3 %v3436_v62  ;;  %699 = vmatpush.msra.mxu1 %v3478_v5 }
  0x5f   : > { %624 = vmatpush.msra.mxu0 %v3529_v18 }
  0x60   : > { %596 = vmatpush.msrb.mxu3 %v3454_v1  ;;  %700 = vmatpush.msra.mxu1 %v3534_v19 }
  0x61   : > { %946 = vmatpush.msrb.mxu0 %v3225_v24 }
  0x62   : > { %597 = vmatpush.msrb.mxu3 %v3472_v4  ;;  %1031 = vmatpush.msrb.mxu1 %v3190_v6  ;;  %v457_v6 = vld [vmem:[#allocation2] sm:$0xf] }
  0x63   : > { %947 = vmatpush.msrb.mxu0 %v3240_v27 }
  0x64   : > { %598 = vmatpush.msrb.mxu3 %v3485_v7  ;;  %1032 = vmatpush.msrb.mxu1 %v3193_v8 }
  0x65   : > { %948 = vmatpush.msrb.mxu0 %v3256_v30 }
  0x66   : > { %599 = vmatpush.msrb.mxu3 %v3493_v10  ;;  %1033 = vmatpush.msrb.mxu1 %v3195_v9 }
  0x67   : > { %949 = vmatpush.msrb.mxu0 %v3273_v34 }
  0x68   : > { %600 = vmatpush.msrb.mxu3 %v3499_v11  ;;  %1034 = vmatpush.msrb.mxu1 %v3201_v12 }
  0x69   : > { %950 = vmatpush.msrb.mxu0 %v3289_v37 }
  0x6a   : > { %601 = vmatpush.msrb.mxu3 %v3505_v13 }
  0x6b   : > { %951 = vmatpush.msrb.mxu0 %v3309_v41 }
  0x6c   : > { %602 = vmatpush.msrb.mxu3 %v3511_v14 }
  0x6d   : > { %952 = vmatpush.msrb.mxu0 %v3330_v45 }
  0x6e   : > { %603 = vmatpush.msrb.mxu3 %v3517_v15 }
  0x6f   : > { %953 = vmatpush.msrb.mxu0 %v3349_v48 }
  0x70   : > { %604 = vmatpush.msrb.mxu3 %v3524_v17 }
  0x71   : > { %954 = vmatpush.msrb.mxu0 %v3367_v51 }
  0x72   : > { %870 = vmatpush.msra.mxu3 %v3214_v21 }
  0x73   : > { %955 = vmatpush.msrb.mxu0 %v3386_v54 }
  0x74   : > { %871 = vmatpush.msra.mxu3 %v3230_v25 }
  0x75   : > { %956 = vmatpush.msrb.mxu0 %v3404_v57 }
  0x76   : > { %872 = vmatpush.msra.mxu3 %v3245_v28 }
  0x77   : > { %957 = vmatpush.msrb.mxu0 %v3424_v60 }
  0x78   : > { %873 = vmatpush.msra.mxu3 %v3261_v31 }
  0x79   : > { %958 = vmatpush.msrb.mxu0 %v3442_v63 }
  0x7a   : > { %874 = vmatpush.msra.mxu3 %v3281_v35 }
  0x7b   : > { %959 = vmatpush.msrb.mxu0 %v3460_v2 }
  0x7c   : > { %875 = vmatpush.msra.mxu3 %v3301_v40 }
  0x7d   : > { %960 = vmatpush.msrb.mxu0 %v3478_v5 }
  0x7e   : > { %876 = vmatpush.msra.mxu3 %v3318_v43 }
  0x7f   : > { %961 = vmatpush.msrb.mxu0 %v3534_v19 }
  0x80   : > { %877 = vmatpush.msra.mxu3 %v3336_v46 }
  0x82   : > { %878 = vmatpush.msra.mxu3 %v3356_v49 }
  0x84   : > { %879 = vmatpush.msra.mxu3 %v3375_v52 }
  0x86   : > { %880 = vmatpush.msra.mxu3 %v3393_v55 }
  0x88   : > { %881 = vmatpush.msra.mxu3 %v3413_v58 }
  0x8a   : > { %882 = vmatpush.msra.mxu3 %v3431_v61 }
  0x8c   : > { %883 = vmatpush.msra.mxu3 %v3449_v0 }
  0x8e   : > { %884 = vmatpush.msra.mxu3 %v3467_v3 }
  0x90   : > { %885 = vmatpush.msra.mxu3 %v3529_v18 }
  0xad   : > { %v462_v8 = vpop.permute.xlu0 %461 }
  0xae   : > { %v3573_v9 = vmul.f32 %v462_v8, %v457_v6 }
  0xb0   : > { %605 = vmatmul.f32.vlgmr.msrb.gmra.mxu3 %v3573_v9  ;;  %625 = vmatmul.f32.vlgmr.msra.gmra.mxu0 %v3573_v9 }
  0xb1   : > { %701 = vmatmul.f32.vlgmr.msra.gmra.mxu1 %v3573_v9  ;;  %1207 = vmatpush.msrb.mxu3 %v3225_v24  ;;  %v733_v24 = vld [vmem:[%s3167_s24 + $0x19] sm:$0x1] }
  0xb2   : > { %1051 = vmatpush.msra.mxu1 %v3207_v16  ;;  %v731_v16 = vld [vmem:[%s3167_s24 + $0x9] sm:$0x1] }
  0xb3   : > { %1208 = vmatpush.msrb.mxu3 %v3240_v27 }
  0xb4   : > { %1052 = vmatpush.msra.mxu1 %v3218_v22  ;;  %v750_v22 = vrot.slane %v731_v16, 7 }
  0xb5   : > { %1209 = vmatpush.msrb.mxu3 %v3256_v30 }
  0xb6   : > { %1053 = vmatpush.msra.mxu1 %v3247_v29  ;;  %v751_v27 = vsel %vm486_vm0, %v750_v22, %v730_v23  ;;  %v754_v29 = vrot.slane %v733_v24, 5 }
  0xb7   : > { %1210 = vmatpush.msrb.mxu3 %v3273_v34  ;;  %v753_v30 = vsel %vm489_vm1, %v752_v26, %v751_v27 }
  0xb8   : > { %1054 = vmatpush.msra.mxu1 %v3263_v32  ;;  %v755_v32 = vsel %vm492_vm2, %v754_v29, %v753_v30  ;;  %v3648_v29 = vld [vmem:[%s4740_s6] ss:$0 sm:$0xff] }
  0xb9   : > { %1211 = vmatpush.msrb.mxu3 %v3289_v37  ;;  %2711 = vmatmul.msk.f32.vlgmr.msra.gmra.mxu2 %vm494_vm3, %v755_v32  ;;  %v445_v37 = vld [vmem:[%s4739_s5] sm:$0x7] }
  0xba   : > { %810 = vmatpush.msra.mxu2 %v3268_v33  ;;  %v3616_v38 = vperm.slane %v445_v37, 1 }
  0xbb   : > { %1212 = vmatpush.msrb.mxu3 %v3309_v41 }
  0xbc   : > { %811 = vmatpush.msra.mxu2 %v3284_v36  ;;  %4786 = vst [vmem:[#allocation11_spill] sm:$0xff] %v3616_v38 }
  0xbd   : > { %1213 = vmatpush.msrb.mxu3 %v3330_v45 }
  0xbe   : > { %812 = vmatpush.msra.mxu2 %v3295_v39 }
  0xbf   : > { %1214 = vmatpush.msrb.mxu3 %v3349_v48 }
  0xc0   : > { %813 = vmatpush.msra.mxu2 %v3311_v42 }
  0xc1   : > { %1215 = vmatpush.msrb.mxu3 %v3367_v51  ;;  %2712 = vmatmul.msk.f32.vlgmr.msrb.gmra.mxu2 %vm494_vm3, %v755_v32  ;;  %v3624_v51 = vperm.slane %v445_v37, 0 }
  0xc2   : > { %850 = vmatpush.msrb.mxu2 %v3324_v44 }
  0xc3   : > { %1216 = vmatpush.msrb.mxu3 %v3386_v54  ;;  %4787 = vst [vmem:[#allocation12_spill] sm:$0xff] %v3624_v51 }
  0xc4   : > { %v514_v12 = vpop.f32.mrf.mxu3  ;;  %851 = vmatpush.msrb.mxu2 %v3343_v47 }
  0xc5   : > { %1217 = vmatpush.msrb.mxu3 %v3404_v57 }
  0xc6   : > { %852 = vmatpush.msrb.mxu2 %v3361_v50 }
  0xc7   : > { %1218 = vmatpush.msrb.mxu3 %v3424_v60  ;;  %v515_v60 = vadd.f32 %v514_v12, %v3624_v51 }
  0xc8   : > { %853 = vmatpush.msrb.mxu2 %v3380_v53 }
  0xc9   : > { %1219 = vmatpush.msrb.mxu3 %v3442_v63  ;;  %2713 = vmatmul.msk.f32.vlgmr.msra.gmra.mxu2 %vm494_vm3, %v755_v32 }
  0xca   : > { %854 = vmatpush.msrb.mxu2 %v3398_v56 }
  0xcb   : > { %1220 = vmatpush.msrb.mxu3 %v3460_v2 }
  0xcc   : > { %v534_v34 = vpop.f32.mrf.mxu3  ;;  %855 = vmatpush.msrb.mxu2 %v3418_v59 }
  0xcd   : > { %1221 = vmatpush.msrb.mxu3 %v3478_v5  ;;  %v535_v45 = vadd.f32 %v534_v34, %v3616_v38 }
  0xce   : > { %856 = vmatpush.msrb.mxu2 %v3436_v62 }
  0xcf   : > { %1222 = vmatpush.msrb.mxu3 %v3534_v19 }
  0xd0   : > { %857 = vmatpush.msrb.mxu2 %v3454_v1 }
  0xd2   : > { %858 = vmatpush.msrb.mxu2 %v3472_v4 }
  0xd4   : > { %859 = vmatpush.msrb.mxu2 %v3485_v7 }
  0xd6   : > { %v3619_v41 = vpop.f32.mrf.mxu3  ;;  %860 = vmatpush.msrb.mxu2 %v3493_v10 }
  0xd8   : > { %861 = vmatpush.msrb.mxu2 %v3499_v11 }
  0xda   : > { %862 = vmatpush.msrb.mxu2 %v3505_v13 }
  0xdc   : > { %863 = vmatpush.msrb.mxu2 %v3511_v14 }
  0xde   : > { %864 = vmatpush.msrb.mxu2 %v3517_v15 }
  0xe0   : > { %865 = vmatpush.msrb.mxu2 %v3524_v17 }
  0xe2   : > { %1131 = vmatpush.msra.mxu2 %v3214_v21  ;;  %v2722_v21 = vld [vmem:[%s3181_s11 + $0xc] sm:$0xf] }
  0xe3   : > { %1248 = vperm.xlu1 %2829, %v2722_v21  }
  0xe4   : > { %1132 = vmatpush.msra.mxu2 %v3230_v25 }
  0xe6   : > { %1133 = vmatpush.msra.mxu2 %v3245_v28 }
  0xe8   : > { %1134 = vmatpush.msra.mxu2 %v3261_v31 }
  0xea   : > { %1135 = vmatpush.msra.mxu2 %v3281_v35 }
  0xec   : > { %1136 = vmatpush.msra.mxu2 %v3301_v40 }
  0xee   : > { %1137 = vmatpush.msra.mxu2 %v3318_v43 }
  0xf0   : > { %1138 = vmatpush.msra.mxu2 %v3336_v46 }
  0xf2   : > { %1139 = vmatpush.msra.mxu2 %v3356_v49 }
  0xf4   : > { %1140 = vmatpush.msra.mxu2 %v3375_v52 }
  0xf6   : > { %1141 = vmatpush.msra.mxu2 %v3393_v55 }
  0xf8   : > { %1142 = vmatpush.msra.mxu2 %v3413_v58 }
  0xfa   : > { %1143 = vmatpush.msra.mxu2 %v3431_v61  ;;  %v992_v61 = vld [vmem:[%s3167_s24 + $0xa] sm:$0x1] }
  0xfc   : > { %1144 = vmatpush.msra.mxu2 %v3449_v0  ;;  %v993_v0 = vld [vmem:[%s3167_s24 + $0x12] sm:$0x1] }
  0xfe   : > { %1145 = vmatpush.msra.mxu2 %v3467_v3 }
 0x100   : > { %1146 = vmatpush.msra.mxu2 %v3529_v18 }
 0x12d   : > { %v626_v48 = vpop.f32.mrf.mxu0 }
 0x12e   : > { %v649_v54 = vadd.f32 %v626_v48, %v535_v45  ;;  %v702_v34 = vpop.f32.mrf.mxu1  ;;  %v3652_v45 = vperm.slane %v445_v37, 2 }
 0x130   : > { %v2709_v57 = vmul.f32 -1.442695, %v649_v54  ;;  %v703_v54 = vadd.f32 %v3648_v29, %v702_v34  ;;  %v555_v31 = vadd.f32 %v3619_v41, %v3652_v45 }
 0x132   : > { %2832 = vpow2.f32 %v2709_v57 }
 0x133   : > { %v606_v63 = vpop.f32.mrf.mxu3 }
 0x134   : > { %v629_v2 = vadd.f32 %v606_v63, %v515_v60 }
 0x136   : > { %v2708_v5 = vmul.f32 -1.442695, %v629_v2 }
 0x138   : > { %2834 = vpow2.f32 %v2708_v5  ;;  %v2833_v19 = vpop.eup %2832  ;;  %v2746_v5 = vld [vmem:[%s3181_s11 + $0x1c] sm:$0xf] }
 0x139   : > { %v653_v8 = vadd.f32 1.0, %v2833_v19  ;;  %2292 = vperm.xlu1 %2829, %v2746_v5  }
 0x13b   : > { %v665_v19 = vand.u32 2147483648, %v653_v8  ;;  %vm659_vm9 = vweird.f32 %v653_v8  ;;  %v663_v40 = vand.u32 2147483647, %v653_v8 }
 0x13c   : > { %v775_v58 = vpop.f32.mrf.mxu2 }
 0x13d   : > { %vm664_vm11 = vcmp.eq.f32.partialorder %v663_v40, 8.507059e+37 }
 0x13e   : > { %v2835_v6 = vpop.eup %2834 }
 0x13f   : > { %v633_v12 = vadd.f32 1.0, %v2835_v6  ;;  %v666_v6 = vor.u32 1.1754944e-38, %v665_v19 }
 0x141   : > { %2836 = vrcp.f32 %v633_v12  ;;  %v645_v27 = vand.u32 2147483648, %v633_v12  ;;  %v643_v32 = vand.u32 2147483647, %v633_v12  ;;  %vm639_vm5 = vweird.f32 %v633_v12 }
 0x142   : > { %2838 = vrcp.f32 %v653_v8 }
 0x143   : > { %v646_v28 = vor.u32 1.1754944e-38, %v645_v27  ;;  %vm644_vm7 = vcmp.eq.f32.partialorder %v643_v32, 8.507059e+37 }
 0x144   : > { %v795_v34 = vpop.f32.mrf.mxu2 }
 0x147   : > { %v2837_v16 = vpop.eup %2836 }
 0x148   : > { %v2839_v22 = vpop.eup %2838  ;;  %v635_v23 = vmul.f32 %v2837_v16, %v633_v12  ;;  %vm640_vm4 = vweird.f32 %v2837_v16 }
 0x149   : > { %v655_v26 = vmul.f32 %v2839_v22, %v653_v8  ;;  %vm641_vm6 = vmor %vm639_vm5, %vm640_vm4  ;;  %vm660_vm8 = vweird.f32 %v2839_v22  ;;  %v727_v8 = vpop.permute.xlu0 %726 }
 0x14a   : > { %v636_v24 = vsub.f32 1.0, %v635_v23  ;;  %vm661_vm10 = vmor %vm659_vm9, %vm660_vm8  ;;  %v991_v23 = vld [vmem:[%s3167_s24 + $0x2] sm:$0x1] }
 0x14b   : > { %v656_v48 = vsub.f32 1.0, %v655_v26  ;;  %v1013_v26 = vrot.slane %v993_v0, 6 }
 0x14c   : > { %v637_v30 = vmul.f32 %v2837_v16, %v636_v24  ;;  %v994_v24 = vld [vmem:[%s3167_s24 + $0x1a] sm:$0x1]  ;;  %v815_v18 = vpop.f32.mrf.mxu2 }
 0x14d   : > { %v657_v63 = vmul.f32 %v2839_v22, %v656_v48  ;;  %v1015_v27 = vrot.slane %v994_v24, 5  ;;  %v1253_v24 = vld [vmem:[%s3167_s24 + $0xb] sm:$0x1] }
 0x14e   : > { %v638_v25 = vadd.f32 %v2837_v16, %v637_v30 }
 0x14f   : > { %v658_v35 = vadd.f32 %v2839_v22, %v657_v63 }
 0x150   : > { %v642_v57 = vsel %vm641_vm6, %v2837_v16, %v638_v25 }
 0x151   : > { %v647_v60 = vsel %vm644_vm7, %v646_v28, %v642_v57  ;;  %v662_v41 = vsel %vm661_vm10, %v2839_v22, %v658_v35  ;;  %v1011_v22 = vrot.slane %v992_v61, 7  ;;  %v3732_v61 = vld [vmem:[#allocation4 + $0x18] sm:$0xff] }
 0x152   : > { %v705_v37 = vmul.f32 %v703_v54, %v647_v60  ;;  %v667_v49 = vsel %vm664_vm11, %v666_v6, %v662_v41 }
 0x153   : > { %v1012_v3 = vsel %vm486_vm0, %v1011_v22, %v991_v23  ;;  %v3738_v22 = vld [vmem:[#allocation4] sm:$0xff]  ;;  %v3741_v23 = vld [vmem:[#allocation4 + $0x50] sm:$0xff] }
 0x154   : > { %v706_v2 = vadd.f32 %v705_v37, %v555_v31  ;;  %v1014_v30 = vsel %vm489_vm1, %v1013_v26, %v1012_v3  ;;  %v3747_v26 = vld [vmem:[#allocation4 + $0x38] sm:$0xff]  ;;  %v1254_v3 = vld [vmem:[%s3167_s24 + $0x13] sm:$0x1] }
 0x155   : > { %v1016_v32 = vsel %vm492_vm2, %v1015_v27, %v1014_v30  ;;  %v1272_v27 = vrot.slane %v1253_v24, 7  ;;  %v1252_v30 = vld [vmem:[%s3167_s24 + $0x3] sm:$0x1]  ;;  %v3962_v24 = vld [vmem:[%s4738_s4 + $0x30] sm:$0xff] }
 0x156   : > { %2840 = vtanh.f32 %v706_v2  ;;  %2717 = vmatmul.msk.f32.vlgmr.msrb.gmra.mxu1 %vm494_vm3, %v1016_v32 }
 0x157   : > { %1071 = vmatpush.msrb.mxu1 %v3268_v33  ;;  %v776_v33 = vadd.f32 %v775_v58, %v3624_v51  ;;  %v3728_v58 = vld [vmem:[#allocation4 + $0x30] sm:$0xff] }
 0x159   : > { %1072 = vmatpush.msrb.mxu1 %v3284_v36  ;;  %v796_v36 = vadd.f32 %v795_v34, %v3616_v38  ;;  %v1274_v34 = vrot.slane %v1254_v3, 6 }
 0x15b   : > { %1073 = vmatpush.msrb.mxu1 %v3295_v39 }
 0x15c   : > { %v2841_v43 = vpop.eup %2840 }
 0x15d   : > { %v708_v46 = vsub.f32 %v3573_v9, %v2841_v43  ;;  %1074 = vmatpush.msrb.mxu1 %v3311_v42 }
 0x15e   : > { %2718 = vmatmul.msk.f32.vlgmr.msra.gmra.mxu1 %vm494_vm3, %v1016_v32 }
 0x15f   : > { %v709_v12 = vmul.f32 %v708_v46, %v667_v49  ;;  %1111 = vmatpush.msra.mxu1 %v3324_v44 }
 0x161   : > { %v710_v52 = vadd.f32 %v2841_v43, %v709_v12  ;;  %1112 = vmatpush.msra.mxu1 %v3343_v47 }
 0x163   : > { %v712_v55 = vrot.slane %v710_v52, 1  ;;  %v713_v16 = vrot.slane %v710_v52, 2  ;;  %v714_v20 = vrot.slane %v710_v52, 3  ;;  %718 = vst [vmem:[%s3183_s17] sm:$0x1] %v710_v52  ;;  %v3670_v9 = vmul.f32 %v727_v8, %v710_v52  ;;  %1113 = vmatpush.msra.mxu1 %v3361_v50  ;;  %v988_v52 = vpop.permute.xlu1 %987 }
 0x165   : > { %719 = vst [vmem:[%s3183_s17 + $0x8] sm:$0x1] %v712_v55  ;;  %866 = vmatmul.f32.vlgmr.msrb.gmra.mxu2 %v3670_v9  ;;  %886 = vmatmul.f32.vlgmr.msra.gmra.mxu3 %v3670_v9 }
 0x166   : > { %720 = vst [vmem:[%s3183_s17 + $0x10] sm:$0x1] %v713_v16  ;;  %962 = vmatmul.f32.vlgmr.msrb.gmra.mxu0 %v3670_v9  ;;  %1114 = vmatpush.msra.mxu1 %v3380_v53 }
 0x167   : > { %721 = vst [vmem:[%s3183_s17 + $0x18] sm:$0x1] %v714_v20  ;;  %2719 = vmatmul.msk.f32.vlgmr.msrb.gmra.mxu1 %vm494_vm3, %v1016_v32  ;;  %v1255_v32 = vld [vmem:[%s3167_s24 + $0x1b] sm:$0x1] }
 0x168   : > { %1115 = vmatpush.msra.mxu1 %v3398_v56 }
 0x16a   : > { %1116 = vmatpush.msra.mxu1 %v3418_v59 }
 0x16c   : > { %1117 = vmatpush.msra.mxu1 %v3436_v62 }
 0x16e   : > { %1118 = vmatpush.msra.mxu1 %v3454_v1 }
 0x170   : > { %1119 = vmatpush.msra.mxu1 %v3472_v4 }
 0x172   : > { %1120 = vmatpush.msra.mxu1 %v3485_v7 }
 0x174   : > { %1121 = vmatpush.msra.mxu1 %v3493_v10 }
 0x176   : > { %1122 = vmatpush.msra.mxu1 %v3499_v11 }
 0x178   : > { %1123 = vmatpush.msra.mxu1 %v3505_v13 }
 0x17a   : > { %1124 = vmatpush.msra.mxu1 %v3511_v14 }
 0x17c   : > { %1125 = vmatpush.msra.mxu1 %v3517_v15 }
 0x17e   : > { %1126 = vmatpush.msra.mxu1 %v3524_v17  ;;  %v816_v17 = vadd.f32 %v815_v18, %v3652_v45  ;;  %v3754_v18 = vld [vmem:[#allocation4 + $0x20] sm:$0xff] }
 0x1d3   : > { %v3734_v0 = vpop.f32.mrf.mxu1 }
 0x1e3   : > { %v963_v54 = vpop.f32.mrf.mxu0 }
 0x1e4   : > { %v964_v14 = vadd.f32 %v3648_v29, %v963_v54  ;;  %v3839_v54 = vld [vmem:[%s4737_s3 + $0xc0] sm:$0xff] }
 0x1e8   : > { %v867_v39 = vpop.f32.mrf.mxu2  ;;  %v887_v42 = vpop.f32.mrf.mxu3 }
 0x1e9   : > { %v890_v21 = vadd.f32 %v867_v39, %v776_v33  ;;  %v910_v44 = vadd.f32 %v887_v42, %v796_v36  ;;  %v1273_v33 = vsel %vm486_vm0, %v1272_v27, %v1252_v30  ;;  %v1276_v36 = vrot.slane %v1255_v32, 5  ;;  %v3970_v27 = vld [vmem:[%s4737_s3 + $0x50] sm:$0xff]  ;;  %v3975_v30 = vld [vmem:[%s4737_s3 + $0x58] sm:$0xff]  ;;  %v3980_v32 = vld [vmem:[%s4738_s4 + $0x28] sm:$0xff] }
 0x1ea   : > { %v1275_v39 = vsel %vm489_vm1, %v1274_v34, %v1273_v33  ;;  %4796 = vst [vmem:[#allocation21_spill] sm:$0xff] %v3970_v27  ;;  %v3988_v33 = vld [vmem:[%s4737_s3 + $0x40] sm:$0xff] }
 0x1eb   : > { %v2714_v47 = vmul.f32 -1.442695, %v890_v21  ;;  %v2715_v50 = vmul.f32 -1.442695, %v910_v44  ;;  %v1277_v42 = vsel %vm492_vm2, %v1276_v36, %v1275_v39  ;;  %v3761_v21 = vld [vmem:[#allocation4 + $0x8] sm:$0xff]  ;;  %v3764_v44 = vld [vmem:[#allocation4 + $0x58] sm:$0xff] }
 0x1ec   : > { %4797 = vst [vmem:[#allocation22_spill] sm:$0xff] %v3988_v33  ;;  %v3993_v36 = vld [vmem:[%s4737_s3 + $0x48] sm:$0xff]  ;;  %v3998_v39 = vld [vmem:[%s4738_s4 + $0x20] sm:$0xff] }
 0x1ed   : > { %2842 = vpow2.f32 %v2714_v47  ;;  %v3767_v47 = vpop.f32.mrf.mxu1 }
 0x1ee   : > { %2844 = vpow2.f32 %v2715_v50  ;;  %v3771_v50 = vld [vmem:[#allocation4 + $0x40] sm:$0xff] }
 0x1f3   : > { %v2843_v53 = vpop.eup %2842 }
 0x1f4   : > { %v2845_v56 = vpop.eup %2844  ;;  %v894_v25 = vadd.f32 1.0, %v2843_v53  ;;  %v3774_v53 = vld [vmem:[#allocation4 + $0x28] sm:$0xff] }
 0x1f5   : > { %v914_v59 = vadd.f32 1.0, %v2845_v56  ;;  %v3777_v56 = vld [vmem:[#allocation4 + $0x10] sm:$0xff] }
 0x1f6   : > { %2846 = vrcp.f32 %v894_v25  ;;  %v906_v10 = vand.u32 2147483648, %v894_v25  ;;  %v904_v11 = vand.u32 2147483647, %v894_v25  ;;  %vm900_vm13 = vweird.f32 %v894_v25 }
 0x1f7   : > { %2848 = vrcp.f32 %v914_v59  ;;  %v926_v35 = vand.u32 2147483648, %v914_v59  ;;  %vm920_vm5 = vweird.f32 %v914_v59  ;;  %v924_v19 = vand.u32 2147483647, %v914_v59 }
 0x1f8   : > { %v907_v13 = vor.u32 1.1754944e-38, %v906_v10  ;;  %vm905_vm15 = vcmp.eq.f32.partialorder %v904_v11, 8.507059e+37  ;;  %v3813_v10 = vld [vmem:[%s4738_s4 + $0x70] sm:$0xff]  ;;  %v3831_v11 = vld [vmem:[%s4738_s4 + $0x68] sm:$0xff] }
 0x1f9   : > { %v927_v43 = vor.u32 1.1754944e-38, %v926_v35  ;;  %vm925_vm7 = vcmp.eq.f32.partialorder %v924_v19, 8.507059e+37  ;;  %v3901_v35 = vld [vmem:[%s4737_s3 + $0x98] sm:$0xff]  ;;  %v3906_v19 = vld [vmem:[%s4738_s4 + $0x48] sm:$0xff] }
 0x1fc   : > { %v2847_v62 = vpop.eup %2846 }
 0x1fd   : > { %v2849_v1 = vpop.eup %2848  ;;  %v896_v4 = vmul.f32 %v2847_v62, %v894_v25  ;;  %vm901_vm12 = vweird.f32 %v2847_v62  ;;  %v3782_v25 = vld [vmem:[%s4737_s3 + $0xf0] sm:$0xff] }
 0x1fe   : > { %v916_v48 = vmul.f32 %v2849_v1, %v914_v59  ;;  %vm902_vm14 = vmor %vm900_vm13, %vm901_vm12  ;;  %vm921_vm4 = vweird.f32 %v2849_v1  ;;  %v3787_v59 = vld [vmem:[%s4737_s3 + $0xf8] sm:$0xff] }
 0x1ff   : > { %v897_v7 = vsub.f32 1.0, %v896_v4  ;;  %vm922_vm6 = vmor %vm920_vm5, %vm921_vm4  ;;  %4788 = vst [vmem:[#allocation13_spill] sm:$0xff] %v3787_v59  ;;  %1392 = vmatpush.msrb.mxu1 %v3787_v59  ;;  %v3803_v4 = vld [vmem:[%s4737_s3 + $0xe0] sm:$0xff] }
 0x200   : > { %v917_v60 = vsub.f32 1.0, %v916_v48  ;;  %v3821_v48 = vld [vmem:[%s4737_s3 + $0xd0] sm:$0xff] }
 0x201   : > { %v898_v28 = vmul.f32 %v2847_v62, %v897_v7  ;;  %v3808_v7 = vld [vmem:[%s4737_s3 + $0xe8] sm:$0xff] }
 0x202   : > { %v918_v63 = vmul.f32 %v2849_v1, %v917_v60  ;;  %4789 = vst [vmem:[#allocation14_spill] sm:$0xff] %v3808_v7  ;;  %1393 = vmatpush.msrb.mxu1 %v3808_v7  ;;  %v3857_v60 = vld [vmem:[%s4737_s3 + $0xb0] sm:$0xff] }
 0x203   : > { %v899_v57 = vadd.f32 %v2847_v62, %v898_v28  ;;  %v3826_v28 = vld [vmem:[%s4737_s3 + $0xd8] sm:$0xff] }
 0x204   : > { %v919_v5 = vadd.f32 %v2849_v1, %v918_v63  ;;  %4790 = vst [vmem:[#allocation15_spill] sm:$0xff] %v3826_v28  ;;  %1394 = vmatpush.msrb.mxu1 %v3826_v28  ;;  %v1037_v63 = vadd.f32 %v3734_v0, %v3624_v51  ;;  %v3957_v0 = vld [vmem:[%s4737_s3 + $0x68] sm:$0xff] }
 0x205   : > { %v903_v15 = vsel %vm902_vm14, %v2847_v62, %v899_v57  ;;  %v3792_v62 = vld [vmem:[%s4738_s4 + $0x78] sm:$0xff]  ;;  %v3844_v57 = vld [vmem:[%s4737_s3 + $0xc8] sm:$0xff] }
 0x206   : > { %v908_v31 = vsel %vm905_vm15, %v907_v13, %v903_v15  ;;  %v923_v40 = vsel %vm922_vm6, %v2849_v1, %v919_v5  ;;  %v3796_v1 = vpop.f32.mrf.mxu1  ;;  %1468 = vmatpush.msrb.mxu2 %v3792_v62  ;;  %v3849_v13 = vld [vmem:[%s4738_s4 + $0x60] sm:$0xff]  ;;  %1395 = vmatpush.msrb.mxu1 %v3844_v57  ;;  %v3867_v15 = vld [vmem:[%s4738_s4 + $0x58] sm:$0xff]  ;;  %v3896_v5 = vld [vmem:[%s4737_s3 + $0x90] sm:$0xff] }
 0x207   : > { %v966_v37 = vmul.f32 %v964_v14, %v908_v31  ;;  %v928_v46 = vsel %vm925_vm7, %v927_v43, %v923_v40  ;;  %v3862_v14 = vld [vmem:[%s4737_s3 + $0xb8] sm:$0xff]  ;;  %v3875_v31 = vld [vmem:[%s4737_s3 + $0xa0] sm:$0xff]  ;;  %4792 = vst [vmem:[#allocation17_spill] sm:$0xff] %v3896_v5  ;;  %v3919_v43 = vld [vmem:[%s4737_s3 + $0x88] sm:$0xff] }
 0x208   : > { %1469 = vmatpush.msrb.mxu2 %v3813_v10  ;;  %1396 = vmatpush.msrb.mxu1 %v3862_v14  ;;  %4791 = vst [vmem:[#allocation16_spill] sm:$0xff] %v3875_v31 }
 0x209   : > { %v967_v2 = vadd.f32 %v966_v37, %v816_v17  ;;  %v3880_v17 = vld [vmem:[%s4737_s3 + $0xa8] sm:$0xff]  ;;  %v3885_v37 = vld [vmem:[%s4738_s4 + $0x50] sm:$0xff] }
 0x20a   : > { %1470 = vmatpush.msrb.mxu2 %v3831_v11  ;;  %1397 = vmatpush.msrb.mxu1 %v3880_v17 }
 0x20b   : > { %2850 = vtanh.f32 %v967_v2 }
 0x20c   : > { %1471 = vmatpush.msrb.mxu2 %v3849_v13  ;;  %1398 = vmatpush.msrb.mxu1 %v3901_v35 }
 0x20e   : > { %1472 = vmatpush.msrb.mxu2 %v3867_v15  ;;  %1399 = vmatpush.msrb.mxu1 %v3919_v43 }
 0x210   : > { %1473 = vmatpush.msrb.mxu2 %v3885_v37 }
 0x211   : > { %v2851_v41 = vpop.eup %2850 }
 0x212   : > { %v969_v6 = vsub.f32 %v3670_v9, %v2851_v41  ;;  %v3724_v9 = vld [vmem:[#allocation4 + $0x48] sm:$0xff]  ;;  %1474 = vmatpush.msrb.mxu2 %v3906_v19 }
 0x213   : > { %1292 = vmatpush.msra.mxu0 %v3724_v9  ;;  %1553 = vmatpush.msra.mxu3 %v3724_v9 }
 0x214   : > { %v970_v49 = vmul.f32 %v969_v6, %v928_v46  ;;  %v3924_v6 = vld [vmem:[%s4738_s4 + $0x40] sm:$0xff] }
 0x215   : > { %1293 = vmatpush.msra.mxu0 %v3728_v58  ;;  %1554 = vmatpush.msra.mxu3 %v3728_v58 }
 0x216   : > { %v971_v12 = vadd.f32 %v2851_v41, %v970_v49  ;;  %v3914_v41 = vld [vmem:[%s4737_s3 + $0x80] sm:$0xff]  ;;  %1475 = vmatpush.msrb.mxu2 %v3924_v6  ;;  %v3932_v49 = vld [vmem:[%s4737_s3 + $0x70] sm:$0xff] }
 0x217   : > { %1294 = vmatpush.msra.mxu0 %v3732_v61  ;;  %1555 = vmatpush.msra.mxu3 %v3732_v61  ;;  %4793 = vst [vmem:[#allocation18_spill] sm:$0xff] %v3914_v41 }
 0x218   : > { %v973_v8 = vrot.slane %v971_v12, 1  ;;  %v974_v55 = vrot.slane %v971_v12, 2  ;;  %v975_v16 = vrot.slane %v971_v12, 3  ;;  %979 = vst [vmem:[%s3183_s17 + $0x1] sm:$0x1] %v971_v12  ;;  %v3716_v20 = vmul.f32 %v988_v52, %v971_v12  ;;  %v3937_v12 = vld [vmem:[%s4737_s3 + $0x78] sm:$0xff] }
 0x219   : > { %1295 = vmatpush.msra.mxu0 %v3738_v22  ;;  %1556 = vmatpush.msra.mxu3 %v3738_v22  ;;  %4794 = vst [vmem:[#allocation19_spill] sm:$0xff] %v3932_v49  ;;  %v3942_v52 = vld [vmem:[%s4738_s4 + $0x38] sm:$0xff] }
 0x21a   : > { %980 = vst [vmem:[%s3183_s17 + $0x9] sm:$0x1] %v973_v8  ;;  %1127 = vmatmul.f32.vlgmr.msra.gmra.mxu1 %v3716_v20  ;;  %1147 = vmatmul.f32.vlgmr.msra.gmra.mxu2 %v3716_v20  ;;  %v1057_v8 = vadd.f32 %v3767_v47, %v3616_v38 }
 0x21b   : > { %981 = vst [vmem:[%s3183_s17 + $0x11] sm:$0x1] %v974_v55  ;;  %1223 = vmatmul.f32.vlgmr.msrb.gmra.mxu3 %v3716_v20  ;;  %1312 = vmatpush.msrb.mxu0 %v3741_v23 }
 0x21c   : > { %982 = vst [vmem:[%s3183_s17 + $0x19] sm:$0x1] %v975_v16  ;;  %1573 = vmatpush.msrb.mxu3 %v3741_v23  ;;  %2723 = vmatmul.msk.f32.vlgmr.msra.gmra.mxu0 %vm494_vm3, %v1277_v42  ;;  %v3952_v16 = vld [vmem:[%s4737_s3 + $0x60] sm:$0xff] }
 0x21d   : > { %1313 = vmatpush.msrb.mxu0 %v3747_v26  ;;  %1400 = vmatpush.msrb.mxu1 %v3937_v12  ;;  %4795 = vst [vmem:[#allocation20_spill] sm:$0xff] %v3952_v16 }
 0x21e   : > { %1574 = vmatpush.msrb.mxu3 %v3747_v26  ;;  %1476 = vmatpush.msrb.mxu2 %v3942_v52 }
 0x21f   : > { %1314 = vmatpush.msrb.mxu0 %v3754_v18  ;;  %1401 = vmatpush.msrb.mxu1 %v3957_v0 }
 0x220   : > { %1575 = vmatpush.msrb.mxu3 %v3754_v18  ;;  %1477 = vmatpush.msrb.mxu2 %v3962_v24 }
 0x221   : > { %1315 = vmatpush.msrb.mxu0 %v3761_v21  ;;  %1402 = vmatpush.msrb.mxu1 %v3975_v30 }
 0x222   : > { %1576 = vmatpush.msrb.mxu3 %v3761_v21  ;;  %1478 = vmatpush.msrb.mxu2 %v3980_v32 }
 0x223   : > { %1332 = vmatpush.msra.mxu0 %v3764_v44  ;;  %1403 = vmatpush.msrb.mxu1 %v3993_v36 }
 0x224   : > { %2724 = vmatmul.msk.f32.vlgmr.msrb.gmra.mxu0 %vm494_vm3, %v1277_v42  ;;  %1479 = vmatpush.msrb.mxu2 %v3998_v39 }
 0x225   : > { %1333 = vmatpush.msra.mxu0 %v3771_v50 }
 0x227   : > { %1334 = vmatpush.msra.mxu0 %v3774_v53 }
 0x229   : > { %1335 = vmatpush.msra.mxu0 %v3777_v56 }
 0x22b   : > { %1372 = vmatpush.msrb.mxu0 %v3782_v25 }
 0x22c   : > { %2725 = vmatmul.msk.f32.vlgmr.msra.gmra.mxu0 %vm494_vm3, %v1277_v42 }
 0x22d   : > { %1373 = vmatpush.msrb.mxu0 %v3803_v4 }
 0x22f   : > { %1374 = vmatpush.msrb.mxu0 %v3821_v48 }
 0x231   : > { %1375 = vmatpush.msrb.mxu0 %v3839_v54 }
 0x233   : > { %1376 = vmatpush.msrb.mxu0 %v3857_v60 }
 0x235   : > { %1377 = vmatpush.msrb.mxu0 %v3875_v31 }
 0x237   : > { %1378 = vmatpush.msrb.mxu0 %v3896_v5 }
 0x239   : > { %1379 = vmatpush.msrb.mxu0 %v3914_v41 }
 0x23b   : > { %1380 = vmatpush.msrb.mxu0 %v3932_v49  ;;  %v2728_v49 = vld [vmem:[%s3181_s11 + $0x10] sm:$0xf] }
 0x23c   : > { %1509 = vperm.xlu2 %2830, %v2728_v49  }
 0x23d   : > { %1381 = vmatpush.msrb.mxu0 %v3952_v16  ;;  %v4070_v16 = vld [vmem:[%s4737_s3 + $0x8] sm:$0xff] }
 0x23f   : > { %1382 = vmatpush.msrb.mxu0 %v3970_v27  ;;  %v4065_v27 = vld [vmem:[%s4737_s3] sm:$0xff] }
 0x240   : > { %4801 = vst [vmem:[#allocation26_spill] sm:$0xff] %v4065_v27 }
 0x241   : > { %1383 = vmatpush.msrb.mxu0 %v3988_v33 }
 0x297   : > { %v1128_v2 = vpop.f32.mrf.mxu1 }
 0x298   : > { %v1151_v40 = vadd.f32 %v1128_v2, %v1037_v63  ;;  %v4008_v63 = vld [vmem:[%s4737_s3 + $0x30] sm:$0xff]  ;;  %v4013_v2 = vld [vmem:[%s4737_s3 + $0x38] sm:$0xff] }
 0x299   : > { %4798 = vst [vmem:[#allocation23_spill] sm:$0xff] %v4008_v63  ;;  %1404 = vmatpush.msrb.mxu1 %v4013_v2  ;;  %1384 = vmatpush.msrb.mxu0 %v4008_v63 }
 0x29a   : > { %v2720_v46 = vmul.f32 -1.442695, %v1151_v40  ;;  %v4018_v40 = vld [vmem:[%s4738_s4 + $0x18] sm:$0xff] }
 0x29b   : > { %1480 = vmatpush.msrb.mxu2 %v4018_v40 }
 0x29c   : > { %2852 = vpow2.f32 %v2720_v46  ;;  %v4027_v46 = vld [vmem:[%s4737_s3 + $0x20] sm:$0xff] }
 0x29d   : > { %v1148_v55 = vpop.f32.mrf.mxu2  ;;  %4799 = vst [vmem:[#allocation24_spill] sm:$0xff] %v4027_v46  ;;  %1385 = vmatpush.msrb.mxu0 %v4027_v46  ;;  %v4075_v46 = vld [vmem:[%s4738_s4] sm:$0xff] }
 0x29e   : > { %v1171_v3 = vadd.f32 %v1148_v55, %v1057_v8  ;;  %v4032_v8 = vld [vmem:[%s4737_s3 + $0x28] sm:$0xff]  ;;  %v4037_v55 = vld [vmem:[%s4738_s4 + $0x10] sm:$0xff] }
 0x29f   : > { %1405 = vmatpush.msrb.mxu1 %v4032_v8  ;;  %1481 = vmatpush.msrb.mxu2 %v4037_v55 }
 0x2a0   : > { %v2721_v34 = vmul.f32 -1.442695, %v1171_v3  ;;  %v4045_v3 = vld [vmem:[%s4737_s3 + $0x10] sm:$0xff] }
 0x2a1   : > { %4800 = vst [vmem:[#allocation25_spill] sm:$0xff] %v4045_v3  ;;  %1386 = vmatpush.msrb.mxu0 %v4045_v3 }
 0x2a2   : > { %v2853_v42 = vpop.eup %2852  ;;  %2854 = vpow2.f32 %v2721_v34  ;;  %v4050_v34 = vld [vmem:[%s4737_s3 + $0x18] sm:$0xff] }
 0x2a3   : > { %v4002_v47 = vadd.f32 1.0, %v2853_v42  ;;  %v4055_v42 = vld [vmem:[%s4738_s4 + $0x8] sm:$0xff]  ;;  %1406 = vmatpush.msrb.mxu1 %v4050_v34  ;;  %1387 = vmatpush.msrb.mxu0 %v4065_v27  ;;  %v1224_v27 = vpop.f32.mrf.mxu3 }
 0x2a4   : > { %1482 = vmatpush.msrb.mxu2 %v4055_v42 }
 0x2a5   : > { %2856 = vrcp.f32 %v4002_v47  ;;  %1407 = vmatpush.msrb.mxu1 %v4070_v16  ;;  %1653 = vmatpush.msra.mxu0 %v3787_v59  ;;  %v1167_v5 = vand.u32 2147483648, %v4002_v47  ;;  %v1165_v38 = vand.u32 2147483647, %v4002_v47  ;;  %v2734_v59 = vld [vmem:[%s3181_s11 + $0x14] sm:$0xf]  ;;  %vm1161_vm9 = vweird.f32 %v4002_v47  ;;  %s2564_s11 = scalar_lea.hbm %s4742_s8, %s3174_s13 }
 0x2a6   : > { %1483 = vmatpush.msrb.mxu2 %v4075_v46  ;;  %1770 = vperm.xlu2 %2830, %v2734_v59   ;;  %s4693_s14 = sshll.u32 %s2564_s11, 4  ;;  %s2568_s14 = int_to_ptr.hbm [resolvable:$true] %s4693_s14 }
 0x2a7   : > { %1729 = vmatpush.msra.mxu1 %v3792_v62  ;;  %1654 = vmatpush.msra.mxu0 %v3808_v7  ;;  %vm1166_vm11 = vcmp.eq.f32.partialorder %v1165_v38, 8.507059e+37  ;;  %s2957_s13 = sshra.s32 %s2568_s14, 4  ;;  %s2958_s13 = int_to_ptr.hbm [resolvable:$true] %s2957_s13 }
 0x2a8   : > { %v2855_v63 = vpop.eup %2854  ;;  %1814 = vmatpush.msra.mxu2 %v3724_v9  ;;  %s2959_s22 = scalar_lea.hbm %s2958_s13, 32  ;;  %p2964_p9 = scmp.lt.s32.totalorder %s2958_s13, %s4742_s8 }
 0x2a9   : > { %v4059_v33 = vadd.f32 1.0, %v2855_v63  ;;  %1730 = vmatpush.msra.mxu1 %v3813_v10  ;;  %1655 = vmatpush.msra.mxu0 %v3826_v28  ;;  %v1225_v28 = vadd.f32 %v3648_v29, %v1224_v27  ;;  %p2960_p6 = scmp.ne.s32.totalorder %s2958_s13, %s2959_s22  ;;  %p2965_p10 = scmp.lt.s32.totalorder %s2963_s25, %s2959_s22 }
 0x2aa   : > { %1815 = vmatpush.msra.mxu2 %v3728_v58 }
 0x2ab   : > { %v2857_v63 = vpop.eup %2856  ;;  %2858 = vrcp.f32 %v4059_v33  ;;  %1731 = vmatpush.msra.mxu1 %v3831_v11  ;;  %1656 = vmatpush.msra.mxu0 %v3844_v57  ;;  %v1187_v59 = vand.u32 2147483648, %v4059_v33  ;;  %vm1181_vm13 = vweird.f32 %v4059_v33  ;;  %p2961_p7 = pnand %p2960_p6, %p3122_p5  ;;  %p2966_p12 = por %p2965_p10, %p2964_p9 }
 0x2ac   : > { %v1157_v41 = vmul.f32 %v2857_v63, %v4002_v47  ;;  %vm1162_vm8 = vweird.f32 %v2857_v63  ;;  %1816 = vmatpush.msra.mxu2 %v3732_v61  ;;  %v1077_v61 = vadd.f32 %v3796_v1, %v3652_v45 }
 0x2ad   : > { %1732 = vmatpush.msra.mxu1 %v3849_v13  ;;  %vm1163_vm10 = vmor %vm1161_vm9, %vm1162_vm8  ;;  %1657 = vmatpush.msra.mxu0 %v3862_v14  ;;  %p2962_p8 = pneg %p2961_p7 }
 0x2ae   : > { %v1158_v3 = vsub.f32 1.0, %v1157_v41  ;;  %1817 = vmatpush.msra.mxu2 %v3738_v22 }
 0x2af   : > { %1733 = vmatpush.msra.mxu1 %v3867_v15  ;;  %1658 = vmatpush.msra.mxu0 %v3880_v17  ;;  %p2967_p13 = pnand %p2966_p12, %p2962_p8 }
 0x2b0   : > { %v1159_v31 = vmul.f32 %v2857_v63, %v1158_v3  ;;  %v1168_v3 = vor.u32 1.1754944e-38, %v1167_v5 }
 0x2b1   : > { %v2859_v49 = vpop.eup %2858  ;;  %1734 = vmatpush.msra.mxu1 %v3885_v37  ;;  %1659 = vmatpush.msra.mxu0 %v3901_v35 }
 0x2b2   : > { %v1177_v9 = vmul.f32 %v2859_v49, %v4059_v33  ;;  %v1160_v41 = vadd.f32 %v2857_v63, %v1159_v31  ;;  %vm1182_vm12 = vweird.f32 %v2859_v49 }
 0x2b3   : > { %1735 = vmatpush.msra.mxu1 %v3906_v19  ;;  %1660 = vmatpush.msra.mxu0 %v3919_v43  ;;  %vm1183_vm14 = vmor %vm1181_vm13, %vm1182_vm12 }
 0x2b4   : > { %v1178_v58 = vsub.f32 1.0, %v1177_v9  ;;  %v1164_v7 = vsel %vm1163_vm10, %v2857_v63, %v1160_v41 }
 0x2b5   : > { %v1169_v51 = vsel %vm1166_vm11, %v1168_v3, %v1164_v7  ;;  %1736 = vmatpush.msra.mxu1 %v3924_v6  ;;  %1661 = vmatpush.msra.mxu0 %v3937_v12 }
 0x2b6   : > { %v1227_v31 = vmul.f32 %v1225_v28, %v1169_v51  ;;  %v1179_v5 = vmul.f32 %v2859_v49, %v1178_v58  ;;  %v1185_v51 = vand.u32 2147483647, %v4059_v33  ;;  %v1188_v28 = vor.u32 1.1754944e-38, %v1187_v59  ;;  %v4807_v59 = vld [vmem:[#allocation19_spill] sm:$0xff] }
 0x2b7   : > { %1737 = vmatpush.msra.mxu1 %v3942_v52  ;;  %1662 = vmatpush.msra.mxu0 %v3957_v0 }
 0x2b8   : > { %v1228_v38 = vadd.f32 %v1227_v31, %v1077_v61  ;;  %v1180_v22 = vadd.f32 %v2859_v49, %v1179_v5  ;;  %vm1186_vm15 = vcmp.eq.f32.partialorder %v1185_v51, 8.507059e+37  ;;  %v4805_v31 = vld [vmem:[#allocation17_spill] sm:$0xff]  ;;  %v4808_v51 = vld [vmem:[#allocation20_spill] sm:$0xff] }
 0x2b9   : > { %1738 = vmatpush.msra.mxu1 %v3962_v24  ;;  %1663 = vmatpush.msra.mxu0 %v3975_v30 }
 0x2ba   : > { %2860 = vtanh.f32 %v1228_v38  ;;  %v1184_v1 = vsel %vm1183_vm14, %v2859_v49, %v1180_v22  ;;  %v1249_v49 = vpop.permute.xlu1 %1248  ;;  %v4806_v22 = vld [vmem:[#allocation18_spill] sm:$0xff] }
 0x2bb   : > { %1739 = vmatpush.msra.mxu1 %v3980_v32  ;;  %v1189_v33 = vsel %vm1186_vm15, %v1188_v28, %v1184_v1  ;;  %1664 = vmatpush.msra.mxu0 %v3993_v36  ;;  %v4809_v1 = vld [vmem:[#allocation21_spill] sm:$0xff] }
 0x2bd   : > { %1740 = vmatpush.msra.mxu1 %v3998_v39  ;;  %1665 = vmatpush.msra.mxu0 %v4013_v2 }
 0x2bf   : > { %1741 = vmatpush.msra.mxu1 %v4018_v40  ;;  %1666 = vmatpush.msra.mxu0 %v4032_v8 }
 0x2c0   : > { %v2861_v7 = vpop.eup %2860 }
 0x2c1   : > { %v1230_v27 = vsub.f32 %v3716_v20, %v2861_v7  ;;  %1742 = vmatpush.msra.mxu1 %v4037_v55  ;;  %1667 = vmatpush.msra.mxu0 %v4050_v34 }
 0x2c3   : > { %v1231_v47 = vmul.f32 %v1230_v27, %v1189_v33  ;;  %1743 = vmatpush.msra.mxu1 %v4055_v42  ;;  %1668 = vmatpush.msra.mxu0 %v4070_v16  ;;  %v4810_v33 = vld [vmem:[#allocation22_spill] sm:$0xff] }
 0x2c5   : > { %v1232_v63 = vadd.f32 %v2861_v7, %v1231_v47  ;;  %1744 = vmatpush.msra.mxu1 %v4075_v46 }
 0x2c7   : > { %v1234_v20 = vrot.slane %v1232_v63, 1  ;;  %v1235_v9 = vrot.slane %v1232_v63, 2  ;;  %v1236_v41 = vrot.slane %v1232_v63, 3  ;;  %1240 = vst [vmem:[%s3183_s17 + $0x2] sm:$0x1] %v1232_v63  ;;  %v4128_v3 = vmul.f32 %v1249_v49, %v1232_v63  ;;  %v4811_v63 = vld [vmem:[#allocation23_spill] sm:$0xff] }
 0x2c8   : > { %v4812_v49 = vld [vmem:[#allocation24_spill] sm:$0xff] }
 0x2c9   : > { %1241 = vst [vmem:[%s3183_s17 + $0xa] sm:$0x1] %v1234_v20  ;;  %1388 = vmatmul.f32.vlgmr.msrb.gmra.mxu0 %v4128_v3  ;;  %1408 = vmatmul.f32.vlgmr.msrb.gmra.mxu1 %v4128_v3  ;;  %v4813_v20 = vld [vmem:[#allocation25_spill] sm:$0xff] }
 0x2ca   : > { %1242 = vst [vmem:[%s3183_s17 + $0x12] sm:$0x1] %v1235_v9  ;;  %1484 = vmatmul.f32.vlgmr.msrb.gmra.mxu2 %v4128_v3  ;;  %1990 = vmatpush.msrb.mxu0 %v3792_v62  ;;  %v1513_v62 = vld [vmem:[%s3167_s24 + $0x4] sm:$0x1] }
 0x2cb   : > { %1243 = vst [vmem:[%s3183_s17 + $0x1a] sm:$0x1] %v1236_v41  ;;  %1834 = vmatpush.msrb.mxu2 %v3741_v23  ;;  %v1297_v23 = vpop.f32.mrf.mxu0  ;;  %v4814_v41 = vld [vmem:[#allocation26_spill] sm:$0xff] }
 0x2cc   : > { %1991 = vmatpush.msrb.mxu0 %v3813_v10  ;;  %v1516_v10 = vld [vmem:[%s3167_s24 + $0x1c] sm:$0x1] }
 0x2cd   : > { %1835 = vmatpush.msrb.mxu2 %v3747_v26  ;;  %v1514_v26 = vld [vmem:[%s3167_s24 + $0xc] sm:$0x1] }
 0x2ce   : > { %1992 = vmatpush.msrb.mxu0 %v3831_v11 }
 0x2cf   : > { %1836 = vmatpush.msrb.mxu2 %v3754_v18  ;;  %v1515_v18 = vld [vmem:[%s3167_s24 + $0x14] sm:$0x1] }
 0x2d0   : > { %1993 = vmatpush.msrb.mxu0 %v3849_v13  ;;  %v1535_v11 = vrot.slane %v1515_v18, 6  ;;  %v4815_v18 = vld [vmem:[#allocation13_spill] sm:$0xff] }
 0x2d1   : > { %1837 = vmatpush.msrb.mxu2 %v3761_v21  ;;  %v1533_v21 = vrot.slane %v1514_v26, 7 }
 0x2d2   : > { %1994 = vmatpush.msrb.mxu0 %v3867_v15  ;;  %v1537_v15 = vrot.slane %v1516_v10, 5 }
 0x2d3   : > { %v1534_v13 = vsel %vm486_vm0, %v1533_v21, %v1513_v62  ;;  %v4816_v62 = vld [vmem:[#allocation14_spill] sm:$0xff] }
 0x2d4   : > { %1995 = vmatpush.msrb.mxu0 %v3885_v37  ;;  %v1536_v37 = vsel %vm489_vm1, %v1535_v11, %v1534_v13 }
 0x2d6   : > { %1996 = vmatpush.msrb.mxu0 %v3906_v19  ;;  %v1538_v19 = vsel %vm492_vm2, %v1537_v15, %v1536_v37  ;;  %v4817_v37 = vld [vmem:[#allocation15_spill] sm:$0xff] }
 0x2d7   : > { %2729 = vmatmul.msk.f32.vlgmr.msra.gmra.mxu3 %vm494_vm3, %v1538_v19 }
 0x2d8   : > { %1997 = vmatpush.msrb.mxu0 %v3924_v6  ;;  %v1317_v6 = vpop.f32.mrf.mxu0  ;;  %1593 = vmatpush.msra.mxu3 %v3764_v44 }
 0x2da   : > { %1998 = vmatpush.msrb.mxu0 %v3942_v52  ;;  %1594 = vmatpush.msra.mxu3 %v3771_v50 }
 0x2dc   : > { %1999 = vmatpush.msrb.mxu0 %v3962_v24  ;;  %1595 = vmatpush.msra.mxu3 %v3774_v53  ;;  %v4802_v24 = vld [vmem:[#allocation12_spill] sm:$0xff] }
 0x2de   : > { %2000 = vmatpush.msrb.mxu0 %v3980_v32  ;;  %1596 = vmatpush.msra.mxu3 %v3777_v56  ;;  %v1298_v32 = vadd.f32 %v1297_v23, %v4802_v24 }
 0x2df   : > { %2730 = vmatmul.msk.f32.vlgmr.msrb.gmra.mxu3 %vm494_vm3, %v1538_v19 }
 0x2e0   : > { %2001 = vmatpush.msrb.mxu0 %v3998_v39  ;;  %v1337_v52 = vpop.f32.mrf.mxu0  ;;  %1633 = vmatpush.msrb.mxu3 %v3782_v25  ;;  %v4803_v39 = vld [vmem:[#allocation11_spill] sm:$0xff] }
 0x2e2   : > { %2002 = vmatpush.msrb.mxu0 %v4018_v40  ;;  %1634 = vmatpush.msrb.mxu3 %v3803_v4  ;;  %v1318_v40 = vadd.f32 %v1317_v6, %v4803_v39 }
 0x2e4   : > { %2003 = vmatpush.msrb.mxu0 %v4037_v55  ;;  %1635 = vmatpush.msrb.mxu3 %v3821_v48 }
 0x2e6   : > { %2004 = vmatpush.msrb.mxu0 %v4055_v42  ;;  %1636 = vmatpush.msrb.mxu3 %v3839_v54  ;;  %v4804_v42 = vld [vmem:[#allocation16_spill] sm:$0xff] }
 0x2e7   : > { %2731 = vmatmul.msk.f32.vlgmr.msra.gmra.mxu3 %vm494_vm3, %v1538_v19 }
 0x2e8   : > { %2005 = vmatpush.msrb.mxu0 %v4075_v46  ;;  %1637 = vmatpush.msrb.mxu3 %v3857_v60 }
 0x2ea   : > { %1638 = vmatpush.msrb.mxu3 %v4804_v42 }
 0x2ec   : > { %1639 = vmatpush.msrb.mxu3 %v4805_v31 }
 0x2ee   : > { %1640 = vmatpush.msrb.mxu3 %v4806_v22 }
 0x2f0   : > { %1641 = vmatpush.msrb.mxu3 %v4807_v59 }
 0x2f2   : > { %1642 = vmatpush.msrb.mxu3 %v4808_v51 }
 0x2f4   : > { %1643 = vmatpush.msrb.mxu3 %v4809_v1 }
 0x2f6   : > { %1644 = vmatpush.msrb.mxu3 %v4810_v33 }
 0x2f8   : > { %1645 = vmatpush.msrb.mxu3 %v4811_v63 }
 0x2fa   : > { %1646 = vmatpush.msrb.mxu3 %v4812_v49 }
 0x2fc   : > { %1647 = vmatpush.msrb.mxu3 %v4813_v20 }
 0x2fe   : > { %1648 = vmatpush.msrb.mxu3 %v4814_v41 }
 0x300   : > { %1914 = vmatpush.msra.mxu3 %v4815_v18  ;;  %v1777_v18 = vld [vmem:[%s3167_s24 + $0x1d] sm:$0x1] }
 0x302   : > { %1915 = vmatpush.msra.mxu3 %v4816_v62  ;;  %v1798_v62 = vrot.slane %v1777_v18, 5  ;;  %v2036_v18 = vld [vmem:[%s3167_s24 + $0xe] sm:$0x1] }
 0x304   : > { %1916 = vmatpush.msra.mxu3 %v4817_v37 }
 0x306   : > { %1917 = vmatpush.msra.mxu3 %v3844_v57 }
 0x308   : > { %1918 = vmatpush.msra.mxu3 %v3862_v14 }
 0x30a   : > { %1919 = vmatpush.msra.mxu3 %v3880_v17 }
 0x30c   : > { %1920 = vmatpush.msra.mxu3 %v3901_v35 }
 0x30e   : > { %1921 = vmatpush.msra.mxu3 %v3919_v43 }
 0x310   : > { %1922 = vmatpush.msra.mxu3 %v3937_v12 }
 0x312   : > { %1923 = vmatpush.msra.mxu3 %v3957_v0  ;;  %v1510_v0 = vpop.permute.xlu2 %1509 }
 0x314   : > { %1924 = vmatpush.msra.mxu3 %v3975_v30 }
 0x316   : > { %1925 = vmatpush.msra.mxu3 %v3993_v36 }
 0x318   : > { %1926 = vmatpush.msra.mxu3 %v4013_v2  ;;  %v1775_v2 = vld [vmem:[%s3167_s24 + $0xd] sm:$0x1] }
 0x31a   : > { %1927 = vmatpush.msra.mxu3 %v4032_v8  ;;  %v1776_v8 = vld [vmem:[%s3167_s24 + $0x15] sm:$0x1] }
 0x31c   : > { %1928 = vmatpush.msra.mxu3 %v4050_v34 }
 0x31e   : > { %1929 = vmatpush.msra.mxu3 %v4070_v16 }
 0x346   : > { %v1389_v46 = vpop.f32.mrf.mxu0  ;;  %v1409_v55 = vpop.f32.mrf.mxu1 }
 0x347   : > { %v1412_v58 = vadd.f32 %v1389_v46, %v1298_v32  ;;  %v1432_v61 = vadd.f32 %v1409_v55, %v1318_v40 }
 0x349   : > { %v2726_v5 = vmul.f32 -1.442695, %v1412_v58  ;;  %v2727_v38 = vmul.f32 -1.442695, %v1432_v61  ;;  %v1338_v61 = vadd.f32 %v1337_v52, %v3652_v45 }
 0x34b   : > { %2862 = vpow2.f32 %v2726_v5 }
 0x34c   : > { %2864 = vpow2.f32 %v2727_v38 }
 0x34d   : > { %v1485_v19 = vpop.f32.mrf.mxu2 }
 0x34e   : > { %v1486_v55 = vadd.f32 %v3648_v29, %v1485_v19 }
 0x351   : > { %v2863_v7 = vpop.eup %2862 }
 0x352   : > { %v2865_v28 = vpop.eup %2864  ;;  %v1416_v27 = vadd.f32 1.0, %v2863_v7 }
 0x353   : > { %v1436_v47 = vadd.f32 1.0, %v2865_v28 }
 0x354   : > { %2866 = vrcp.f32 %v1416_v27  ;;  %v1428_v11 = vand.u32 2147483648, %v1416_v27  ;;  %v1426_v15 = vand.u32 2147483647, %v1416_v27  ;;  %vm1422_vm5 = vweird.f32 %v1416_v27 }
 0x355   : > { %2868 = vrcp.f32 %v1436_v47  ;;  %v1448_v28 = vand.u32 2147483648, %v1436_v47  ;;  %vm1442_vm9 = vweird.f32 %v1436_v47  ;;  %v1446_v29 = vand.u32 2147483647, %v1436_v47 }
 0x356   : > { %v1429_v40 = vor.u32 1.1754944e-38, %v1428_v11  ;;  %vm1427_vm7 = vcmp.eq.f32.partialorder %v1426_v15, 8.507059e+37 }
 0x357   : > { %v1449_v52 = vor.u32 1.1754944e-38, %v1448_v28  ;;  %vm1447_vm11 = vcmp.eq.f32.partialorder %v1446_v29, 8.507059e+37 }
 0x35a   : > { %v2867_v9 = vpop.eup %2866  ;;  %v1558_v36 = vpop.f32.mrf.mxu3 }
 0x35b   : > { %v2869_v23 = vpop.eup %2868  ;;  %v1418_v26 = vmul.f32 %v2867_v9, %v1416_v27  ;;  %vm1423_vm4 = vweird.f32 %v2867_v9 }
 0x35c   : > { %v1438_v10 = vmul.f32 %v2869_v23, %v1436_v47  ;;  %vm1424_vm6 = vmor %vm1422_vm5, %vm1423_vm4  ;;  %vm1443_vm8 = vweird.f32 %v2869_v23 }
 0x35d   : > { %v1419_v21 = vsub.f32 1.0, %v1418_v26  ;;  %vm1444_vm10 = vmor %vm1442_vm9, %vm1443_vm8  ;;  %v1774_v26 = vld [vmem:[%s3167_s24 + $0x5] sm:$0x1] }
 0x35e   : > { %v1439_v32 = vsub.f32 1.0, %v1438_v10 }
 0x35f   : > { %v1420_v13 = vmul.f32 %v2867_v9, %v1419_v21  ;;  %v1796_v21 = vrot.slane %v1776_v8, 6 }
 0x360   : > { %v1440_v38 = vmul.f32 %v2869_v23, %v1439_v32 }
 0x361   : > { %v1421_v6 = vadd.f32 %v2867_v9, %v1420_v13 }
 0x362   : > { %v1441_v57 = vadd.f32 %v2869_v23, %v1440_v38  ;;  %v1578_v13 = vpop.f32.mrf.mxu3 }
 0x363   : > { %v1425_v46 = vsel %vm1424_vm6, %v2867_v9, %v1421_v6  ;;  %v1579_v15 = vadd.f32 %v1578_v13, %v4803_v39 }
 0x364   : > { %v1430_v58 = vsel %vm1427_vm7, %v1429_v40, %v1425_v46  ;;  %v1445_v14 = vsel %vm1444_vm10, %v2869_v23, %v1441_v57  ;;  %v1794_v23 = vrot.slane %v1775_v2, 7  ;;  %v2042_v2 = vld [vmem:[#allocation4 + $0x18] sm:$0xff] }
 0x365   : > { %v1488_v5 = vmul.f32 %v1486_v55, %v1430_v58  ;;  %v1450_v43 = vsel %vm1447_vm11, %v1449_v52, %v1445_v14 }
 0x366   : > { %v1795_v34 = vsel %vm486_vm0, %v1794_v23, %v1774_v26  ;;  %v2039_v23 = vld [vmem:[#allocation4] sm:$0xff]  ;;  %v2049_v26 = vld [vmem:[#allocation4 + $0x50] sm:$0xff] }
 0x367   : > { %v1489_v7 = vadd.f32 %v1488_v5, %v1338_v61  ;;  %v1797_v10 = vsel %vm489_vm1, %v1796_v21, %v1795_v34  ;;  %v2046_v21 = vld [vmem:[#allocation4 + $0x38] sm:$0xff]  ;;  %v2037_v34 = vld [vmem:[%s3167_s24 + $0x16] sm:$0x1] }
 0x368   : > { %v1799_v11 = vsel %vm492_vm2, %v1798_v62, %v1797_v10  ;;  %v2055_v62 = vrot.slane %v2036_v18, 7  ;;  %v2035_v10 = vld [vmem:[%s3167_s24 + $0x6] sm:$0x1]  ;;  %v2057_v13 = vrot.slane %v2037_v34, 6 }
 0x369   : > { %2870 = vtanh.f32 %v1489_v7  ;;  %2735 = vmatmul.msk.f32.vlgmr.msra.gmra.mxu2 %vm494_vm3, %v1799_v11  ;;  %v4491_v18 = vld [vmem:[%s4738_s4 + $0x28] sm:$0xff] }
 0x36a   : > { %1854 = vmatpush.msra.mxu2 %v3764_v44  ;;  %v1598_v16 = vpop.f32.mrf.mxu3  ;;  %v4504_v34 = vld [vmem:[%s4737_s3 + $0x48] sm:$0xff] }
 0x36b   : > { %v1599_v58 = vadd.f32 %v1598_v16, %v3652_v45  ;;  %v2043_v16 = vld [vmem:[#allocation4 + $0x20] sm:$0xff] }
 0x36c   : > { %1855 = vmatpush.msra.mxu2 %v3771_v50  ;;  %v1559_v50 = vadd.f32 %v1558_v36, %v4802_v24  ;;  %v2045_v36 = vld [vmem:[#allocation4 + $0x30] sm:$0xff] }
 0x36e   : > { %1856 = vmatpush.msra.mxu2 %v3774_v53 }
 0x36f   : > { %v2871_v17 = vpop.eup %2870 }
 0x370   : > { %v1491_v35 = vsub.f32 %v4128_v3, %v2871_v17  ;;  %1857 = vmatpush.msra.mxu2 %v3777_v56 }
 0x371   : > { %2736 = vmatmul.msk.f32.vlgmr.msrb.gmra.mxu2 %vm494_vm3, %v1799_v11 }
 0x372   : > { %v1492_v12 = vmul.f32 %v1491_v35, %v1450_v43  ;;  %1894 = vmatpush.msrb.mxu2 %v3782_v25 }
 0x374   : > { %v1493_v27 = vadd.f32 %v2871_v17, %v1492_v12  ;;  %1895 = vmatpush.msrb.mxu2 %v3803_v4 }
 0x376   : > { %v1495_v47 = vrot.slane %v1493_v27, 1  ;;  %v1496_v30 = vrot.slane %v1493_v27, 2  ;;  %v1497_v9 = vrot.slane %v1493_v27, 3  ;;  %1501 = vst [vmem:[%s3183_s17 + $0x3] sm:$0x1] %v1493_v27  ;;  %v4211_v3 = vmul.f32 %v1510_v0, %v1493_v27  ;;  %1896 = vmatpush.msrb.mxu2 %v3821_v48  ;;  %v1771_v27 = vpop.permute.xlu2 %1770 }
 0x378   : > { %1502 = vst [vmem:[%s3183_s17 + $0xb] sm:$0x1] %v1495_v47  ;;  %1649 = vmatmul.f32.vlgmr.msrb.gmra.mxu3 %v4211_v3  ;;  %1669 = vmatmul.f32.vlgmr.msra.gmra.mxu0 %v4211_v3 }
 0x379   : > { %1503 = vst [vmem:[%s3183_s17 + $0x13] sm:$0x1] %v1496_v30  ;;  %1745 = vmatmul.f32.vlgmr.msra.gmra.mxu1 %v4211_v3  ;;  %1897 = vmatpush.msrb.mxu2 %v3839_v54 }
 0x37a   : > { %1504 = vst [vmem:[%s3183_s17 + $0x1b] sm:$0x1] %v1497_v9  ;;  %2737 = vmatmul.msk.f32.vlgmr.msra.gmra.mxu2 %vm494_vm3, %v1799_v11  ;;  %v2038_v11 = vld [vmem:[%s3167_s24 + $0x1e] sm:$0x1] }
 0x37b   : > { %1898 = vmatpush.msrb.mxu2 %v3857_v60 }
 0x37d   : > { %1899 = vmatpush.msrb.mxu2 %v4804_v42 }
 0x37f   : > { %1900 = vmatpush.msrb.mxu2 %v4805_v31 }
 0x381   : > { %1901 = vmatpush.msrb.mxu2 %v4806_v22 }
 0x383   : > { %1902 = vmatpush.msrb.mxu2 %v4807_v59 }
 0x385   : > { %1903 = vmatpush.msrb.mxu2 %v4808_v51 }
 0x387   : > { %1904 = vmatpush.msrb.mxu2 %v4809_v1 }
 0x389   : > { %1905 = vmatpush.msrb.mxu2 %v4810_v33 }
 0x38b   : > { %1906 = vmatpush.msrb.mxu2 %v4811_v63 }
 0x38d   : > { %1907 = vmatpush.msrb.mxu2 %v4812_v49  ;;  %v4256_v49 = vld [vmem:[%s4740_s6] ss:$0 sm:$0xff] }
 0x38f   : > { %1908 = vmatpush.msrb.mxu2 %v4813_v20 }
 0x391   : > { %1909 = vmatpush.msrb.mxu2 %v4814_v41 }
 0x3ec   : > { %v4270_v8 = vpop.f32.mrf.mxu2 }
 0x3f5   : > { %v1670_v37 = vpop.f32.mrf.mxu0 }
 0x3f6   : > { %v1693_v19 = vadd.f32 %v1670_v37, %v1579_v15  ;;  %v1746_v33 = vpop.f32.mrf.mxu1  ;;  %v2056_v15 = vsel %vm486_vm0, %v2055_v62, %v2035_v10  ;;  %v2059_v37 = vrot.slane %v2038_v11, 5  ;;  %v4509_v62 = vld [vmem:[%s4738_s4 + $0x20] sm:$0xff] }
 0x3f7   : > { %v1747_v20 = vadd.f32 %v4256_v49, %v1746_v33  ;;  %v4351_v33 = vld [vmem:[%s4737_s3 + $0xc0] sm:$0xff] }
 0x3f8   : > { %v2733_v44 = vmul.f32 -1.442695, %v1693_v19  ;;  %v2058_v19 = vsel %vm489_vm1, %v2057_v13, %v2056_v15  ;;  %v4522_v15 = vld [vmem:[%s4737_s3 + $0x38] sm:$0xff] }
 0x3fa   : > { %2872 = vpow2.f32 %v2733_v44  ;;  %v2060_v44 = vsel %vm492_vm2, %v2059_v37, %v2058_v19  ;;  %v4527_v37 = vld [vmem:[%s4738_s4 + $0x18] sm:$0xff] }
 0x3fb   : > { %v1650_v53 = vpop.f32.mrf.mxu3 }
 0x3fc   : > { %v1673_v56 = vadd.f32 %v1650_v53, %v1559_v50  ;;  %v2040_v50 = vld [vmem:[#allocation4 + $0x8] sm:$0xff]  ;;  %v4280_v53 = vld [vmem:[#allocation4 + $0x58] sm:$0xff] }
 0x3fe   : > { %v2732_v25 = vmul.f32 -1.442695, %v1673_v56  ;;  %v1839_v56 = vpop.f32.mrf.mxu2 }
 0x400   : > { %2874 = vpow2.f32 %v2732_v25  ;;  %v2873_v4 = vpop.eup %2872  ;;  %v4283_v25 = vld [vmem:[#allocation4 + $0x40] sm:$0xff] }
 0x401   : > { %v1697_v54 = vadd.f32 1.0, %v2873_v4  ;;  %v4286_v4 = vld [vmem:[#allocation4 + $0x28] sm:$0xff] }
 0x403   : > { %v1709_v57 = vand.u32 2147483648, %v1697_v54  ;;  %vm1703_vm5 = vweird.f32 %v1697_v54  ;;  %v1707_v28 = vand.u32 2147483647, %v1697_v54 }
 0x405   : > { %v1710_v17 = vor.u32 1.1754944e-38, %v1709_v57  ;;  %vm1708_vm7 = vcmp.eq.f32.partialorder %v1707_v28, 8.507059e+37  ;;  %v4409_v28 = vld [vmem:[%s4737_s3 + $0x90] sm:$0xff] }
 0x406   : > { %v2875_v48 = vpop.eup %2874 }
 0x407   : > { %v1677_v60 = vadd.f32 1.0, %v2875_v48  ;;  %v4289_v48 = vld [vmem:[#allocation4 + $0x10] sm:$0xff] }
 0x409   : > { %2876 = vrcp.f32 %v1677_v60  ;;  %v1689_v1 = vand.u32 2147483648, %v1677_v60  ;;  %v1687_v32 = vand.u32 2147483647, %v1677_v60  ;;  %vm1683_vm13 = vweird.f32 %v1677_v60 }
 0x40a   : > { %2878 = vrcp.f32 %v1697_v54 }
 0x40b   : > { %v1690_v46 = vor.u32 1.1754944e-38, %v1689_v1  ;;  %vm1688_vm15 = vcmp.eq.f32.partialorder %v1687_v32, 8.507059e+37  ;;  %v4333_v1 = vld [vmem:[%s4737_s3 + $0xd0] sm:$0xff]  ;;  %v4343_v32 = vld [vmem:[%s4738_s4 + $0x68] sm:$0xff] }
 0x40f   : > { %v2877_v42 = vpop.eup %2876 }
 0x410   : > { %v2879_v31 = vpop.eup %2878  ;;  %v1679_v22 = vmul.f32 %v2877_v42, %v1677_v60  ;;  %vm1684_vm12 = vweird.f32 %v2877_v42  ;;  %v4299_v60 = vld [vmem:[%s4737_s3 + $0xf8] sm:$0xff] }
 0x411   : > { %v1699_v51 = vmul.f32 %v2879_v31, %v1697_v54  ;;  %vm1685_vm14 = vmor %vm1683_vm13, %vm1684_vm12  ;;  %vm1704_vm4 = vweird.f32 %v2879_v31  ;;  %v4294_v54 = vld [vmem:[%s4737_s3 + $0xf0] sm:$0xff]  ;;  %2175 = vmatpush.msra.mxu2 %v4299_v60 }
 0x412   : > { %v1680_v59 = vsub.f32 1.0, %v1679_v22  ;;  %vm1705_vm6 = vmor %vm1703_vm5, %vm1704_vm4  ;;  %v4315_v22 = vld [vmem:[%s4737_s3 + $0xe0] sm:$0xff] }
 0x413   : > { %v1700_v63 = vsub.f32 1.0, %v1699_v51  ;;  %v4325_v51 = vld [vmem:[%s4738_s4 + $0x70] sm:$0xff] }
 0x414   : > { %v1681_v6 = vmul.f32 %v2877_v42, %v1680_v59  ;;  %v4320_v59 = vld [vmem:[%s4737_s3 + $0xe8] sm:$0xff] }
 0x415   : > { %v1701_v5 = vmul.f32 %v2879_v31, %v1700_v63  ;;  %2176 = vmatpush.msra.mxu2 %v4320_v59  ;;  %v4361_v63 = vld [vmem:[%s4738_s4 + $0x60] sm:$0xff] }
 0x416   : > { %v1682_v40 = vadd.f32 %v2877_v42, %v1681_v6  ;;  %v4338_v6 = vld [vmem:[%s4737_s3 + $0xd8] sm:$0xff] }
 0x417   : > { %v1702_v7 = vadd.f32 %v2879_v31, %v1701_v5  ;;  %2177 = vmatpush.msra.mxu2 %v4338_v6  ;;  %v1820_v5 = vadd.f32 %v4270_v8, %v4802_v24  ;;  %v4473_v8 = vld [vmem:[%s4738_s4 + $0x30] sm:$0xff] }
 0x418   : > { %v1686_v41 = vsel %vm1685_vm14, %v2877_v42, %v1682_v40  ;;  %v4304_v42 = vld [vmem:[%s4738_s4 + $0x78] sm:$0xff]  ;;  %v4356_v40 = vld [vmem:[%s4737_s3 + $0xc8] sm:$0xff] }
 0x419   : > { %v1691_v55 = vsel %vm1688_vm15, %v1690_v46, %v1686_v41  ;;  %v1706_v29 = vsel %vm1705_vm6, %v2879_v31, %v1702_v7  ;;  %v4308_v31 = vpop.f32.mrf.mxu2  ;;  %2251 = vmatpush.msrb.mxu3 %v4304_v42  ;;  %2178 = vmatpush.msra.mxu2 %v4356_v40  ;;  %v4369_v46 = vld [vmem:[%s4737_s3 + $0xb0] sm:$0xff]  ;;  %v4379_v41 = vld [vmem:[%s4738_s4 + $0x58] sm:$0xff] }
 0x41a   : > { %v1749_v61 = vmul.f32 %v1747_v20, %v1691_v55  ;;  %v1711_v35 = vsel %vm1708_vm7, %v1710_v17, %v1706_v29  ;;  %v4374_v20 = vld [vmem:[%s4737_s3 + $0xb8] sm:$0xff]  ;;  %v4387_v55 = vld [vmem:[%s4737_s3 + $0xa0] sm:$0xff] }
 0x41b   : > { %2252 = vmatpush.msrb.mxu3 %v4325_v51  ;;  %2179 = vmatpush.msra.mxu2 %v4374_v20  ;;  %v4414_v29 = vld [vmem:[%s4737_s3 + $0x98] sm:$0xff] }
 0x41c   : > { %v1750_v38 = vadd.f32 %v1749_v61, %v1599_v58  ;;  %v4392_v58 = vld [vmem:[%s4737_s3 + $0xa8] sm:$0xff]  ;;  %v4397_v61 = vld [vmem:[%s4738_s4 + $0x50] sm:$0xff] }
 0x41d   : > { %2253 = vmatpush.msrb.mxu3 %v4343_v32  ;;  %2180 = vmatpush.msra.mxu2 %v4392_v58 }
 0x41e   : > { %2880 = vtanh.f32 %v1750_v38  ;;  %v1840_v38 = vadd.f32 %v1839_v56, %v4803_v39  ;;  %v4547_v56 = vld [vmem:[%s4737_s3 + $0x20] sm:$0xff] }
 0x41f   : > { %2254 = vmatpush.msrb.mxu3 %v4361_v63  ;;  %2181 = vmatpush.msra.mxu2 %v4414_v29  ;;  %4820 = vst [vmem:[#allocation16_spill] sm:$0xff] %v4547_v56 }
 0x421   : > { %2255 = vmatpush.msrb.mxu3 %v4379_v41 }
 0x423   : > { %2256 = vmatpush.msrb.mxu3 %v4397_v61 }
 0x424   : > { %v2881_v14 = vpop.eup %2880 }
 0x425   : > { %v1752_v52 = vsub.f32 %v4211_v3, %v2881_v14  ;;  %v2048_v3 = vld [vmem:[#allocation4 + $0x48] sm:$0xff] }
 0x426   : > { %2075 = vmatpush.msrb.mxu1 %v2048_v3  ;;  %2336 = vmatpush.msra.mxu0 %v2048_v3  ;;  %v4455_v3 = vld [vmem:[%s4738_s4 + $0x38] sm:$0xff] }
 0x427   : > { %v1753_v43 = vmul.f32 %v1752_v52, %v1711_v35  ;;  %v4427_v35 = vld [vmem:[%s4737_s3 + $0x80] sm:$0xff] }
 0x428   : > { %2076 = vmatpush.msrb.mxu1 %v2045_v36  ;;  %2337 = vmatpush.msra.mxu0 %v2045_v36  ;;  %v4463_v36 = vld [vmem:[%s4737_s3 + $0x60] sm:$0xff] }
 0x429   : > { %v1754_v12 = vadd.f32 %v2881_v14, %v1753_v43  ;;  %v4419_v14 = vld [vmem:[%s4738_s4 + $0x48] sm:$0xff] }
 0x42a   : > { %2077 = vmatpush.msrb.mxu1 %v2042_v2  ;;  %2338 = vmatpush.msra.mxu0 %v2042_v2  ;;  %v4432_v43 = vld [vmem:[%s4737_s3 + $0x88] sm:$0xff] }
 0x42b   : > { %v1756_v0 = vrot.slane %v1754_v12, 1  ;;  %v1757_v47 = vrot.slane %v1754_v12, 2  ;;  %v1758_v30 = vrot.slane %v1754_v12, 3  ;;  %1762 = vst [vmem:[%s3183_s17 + $0x4] sm:$0x1] %v1754_v12  ;;  %v4262_v9 = vmul.f32 %v1771_v27, %v1754_v12  ;;  %2257 = vmatpush.msrb.mxu3 %v4419_v14  ;;  %v4437_v12 = vld [vmem:[%s4738_s4 + $0x40] sm:$0xff]  ;;  %2182 = vmatpush.msra.mxu2 %v4432_v43 }
 0x42c   : > { %2078 = vmatpush.msrb.mxu1 %v2039_v23  ;;  %2339 = vmatpush.msra.mxu0 %v2039_v23  ;;  %v4468_v2 = vld [vmem:[%s4737_s3 + $0x68] sm:$0xff]  ;;  %v4481_v23 = vld [vmem:[%s4737_s3 + $0x50] sm:$0xff] }
 0x42d   : > { %1763 = vst [vmem:[%s3183_s17 + $0xc] sm:$0x1] %v1756_v0  ;;  %1910 = vmatmul.f32.vlgmr.msrb.gmra.mxu2 %v4262_v9  ;;  %1930 = vmatmul.f32.vlgmr.msra.gmra.mxu3 %v4262_v9 }
 0x42e   : > { %1764 = vst [vmem:[%s3183_s17 + $0x14] sm:$0x1] %v1757_v47  ;;  %2006 = vmatmul.f32.vlgmr.msrb.gmra.mxu0 %v4262_v9  ;;  %2095 = vmatpush.msra.mxu1 %v2049_v26  ;;  %v4445_v47 = vld [vmem:[%s4737_s3 + $0x70] sm:$0xff] }
 0x42f   : > { %1765 = vst [vmem:[%s3183_s17 + $0x1c] sm:$0x1] %v1758_v30  ;;  %2356 = vmatpush.msrb.mxu0 %v2049_v26  ;;  %2741 = vmatmul.msk.f32.vlgmr.msrb.gmra.mxu1 %vm494_vm3, %v2060_v44  ;;  %v4450_v30 = vld [vmem:[%s4737_s3 + $0x78] sm:$0xff] }
 0x430   : > { %2096 = vmatpush.msra.mxu1 %v2046_v21  ;;  %2258 = vmatpush.msrb.mxu3 %v4437_v12  ;;  %v4486_v26 = vld [vmem:[%s4737_s3 + $0x58] sm:$0xff] }
 0x431   : > { %2357 = vmatpush.msrb.mxu0 %v2046_v21  ;;  %2183 = vmatpush.msra.mxu2 %v4450_v30  ;;  %v4499_v21 = vld [vmem:[%s4737_s3 + $0x40] sm:$0xff] }
 0x432   : > { %2097 = vmatpush.msra.mxu1 %v2043_v16  ;;  %2259 = vmatpush.msrb.mxu3 %v4455_v3  ;;  %4818 = vst [vmem:[#allocation12_spill] sm:$0xff] %v4499_v21 }
 0x433   : > { %2358 = vmatpush.msrb.mxu0 %v2043_v16  ;;  %2184 = vmatpush.msra.mxu2 %v4468_v2  ;;  %v4517_v16 = vld [vmem:[%s4737_s3 + $0x30] sm:$0xff] }
 0x434   : > { %2098 = vmatpush.msra.mxu1 %v2040_v50  ;;  %2260 = vmatpush.msrb.mxu3 %v4473_v8  ;;  %4819 = vst [vmem:[#allocation11_spill] sm:$0xff] %v4517_v16 }
 0x435   : > { %2359 = vmatpush.msrb.mxu0 %v2040_v50  ;;  %2185 = vmatpush.msra.mxu2 %v4486_v26  ;;  %v4541_v50 = vld [vmem:[%s4738_s4 + $0x10] sm:$0xff] }
 0x436   : > { %2115 = vmatpush.msrb.mxu1 %v4280_v53  ;;  %2261 = vmatpush.msrb.mxu3 %v4491_v18 }
 0x437   : > { %2742 = vmatmul.msk.f32.vlgmr.msra.gmra.mxu1 %vm494_vm3, %v2060_v44  ;;  %2186 = vmatpush.msra.mxu2 %v4504_v34 }
 0x438   : > { %2116 = vmatpush.msrb.mxu1 %v4283_v25  ;;  %2262 = vmatpush.msrb.mxu3 %v4509_v62 }
 0x439   : > { %2187 = vmatpush.msra.mxu2 %v4522_v15 }
 0x43a   : > { %2117 = vmatpush.msrb.mxu1 %v4286_v4  ;;  %2263 = vmatpush.msrb.mxu3 %v4527_v37 }
 0x43c   : > { %2118 = vmatpush.msrb.mxu1 %v4289_v48  ;;  %2264 = vmatpush.msrb.mxu3 %v4541_v50 }
 0x43e   : > { %2155 = vmatpush.msra.mxu1 %v4294_v54 }
 0x43f   : > { %2743 = vmatmul.msk.f32.vlgmr.msrb.gmra.mxu1 %vm494_vm3, %v2060_v44  ;;  %v4536_v44 = vld [vmem:[%s4737_s3 + $0x28] sm:$0xff] }
 0x440   : > { %2156 = vmatpush.msra.mxu1 %v4315_v22  ;;  %2188 = vmatpush.msra.mxu2 %v4536_v44 }
 0x442   : > { %2157 = vmatpush.msra.mxu1 %v4333_v1 }
 0x444   : > { %2158 = vmatpush.msra.mxu1 %v4351_v33 }
 0x446   : > { %2159 = vmatpush.msra.mxu1 %v4369_v46 }
 0x448   : > { %2160 = vmatpush.msra.mxu1 %v4387_v55 }
 0x44a   : > { %2161 = vmatpush.msra.mxu1 %v4409_v28 }
 0x44c   : > { %2162 = vmatpush.msra.mxu1 %v4427_v35 }
 0x44e   : > { %2163 = vmatpush.msra.mxu1 %v4445_v47 }
 0x450   : > { %2164 = vmatpush.msra.mxu1 %v4463_v36 }
 0x452   : > { %2165 = vmatpush.msra.mxu1 %v4481_v23 }
 0x454   : > { %2166 = vmatpush.msra.mxu1 %v4499_v21 }
 0x456   : > { %2167 = vmatpush.msra.mxu1 %v4517_v16 }
 0x458   : > { %2168 = vmatpush.msra.mxu1 %v4547_v56 }
 0x4b0   : > { %v1911_v7 = vpop.f32.mrf.mxu2  ;;  %v1931_v57 = vpop.f32.mrf.mxu3 }
 0x4b1   : > { %v1934_v17 = vadd.f32 %v1911_v7, %v1820_v5  ;;  %v1954_v52 = vadd.f32 %v1931_v57, %v1840_v38  ;;  %v4552_v5 = vld [vmem:[%s4737_s3 + $0x18] sm:$0xff]  ;;  %v4560_v38 = vld [vmem:[%s4738_s4 + $0x8] sm:$0xff]  ;;  %v4566_v7 = vld [vmem:[%s4737_s3 + $0x10] sm:$0xff] }
 0x4b2   : > { %4821 = vst [vmem:[#allocation17_spill] sm:$0xff] %v4566_v7  ;;  %v4571_v57 = vld [vmem:[%s4737_s3 + $0x8] sm:$0xff]  ;;  %2189 = vmatpush.msra.mxu2 %v4552_v5  ;;  %2265 = vmatpush.msrb.mxu3 %v4560_v38 }
 0x4b3   : > { %v2738_v27 = vmul.f32 -1.442695, %v1934_v17  ;;  %v2739_v0 = vmul.f32 -1.442695, %v1954_v52  ;;  %v4578_v17 = vld [vmem:[%s4738_s4] sm:$0xff]  ;;  %2169 = vmatpush.msra.mxu1 %v4566_v7 }
 0x4b4   : > { %v4584_v52 = vld [vmem:[%s4737_s3] sm:$0xff]  ;;  %2190 = vmatpush.msra.mxu2 %v4571_v57  ;;  %2266 = vmatpush.msrb.mxu3 %v4578_v17 }
 0x4b5   : > { %2882 = vpow2.f32 %v2738_v27  ;;  %4822 = vst [vmem:[#allocation18_spill] sm:$0xff] %v4584_v52  ;;  %2170 = vmatpush.msra.mxu1 %v4584_v52 }
 0x4b6   : > { %2884 = vpow2.f32 %v2739_v0  ;;  %2512 = vmatpush.msrb.mxu2 %v4304_v42  ;;  %v2007_v42 = vpop.f32.mrf.mxu0 }
 0x4b7   : > { %2436 = vmatpush.msrb.mxu1 %v4299_v60 }
 0x4b8   : > { %2513 = vmatpush.msrb.mxu2 %v4325_v51 }
 0x4b9   : > { %2437 = vmatpush.msrb.mxu1 %v4320_v59  ;;  %v2008_v59 = vadd.f32 %v4256_v49, %v2007_v42 }
 0x4ba   : > { %2514 = vmatpush.msrb.mxu2 %v4343_v32 }
 0x4bb   : > { %v2883_v10 = vpop.eup %2882  ;;  %2438 = vmatpush.msrb.mxu1 %v4338_v6  ;;  %v1860_v6 = vadd.f32 %v4308_v31, %v3652_v45 }
 0x4bc   : > { %v2885_v11 = vpop.eup %2884  ;;  %v1938_v13 = vadd.f32 1.0, %v2883_v10  ;;  %2515 = vmatpush.msrb.mxu2 %v4361_v63 }
 0x4bd   : > { %v4529_v19 = vadd.f32 1.0, %v2885_v11  ;;  %2439 = vmatpush.msrb.mxu1 %v4356_v40 }
 0x4be   : > { %2886 = vrcp.f32 %v1938_v13  ;;  %v1950_v56 = vand.u32 2147483648, %v1938_v13  ;;  %v1948_v21 = vand.u32 2147483647, %v1938_v13  ;;  %vm1944_vm9 = vweird.f32 %v1938_v13  ;;  %2516 = vmatpush.msrb.mxu2 %v4379_v41 }
 0x4bf   : > { %2888 = vrcp.f32 %v4529_v19  ;;  %2440 = vmatpush.msrb.mxu1 %v4374_v20  ;;  %v1970_v31 = vand.u32 2147483648, %v4529_v19  ;;  %vm1964_vm13 = vweird.f32 %v4529_v19  ;;  %v1968_v20 = vand.u32 2147483647, %v4529_v19 }
 0x4c0   : > { %v1951_v60 = vor.u32 1.1754944e-38, %v1950_v56  ;;  %vm1949_vm11 = vcmp.eq.f32.partialorder %v1948_v21, 8.507059e+37  ;;  %2517 = vmatpush.msrb.mxu2 %v4397_v61  ;;  %v2297_v21 = vld [vmem:[%s3167_s24 + $0xf] sm:$0x1] }
 0x4c1   : > { %2441 = vmatpush.msrb.mxu1 %v4392_v58  ;;  %vm1969_vm15 = vcmp.eq.f32.partialorder %v1968_v20, 8.507059e+37 }
 0x4c2   : > { %2518 = vmatpush.msrb.mxu2 %v4419_v14 }
 0x4c3   : > { %2442 = vmatpush.msrb.mxu1 %v4414_v29  ;;  %v1971_v29 = vor.u32 1.1754944e-38, %v1970_v31 }
 0x4c4   : > { %v2887_v27 = vpop.eup %2886  ;;  %2519 = vmatpush.msrb.mxu2 %v4437_v12 }
 0x4c5   : > { %v2889_v0 = vpop.eup %2888  ;;  %v1940_v10 = vmul.f32 %v2887_v27, %v1938_v13  ;;  %vm1945_vm8 = vweird.f32 %v2887_v27  ;;  %2443 = vmatpush.msrb.mxu1 %v4432_v43 }
 0x4c6   : > { %v1960_v16 = vmul.f32 %v2889_v0, %v4529_v19  ;;  %vm1946_vm10 = vmor %vm1944_vm9, %vm1945_vm8  ;;  %vm1965_vm12 = vweird.f32 %v2889_v0  ;;  %2520 = vmatpush.msrb.mxu2 %v4455_v3  ;;  %v2032_v3 = vpop.permute.xlu0 %2031 }
 0x4c7   : > { %v1941_v11 = vsub.f32 1.0, %v1940_v10  ;;  %2444 = vmatpush.msrb.mxu1 %v4450_v30  ;;  %vm1966_vm14 = vmor %vm1964_vm13, %vm1965_vm12 }
 0x4c8   : > { %v1961_v51 = vsub.f32 1.0, %v1960_v16  ;;  %2521 = vmatpush.msrb.mxu2 %v4473_v8  ;;  %v2296_v16 = vld [vmem:[%s3167_s24 + $0x7] sm:$0x1] }
 0x4c9   : > { %v1942_v7 = vmul.f32 %v2887_v27, %v1941_v11  ;;  %2445 = vmatpush.msrb.mxu1 %v4468_v2 }
 0x4ca   : > { %v1962_v13 = vmul.f32 %v2889_v0, %v1961_v51  ;;  %2522 = vmatpush.msrb.mxu2 %v4491_v18  ;;  %v2080_v18 = vpop.f32.mrf.mxu1 }
 0x4cb   : > { %v1943_v52 = vadd.f32 %v2887_v27, %v1942_v7  ;;  %2446 = vmatpush.msrb.mxu1 %v4486_v26  ;;  %v4823_v7 = vld [vmem:[#allocation12_spill] sm:$0xff] }
 0x4cc   : > { %v1963_v41 = vadd.f32 %v2889_v0, %v1962_v13  ;;  %2523 = vmatpush.msrb.mxu2 %v4509_v62  ;;  %v2316_v62 = vrot.slane %v2297_v21, 7 }
 0x4cd   : > { %v1947_v32 = vsel %vm1946_vm10, %v2887_v27, %v1943_v52  ;;  %2447 = vmatpush.msrb.mxu1 %v4504_v34  ;;  %v2298_v34 = vld [vmem:[%s3167_s24 + $0x17] sm:$0x1] }
 0x4ce   : > { %v1952_v10 = vsel %vm1949_vm11, %v1951_v60, %v1947_v32  ;;  %v1967_v58 = vsel %vm1966_vm14, %v2889_v0, %v1963_v41  ;;  %2524 = vmatpush.msrb.mxu2 %v4527_v37  ;;  %v2318_v37 = vrot.slane %v2298_v34, 6  ;;  %v2317_v19 = vsel %vm486_vm0, %v2316_v62, %v2296_v16  ;;  %v4826_v52 = vld [vmem:[#allocation17_spill] sm:$0xff] }
 0x4cf   : > { %v2010_v63 = vmul.f32 %v2008_v59, %v1952_v10  ;;  %v1972_v43 = vsel %vm1969_vm15, %v1971_v29, %v1967_v58  ;;  %2448 = vmatpush.msrb.mxu1 %v4522_v15  ;;  %v2299_v15 = vld [vmem:[%s3167_s24 + $0x1f] sm:$0x1] }
 0x4d0   : > { %2525 = vmatpush.msrb.mxu2 %v4541_v50  ;;  %v2319_v50 = vsel %vm489_vm1, %v2318_v37, %v2317_v19 }
 0x4d1   : > { %v2011_v40 = vadd.f32 %v2010_v63, %v1860_v6  ;;  %2449 = vmatpush.msrb.mxu1 %v4536_v44  ;;  %v2320_v44 = vrot.slane %v2299_v15, 5 }
 0x4d2   : > { %2526 = vmatpush.msrb.mxu2 %v4560_v38 }
 0x4d3   : > { %2890 = vtanh.f32 %v2011_v40  ;;  %2450 = vmatpush.msrb.mxu1 %v4552_v5  ;;  %v2321_v56 = vsel %vm492_vm2, %v2320_v44, %v2319_v50  ;;  %v2100_v5 = vpop.f32.mrf.mxu1 }
 0x4d4   : > { %2527 = vmatpush.msrb.mxu2 %v4578_v17  ;;  %2747 = vmatmul.msk.f32.vlgmr.msra.gmra.mxu0 %vm494_vm3, %v2321_v56 }
 0x4d5   : > { %2451 = vmatpush.msrb.mxu1 %v4571_v57  ;;  %2376 = vmatpush.msra.mxu0 %v4280_v53  ;;  %v2081_v53 = vadd.f32 %v2080_v18, %v4802_v24  ;;  %v2293_v18 = vpop.permute.xlu1 %2292 }
 0x4d7   : > { %2377 = vmatpush.msra.mxu0 %v4283_v25 }
 0x4d9   : > { %v2891_v61 = vpop.eup %2890  ;;  %2378 = vmatpush.msra.mxu0 %v4286_v4 }
 0x4da   : > { %v2013_v14 = vsub.f32 %v4262_v9, %v2891_v61 }
 0x4db   : > { %2379 = vmatpush.msra.mxu0 %v4289_v48  ;;  %v2120_v38 = vpop.f32.mrf.mxu1 }
 0x4dc   : > { %v2014_v12 = vmul.f32 %v2013_v14, %v1972_v43  ;;  %2748 = vmatmul.msk.f32.vlgmr.msrb.gmra.mxu0 %vm494_vm3, %v2321_v56  ;;  %v2121_v41 = vadd.f32 %v2120_v38, %v3652_v45 }
 0x4dd   : > { %2416 = vmatpush.msrb.mxu0 %v4294_v54  ;;  %v2101_v54 = vadd.f32 %v2100_v5, %v4803_v39 }
 0x4de   : > { %v2015_v30 = vadd.f32 %v2891_v61, %v2014_v12 }
 0x4df   : > { %2417 = vmatpush.msrb.mxu0 %v4315_v22 }
 0x4e0   : > { %v2017_v9 = vrot.slane %v2015_v30, 1  ;;  %v2018_v2 = vrot.slane %v2015_v30, 2  ;;  %v2019_v8 = vrot.slane %v2015_v30, 3  ;;  %2023 = vst [vmem:[%s3183_s17 + $0x5] sm:$0x1] %v2015_v30  ;;  %v4626_v26 = vmul.f32 %v2032_v3, %v2015_v30 }
 0x4e1   : > { %2418 = vmatpush.msrb.mxu0 %v4333_v1 }
 0x4e2   : > { %2024 = vst [vmem:[%s3183_s17 + $0xd] sm:$0x1] %v2017_v9  ;;  %2171 = vmatmul.f32.vlgmr.msra.gmra.mxu1 %v4626_v26  ;;  %2191 = vmatmul.f32.vlgmr.msra.gmra.mxu2 %v4626_v26 }
 0x4e3   : > { %2025 = vst [vmem:[%s3183_s17 + $0x15] sm:$0x1] %v2018_v2  ;;  %2267 = vmatmul.f32.vlgmr.msrb.gmra.mxu3 %v4626_v26  ;;  %2419 = vmatpush.msrb.mxu0 %v4351_v33 }
 0x4e4   : > { %2026 = vst [vmem:[%s3183_s17 + $0x1d] sm:$0x1] %v2019_v8  ;;  %2749 = vmatmul.msk.f32.vlgmr.msra.gmra.mxu0 %vm494_vm3, %v2321_v56 }
 0x4e5   : > { %2420 = vmatpush.msrb.mxu0 %v4369_v46 }
 0x4e7   : > { %2421 = vmatpush.msrb.mxu0 %v4387_v55 }
 0x4e9   : > { %2422 = vmatpush.msrb.mxu0 %v4409_v28  ;;  %v4824_v28 = vld [vmem:[#allocation11_spill] sm:$0xff] }
 0x4eb   : > { %2423 = vmatpush.msrb.mxu0 %v4427_v35  ;;  %v4825_v35 = vld [vmem:[#allocation16_spill] sm:$0xff] }
 0x4ed   : > { %2424 = vmatpush.msrb.mxu0 %v4445_v47 }
 0x4ef   : > { %2425 = vmatpush.msrb.mxu0 %v4463_v36  ;;  %v4827_v36 = vld [vmem:[#allocation18_spill] sm:$0xff] }
 0x4f1   : > { %2426 = vmatpush.msrb.mxu0 %v4481_v23 }
 0x4f3   : > { %2427 = vmatpush.msrb.mxu0 %v4823_v7 }
 0x4f5   : > { %2428 = vmatpush.msrb.mxu0 %v4824_v28 }
 0x4f7   : > { %2429 = vmatpush.msrb.mxu0 %v4825_v35 }
 0x4f9   : > { %2430 = vmatpush.msrb.mxu0 %v4826_v52 }
 0x4fb   : > { %2431 = vmatpush.msrb.mxu0 %v4827_v36 }
 0x55f   : > { %v2172_v25 = vpop.f32.mrf.mxu1 }
 0x560   : > { %v2195_v4 = vadd.f32 %v2172_v25, %v2081_v53 }
 0x562   : > { %v2744_v48 = vmul.f32 -1.442695, %v2195_v4 }
 0x564   : > { %2892 = vpow2.f32 %v2744_v48 }
 0x565   : > { %v2192_v22 = vpop.f32.mrf.mxu2 }
 0x566   : > { %v2215_v1 = vadd.f32 %v2192_v22, %v2101_v54  ;;  %v2268_v51 = vpop.f32.mrf.mxu3 }
 0x567   : > { %v2269_v13 = vadd.f32 %v4256_v49, %v2268_v51 }
 0x568   : > { %v2745_v33 = vmul.f32 -1.442695, %v2215_v1 }
 0x56a   : > { %v2893_v46 = vpop.eup %2892  ;;  %2894 = vpow2.f32 %v2745_v33 }
 0x56b   : > { %v2199_v55 = vadd.f32 1.0, %v2893_v46 }
 0x56d   : > { %2896 = vrcp.f32 %v2199_v55  ;;  %v2211_v0 = vand.u32 2147483648, %v2199_v55  ;;  %v2209_v42 = vand.u32 2147483647, %v2199_v55  ;;  %vm2205_vm1 = vweird.f32 %v2199_v55 }
 0x56f   : > { %v2212_v10 = vor.u32 1.1754944e-38, %v2211_v0  ;;  %vm2210_vm3 = vcmp.eq.f32.partialorder %v2209_v42, 8.507059e+37 }
 0x570   : > { %v2895_v57 = vpop.eup %2894 }
 0x571   : > { %v2219_v17 = vadd.f32 1.0, %v2895_v57 }
 0x573   : > { %v2897_v47 = vpop.eup %2896  ;;  %2898 = vrcp.f32 %v2219_v17  ;;  %v2231_v29 = vand.u32 2147483648, %v2219_v17  ;;  %vm2225_vm5 = vweird.f32 %v2219_v17  ;;  %v2229_v14 = vand.u32 2147483647, %v2219_v17 }
 0x574   : > { %v2201_v27 = vmul.f32 %v2897_v47, %v2199_v55  ;;  %vm2206_vm0 = vweird.f32 %v2897_v47 }
 0x575   : > { %vm2207_vm2 = vmor %vm2205_vm1, %vm2206_vm0  ;;  %v2232_v30 = vor.u32 1.1754944e-38, %v2231_v29  ;;  %vm2230_vm7 = vcmp.eq.f32.partialorder %v2229_v14, 8.507059e+37 }
 0x576   : > { %v2202_v23 = vsub.f32 1.0, %v2201_v27 }
 0x578   : > { %v2203_v11 = vmul.f32 %v2897_v47, %v2202_v23 }
 0x579   : > { %v2899_v60 = vpop.eup %2898 }
 0x57a   : > { %v2221_v59 = vmul.f32 %v2899_v60, %v2219_v17  ;;  %v2204_v32 = vadd.f32 %v2897_v47, %v2203_v11  ;;  %vm2226_vm4 = vweird.f32 %v2899_v60 }
 0x57b   : > { %vm2227_vm6 = vmor %vm2225_vm5, %vm2226_vm4 }
 0x57c   : > { %v2222_v6 = vsub.f32 1.0, %v2221_v59  ;;  %v2208_v63 = vsel %vm2207_vm2, %v2897_v47, %v2204_v32 }
 0x57d   : > { %v2213_v40 = vsel %vm2210_vm3, %v2212_v10, %v2208_v63 }
 0x57e   : > { %v2271_v31 = vmul.f32 %v2269_v13, %v2213_v40  ;;  %v2223_v20 = vmul.f32 %v2899_v60, %v2222_v6 }
 0x580   : > { %v2272_v58 = vadd.f32 %v2271_v31, %v2121_v41  ;;  %v2224_v61 = vadd.f32 %v2899_v60, %v2223_v20 }
 0x582   : > { %2900 = vtanh.f32 %v2272_v58  ;;  %v2228_v43 = vsel %vm2227_vm6, %v2899_v60, %v2224_v61 }
 0x583   : > { %v2233_v9 = vsel %vm2230_vm7, %v2232_v30, %v2228_v43 }
 0x588   : > { %v2901_v12 = vpop.eup %2900 }
 0x589   : > { %v2274_v3 = vsub.f32 %v4626_v26, %v2901_v12  ;;  %v2341_v26 = vpop.f32.mrf.mxu0 }
 0x58a   : > { %v2342_v19 = vadd.f32 %v2341_v26, %v4802_v24 }
 0x58b   : > { %v2275_v2 = vmul.f32 %v2274_v3, %v2233_v9 }
 0x58d   : > { %v2276_v8 = vadd.f32 %v2901_v12, %v2275_v2 }
 0x58f   : > { %v2278_v21 = vrot.slane %v2276_v8, 1  ;;  %v2279_v34 = vrot.slane %v2276_v8, 2  ;;  %v2280_v62 = vrot.slane %v2276_v8, 3  ;;  %2284 = vst [vmem:[%s3183_s17 + $0x6] sm:$0x1] %v2276_v8  ;;  %v4675_v16 = vmul.f32 %v2293_v18, %v2276_v8 }
 0x591   : > { %2285 = vst [vmem:[%s3183_s17 + $0xe] sm:$0x1] %v2278_v21  ;;  %2432 = vmatmul.f32.vlgmr.msrb.gmra.mxu0 %v4675_v16  ;;  %2452 = vmatmul.f32.vlgmr.msrb.gmra.mxu1 %v4675_v16  ;;  %v2361_v15 = vpop.f32.mrf.mxu0 }
 0x592   : > { %2286 = vst [vmem:[%s3183_s17 + $0x16] sm:$0x1] %v2279_v34  ;;  %2528 = vmatmul.f32.vlgmr.msrb.gmra.mxu2 %v4675_v16  ;;  %v2362_v44 = vadd.f32 %v2361_v15, %v4803_v39 }
 0x593   : > { %2287 = vst [vmem:[%s3183_s17 + $0x1e] sm:$0x1] %v2280_v62 }
 0x599   : > { %v2381_v37 = vpop.f32.mrf.mxu0 }
 0x59a   : > { %v2382_v23 = vadd.f32 %v2381_v37, %v3652_v45 }
 0x60e   : > { %v2433_v50 = vpop.f32.mrf.mxu0  ;;  %v2453_v56 = vpop.f32.mrf.mxu1 }
 0x60f   : > { %v2456_v5 = vadd.f32 %v2433_v50, %v2342_v19  ;;  %v2476_v38 = vadd.f32 %v2453_v56, %v2362_v44 }
 0x611   : > { %v2750_v53 = vmul.f32 -1.442695, %v2456_v5  ;;  %v2751_v25 = vmul.f32 -1.442695, %v2476_v38 }
 0x613   : > { %2902 = vpow2.f32 %v2750_v53 }
 0x614   : > { %2904 = vpow2.f32 %v2751_v25 }
 0x615   : > { %v2529_v35 = vpop.f32.mrf.mxu2 }
 0x616   : > { %v2530_v36 = vadd.f32 %v4256_v49, %v2529_v35 }
 0x619   : > { %v2903_v4 = vpop.eup %2902 }
 0x61a   : > { %v2905_v48 = vpop.eup %2904  ;;  %v2460_v54 = vadd.f32 1.0, %v2903_v4 }
 0x61b   : > { %v2480_v22 = vadd.f32 1.0, %v2905_v48 }
 0x61c   : > { %2906 = vrcp.f32 %v2460_v54  ;;  %v2472_v39 = vand.u32 2147483648, %v2460_v54  ;;  %v2470_v28 = vand.u32 2147483647, %v2460_v54  ;;  %vm2466_vm9 = vweird.f32 %v2460_v54 }
 0x61d   : > { %2908 = vrcp.f32 %v2480_v22  ;;  %v2492_v51 = vand.u32 2147483648, %v2480_v22  ;;  %vm2486_vm13 = vweird.f32 %v2480_v22  ;;  %v2490_v59 = vand.u32 2147483647, %v2480_v22 }
 0x61e   : > { %v2473_v52 = vor.u32 1.1754944e-38, %v2472_v39  ;;  %vm2471_vm11 = vcmp.eq.f32.partialorder %v2470_v28, 8.507059e+37 }
 0x61f   : > { %v2493_v6 = vor.u32 1.1754944e-38, %v2492_v51  ;;  %vm2491_vm15 = vcmp.eq.f32.partialorder %v2490_v59, 8.507059e+37 }
 0x622   : > { %v2907_v1 = vpop.eup %2906 }
 0x623   : > { %v2909_v33 = vpop.eup %2908  ;;  %v2462_v46 = vmul.f32 %v2907_v1, %v2460_v54  ;;  %vm2467_vm8 = vweird.f32 %v2907_v1 }
 0x624   : > { %v2482_v55 = vmul.f32 %v2909_v33, %v2480_v22  ;;  %vm2468_vm10 = vmor %vm2466_vm9, %vm2467_vm8  ;;  %vm2487_vm12 = vweird.f32 %v2909_v33 }
 0x625   : > { %v2463_v24 = vsub.f32 1.0, %v2462_v46  ;;  %vm2488_vm14 = vmor %vm2486_vm13, %vm2487_vm12 }
 0x626   : > { %v2483_v17 = vsub.f32 1.0, %v2482_v55 }
 0x627   : > { %v2464_v7 = vmul.f32 %v2907_v1, %v2463_v24 }
 0x628   : > { %v2484_v11 = vmul.f32 %v2909_v33, %v2483_v17 }
 0x629   : > { %v2465_v57 = vadd.f32 %v2907_v1, %v2464_v7 }
 0x62a   : > { %v2485_v60 = vadd.f32 %v2909_v33, %v2484_v11 }
 0x62b   : > { %v2469_v47 = vsel %vm2468_vm10, %v2907_v1, %v2465_v57 }
 0x62c   : > { %v2474_v27 = vsel %vm2471_vm11, %v2473_v52, %v2469_v47  ;;  %v2489_v32 = vsel %vm2488_vm14, %v2909_v33, %v2485_v60 }
 0x62d   : > { %v2532_v0 = vmul.f32 %v2530_v36, %v2474_v27  ;;  %v2494_v49 = vsel %vm2491_vm15, %v2493_v6, %v2489_v32 }
 0x62f   : > { %v2533_v42 = vadd.f32 %v2532_v0, %v2382_v23 }
 0x631   : > { %2910 = vtanh.f32 %v2533_v42 }
 0x637   : > { %v2911_v10 = vpop.eup %2910 }
 0x638   : > { %v2535_v45 = vsub.f32 %v4675_v16, %v2911_v10 }
 0x63a   : > { %v2536_v63 = vmul.f32 %v2535_v45, %v2494_v49 }
 0x63c   : > { %v2537_v13 = vadd.f32 %v2911_v10, %v2536_v63 }
 0x63e   : > { %v2539_v40 = vrot.slane %v2537_v13, 1  ;;  %v2540_v41 = vrot.slane %v2537_v13, 2  ;;  %v2541_v31 = vrot.slane %v2537_v13, 3  ;;  %2545 = vst [vmem:[%s3183_s17 + $0x7] sm:$0x1] %v2537_v13 }
 0x63f   : > { %2549 = vst [vmem:[#allocation2] sm:$0xf] %v2537_v13 }
 0x640   : > { %2546 = vst [vmem:[%s3183_s17 + $0xf] sm:$0x1] %v2539_v40 }
 0x641   : > { %2547 = vst [vmem:[%s3183_s17 + $0x17] sm:$0x1] %v2540_v41 }
 0x642   : > { %2548 = vst [vmem:[%s3183_s17 + $0x1f] sm:$0x1] %v2541_v31 }
 0x643   : > { %2970 = shalt.err (!%p2967_p13)
}
 0x644   : > { %s3031_s15 = smov 128   ;;  %s3032_s17 = smov 640  }
 0x645   : > { %s3033_s24 = smov 8  }
 0x646   : > { %2760 = dma.vmem_to_hbm [thread:$0]  (%p3122_p5), %s2566_s12, 512, %s2568_s14, %s2551_s21, %s3031_s15, %s3032_s17, %s3033_s24  }
 0x647 PF: > { %p2772_p0 = scmp.ge.s32.totalorder %s3025_s10, 2  ;;  %s2582_s26 = sand.u32 1, %s3005_s27  }
 0x648   : > { %s2583_s11 = scalar_lea.sflag [#allocation6], %s2582_s26 }
 0x649   : > { %p2767_p1 = pnand %p2772_p0, %p3135_p11 }
 0x64b   : > { %p2768_p2 = pneg %p2767_p1 }
 0x64d   : > { %3000 = dma.done.wait (%p2768_p2), %s2583_s11, 512  }
 0x64e   : > { %3002 = vsyncadd (%p2768_p2), %s2583_s11, 4294966784  ;;  %s22_s10 = sadd.s32 1, %s3025_s10   ;;  %s4828_s16 = sld [smem:[#allocation10_spill]] }
 0x64f   : > { %p19_p3 = scmp.ge.s32.totalorder %s22_s10, 7   ;;  %s4829_s27 = smov %s3009_s28 }
 0x650   : > { %s4830_s28 = smov %s3013_s29  ;;  %s4831_s29 = smov %s3133_s18 }
 0x651   : > { %s4832_s30 = smov %s3021_s9  ;;  %21 = sbr.rel (!%p19_p3) target bundleno = 7 (0x7), region = 152 }
 0x654   : > { %s4833_s9 = smov %s4828_s16 }
 0x656   :  { %2589 = vsyncpa [#allocation5], 1 }
 0x657   :  { %2591 = vsyncpa [#allocation5 + $0x1], 1 }
 0x658   :  { %2592 = vsyncpa [#allocation6], 1 }
 0x659   :  { %2594 = vsyncpa [#allocation6 + $0x1], 1 }

</bundles_post_ra>
